<compile_context>
chip_gen: v6e
topology: v6e:2x2x1
jax: 0.10.0
libtpu: 0.0.40
codegen_flags: <defaults>
</compile_context>

<pallas_src>
import functools
import math

import jax
import jax.numpy as jnp
from jax.experimental import pallas as pl
from jax.experimental.pallas import tpu as pltpu


# ---------------------------------------------------------------------------
# Fused SimpleMLPAdaLN core kernel (one batch tile per grid step)
# ---------------------------------------------------------------------------
def _net_core_kernel(x_ref, y_ref,
                     w_in_ref, b_in_ref,
                     ln_g_ref, ln_b_ref,
                     wa_s_ref, wa_c_ref, wa_g_ref,
                     ba_s_ref, ba_c_ref, ba_g_ref,
                     w1_ref, b1_ref, w2_ref, b2_ref,
                     wf_s_ref, wf_c_ref, bf_s_ref, bf_c_ref,
                     w_fin_ref, b_fin_ref,
                     o_ref, *, depth, eps=1e-6):
    f32 = jnp.float32

    # SiLU(y) is shared by every adaLN head (res blocks + final layer).
    y = y_ref[...].astype(f32)
    silu_y = (y * jax.nn.sigmoid(y)).astype(wa_s_ref.dtype)

    # ---- input_proj ----
    x = jnp.dot(x_ref[...].astype(w_in_ref.dtype), w_in_ref[...],
                preferred_element_type=f32)
    x = x + b_in_ref[...].astype(f32)

    # ---- residual adaLN blocks (depth is static -> unrolled) ----
    for d in range(depth):
        shift = jnp.dot(silu_y, wa_s_ref[d], preferred_element_type=f32) \
            + ba_s_ref[d].astype(f32)
        scale = jnp.dot(silu_y, wa_c_ref[d], preferred_element_type=f32) \
            + ba_c_ref[d].astype(f32)
        gate = jnp.dot(silu_y, wa_g_ref[d], preferred_element_type=f32) \
            + ba_g_ref[d].astype(f32)

        mean = jnp.mean(x, axis=-1, keepdims=True)
        cx = x - mean
        var = jnp.mean(cx * cx, axis=-1, keepdims=True)
        normed = cx * jax.lax.rsqrt(var + eps)
        normed = normed * ln_g_ref[d].astype(f32) + ln_b_ref[d].astype(f32)

        h = (normed * (1.0 + scale) + shift).astype(w1_ref.dtype)
        h = jnp.dot(h, w1_ref[d], preferred_element_type=f32) \
            + b1_ref[d].astype(f32)
        h = h * jax.nn.sigmoid(h)
        h = jnp.dot(h.astype(w2_ref.dtype), w2_ref[d],
                    preferred_element_type=f32) + b2_ref[d].astype(f32)
        x = x + gate * h

    # ---- final layer: adaLN (2 chunks) + LayerNorm(no affine) + Linear ----
    shift = jnp.dot(silu_y, wf_s_ref[...], preferred_element_type=f32) \
        + bf_s_ref[...].astype(f32)
    scale = jnp.dot(silu_y, wf_c_ref[...], preferred_element_type=f32) \
        + bf_c_ref[...].astype(f32)

    mean = jnp.mean(x, axis=-1, keepdims=True)
    cx = x - mean
    var = jnp.mean(cx * cx, axis=-1, keepdims=True)
    normed = cx * jax.lax.rsqrt(var + eps)

    mod = (normed * (1.0 + scale) + shift).astype(w_fin_ref.dtype)
    out = jnp.dot(mod, w_fin_ref[...], preferred_element_type=f32)
    out = out + b_fin_ref[...].astype(f32)
    o_ref[...] = out.astype(o_ref.dtype)


def _round_up(n, m):
    return (n + m - 1) // m * m


def _const_map(ndim):
    if ndim == 2:
        return lambda i: (0, 0)
    return lambda i: (0, 0, 0)


def timestep_embedding(t, dim, max_period=10000):
    half = dim // 2
    freqs = jnp.exp(-math.log(max_period)
                    * jnp.arange(half, dtype=jnp.float32) / half)
    args = t.astype(jnp.float32)[:, None] * freqs[None, :]
    emb = jnp.concatenate([jnp.cos(args), jnp.sin(args)], axis=-1)
    if dim % 2:
        emb = jnp.concatenate([emb, jnp.zeros_like(emb[:, :1])], axis=-1)
    return emb


def simple_mlp_adaln_forward(x, t, z, params, *, tile_b=256, out_dtype=None):
    """SimpleMLPAdaLN.forward: embeddings in plain JAX, MLP core in Pallas."""
    # ---- conditioning (plain JAX; tiny batch-sized matmuls) ----
    freq_dim = params["time_w1"].shape[0]
    t_freq = timestep_embedding(t, freq_dim)
    t_h = t_freq @ params["time_w1"] + params["time_b1"]
    t_h = t_h * jax.nn.sigmoid(t_h)
    t_emb = t_h @ params["time_w2"] + params["time_b2"]
    c_emb = z @ params["cond_w"] + params["cond_b"]
    y = t_emb + c_emb

    N, C_in = x.shape
    C = params["in_w"].shape[1]
    D = params["ada_w"].shape[0]
    OUT = params["f_lin_w"].shape[1]
    out_dtype = x.dtype if out_dtype is None else out_dtype

    # ---- split fused adaLN weights once (pre-split in production) ----
    ada_w, ada_b = params["ada_w"], params["ada_b"]
    wa_s, wa_c, wa_g = ada_w[:, :, :C], ada_w[:, :, C:2 * C], ada_w[:, :, 2 * C:]
    ba_s = ada_b[:, :C].reshape(D, 1, C)
    ba_c = ada_b[:, C:2 * C].reshape(D, 1, C)
    ba_g = ada_b[:, 2 * C:].reshape(D, 1, C)
    ln_g = params["ln_g"].reshape(D, 1, C)
    ln_b = params["ln_b"].reshape(D, 1, C)
    w1 = params["mlp_w1"]
    b1 = params["mlp_b1"].reshape(D, 1, C)
    w2 = params["mlp_w2"]
    b2 = params["mlp_b2"].reshape(D, 1, C)

    f_ada_w, f_ada_b = params["f_ada_w"], params["f_ada_b"]
    wf_s, wf_c = f_ada_w[:, :C], f_ada_w[:, C:]
    bf_s = f_ada_b[:C].reshape(1, C)
    bf_c = f_ada_b[C:].reshape(1, C)

    w_in = params["in_w"]
    b_in = params["in_b"].reshape(1, C)

    # ---- lane-dense output: pad OUT to a multiple of 128 ----
    OUT_PAD = _round_up(max(OUT, 128), 128)
    w_fin = params["f_lin_w"]
    b_fin = params["f_lin_b"]
    if OUT_PAD != OUT:
        w_fin = jnp.pad(w_fin, ((0, 0), (0, OUT_PAD - OUT)))
        b_fin = jnp.pad(b_fin, (0, OUT_PAD - OUT))
    b_fin = b_fin.reshape(1, OUT_PAD)

    # ---- batch tiling (padded rows are zeros -> all math stays finite) ----
    tb = min(tile_b, _round_up(N, 8))
    n_pad = _round_up(N, tb)
    if n_pad != N:
        x = jnp.pad(x, ((0, n_pad - N), (0, 0)))
        y = jnp.pad(y, ((0, n_pad - N), (0, 0)))
    grid = (n_pad // tb,)

    flops = n_pad * (2 * C_in * C + D * 10 * C * C + 4 * C * C
                     + 2 * C * OUT_PAD + (D + 2) * 12 * C)
    w_elems = (C_in * C + D * (5 * C * C + 7 * C) + 2 * C * C + 3 * C
               + C * OUT_PAD + OUT_PAD)
    itemsize = jnp.dtype(x.dtype).itemsize
    bytes_accessed = (x.size + y.size + w_elems) * itemsize \
        + n_pad * OUT_PAD * jnp.dtype(out_dtype).itemsize

    kernel = functools.partial(_net_core_kernel, depth=D)
    args = (x, y, w_in, b_in, ln_g, ln_b, wa_s, wa_c, wa_g, ba_s, ba_c, ba_g,
            w1, b1, w2, b2, wf_s, wf_c, bf_s, bf_c, w_fin, b_fin)

    def _build(single_buffer_weights):
        def w_spec(shape):
            # Constant index_map -> block never changes across the grid;
            # single-buffering halves its VMEM footprint.
            if single_buffer_weights:
                return pl.BlockSpec(shape, _const_map(len(shape)),
                                    pipeline_mode=pl.Buffered(1))
            return pl.BlockSpec(shape, _const_map(len(shape)))

        in_specs = [
            pl.BlockSpec((tb, C_in), lambda i: (i, 0)),            # x tile
            pl.BlockSpec((tb, C), lambda i: (i, 0)),               # y tile
            w_spec((C_in, C)), w_spec((1, C)),                     # input_proj
            w_spec((D, 1, C)), w_spec((D, 1, C)),                  # in_ln g/b
            w_spec((D, C, C)), w_spec((D, C, C)), w_spec((D, C, C)),  # adaLN W
            w_spec((D, 1, C)), w_spec((D, 1, C)), w_spec((D, 1, C)),  # adaLN b
            w_spec((D, C, C)), w_spec((D, 1, C)),                  # mlp fc1
            w_spec((D, C, C)), w_spec((D, 1, C)),                  # mlp fc2
            w_spec((C, C)), w_spec((C, C)),                        # final adaLN W
            w_spec((1, C)), w_spec((1, C)),                        # final adaLN b
            w_spec((C, OUT_PAD)), w_spec((1, OUT_PAD)),            # final linear
        ]
        return pl.pallas_call(
            kernel,
            out_shape=jax.ShapeDtypeStruct((n_pad, OUT_PAD), out_dtype),
            grid_spec=pltpu.PrefetchScalarGridSpec(
                num_scalar_prefetch=0,
                grid=grid,
                in_specs=in_specs,
                out_specs=pl.BlockSpec((tb, OUT_PAD), lambda i: (i, 0)),
            ),
            compiler_params=pltpu.CompilerParams(
                dimension_semantics=("parallel",),        # megacore / 2-TC shard
                vmem_limit_bytes=48 * 1024 * 1024),       # safe on v5e/v6e/v7x
            cost_estimate=pl.CostEstimate(
                flops=int(flops),
                transcendentals=int(n_pad * C * (D + 2)),
                bytes_accessed=int(bytes_accessed)),
        )

    try:
        out = _build(single_buffer_weights=True)(*args)
    except Exception:
        # Fallback for JAX builds that reject pipeline_mode=pl.Buffered(1).
        out = _build(single_buffer_weights=False)(*args)

    return out[:N, :OUT]


# ---------------------------------------------------------------------------
# Pure-JAX reference (matches the PyTorch SimpleMLPAdaLN forward)
# ---------------------------------------------------------------------------
def simple_mlp_adaln_reference(x, t, z, params):
    eps = 1e-6
    freq_dim = params["time_w1"].shape[0]
    t_freq = timestep_embedding(t, freq_dim)
    t_h = t_freq @ params["time_w1"] + params["time_b1"]
    t_h = t_h * jax.nn.sigmoid(t_h)
    t_emb = t_h @ params["time_w2"] + params["time_b2"]
    c_emb = z @ params["cond_w"] + params["cond_b"]
    y = t_emb + c_emb

    C = params["in_w"].shape[1]
    D = params["ada_w"].shape[0]

    h = x @ params["in_w"] + params["in_b"]
    silu_y = y * jax.nn.sigmoid(y)
    for d in range(D):
        ada = silu_y @ params["ada_w"][d] + params["ada_b"][d]
        shift, scale, gate = ada[:, :C], ada[:, C:2 * C], ada[:, 2 * C:]
        mean = jnp.mean(h, axis=-1, keepdims=True)
        var = jnp.mean((h - mean) ** 2, axis=-1, keepdims=True)
        normed = (h - mean) / jnp.sqrt(var + eps)
        normed = normed * params["ln_g"][d] + params["ln_b"][d]
        m = normed * (1.0 + scale) + shift
        m = m @ params["mlp_w1"][d] + params["mlp_b1"][d]
        m = m * jax.nn.sigmoid(m)
        m = m @ params["mlp_w2"][d] + params["mlp_b2"][d]
        h = h + gate * m

    ada = silu_y @ params["f_ada_w"] + params["f_ada_b"]
    shift, scale = ada[:, :C], ada[:, C:]
    mean = jnp.mean(h, axis=-1, keepdims=True)
    var = jnp.mean((h - mean) ** 2, axis=-1, keepdims=True)
    normed = (h - mean) / jnp.sqrt(var + eps)
    mod = normed * (1.0 + scale) + shift
    return mod @ params["f_lin_w"] + params["f_lin_b"]


# ---------------------------------------------------------------------------
# NoiseScheduler (plain JAX, elementwise)
# ---------------------------------------------------------------------------
def make_noise_scheduler(num_timesteps, beta_start=1e-4, beta_end=0.02):
    betas = jnp.linspace(beta_start, beta_end, num_timesteps, dtype=jnp.float32)
    alphas = 1.0 - betas
    alphas_cumprod = jnp.cumprod(alphas)
    return {
        "sqrt_alphas_cumprod": jnp.sqrt(alphas_cumprod),
        "sqrt_one_minus_alphas_cumprod": jnp.sqrt(1.0 - alphas_cumprod),
    }


def add_noise(sched, x_start, noise, timesteps):
    s1 = sched["sqrt_alphas_cumprod"][timesteps].reshape(-1, 1)
    s2 = sched["sqrt_one_minus_alphas_cumprod"][timesteps].reshape(-1, 1)
    return s1 * x_start + s2 * noise


if __name__ == "__main__":
    key = jax.random.PRNGKey(0)
    keys = jax.random.split(key, 25)

    # Small DiffLoss config
    N = 12                      # ragged batch -> exercises batch padding
    target_channels = 16        # in/out channels
    z_channels = 24
    model_channels = 32         # width
    depth = 3                   # num res blocks
    freq_dim = 256
    num_sampling_steps = 100

    def rnd(k, shape, scale=0.05):
        return scale * jax.random.normal(k, shape, dtype=jnp.float32)

    C = model_channels
    params = {
        "time_w1": rnd(keys[0], (freq_dim, C)),
        "time_b1": rnd(keys[1], (C,)),
        "time_w2": rnd(keys[2], (C, C)),
        "time_b2": rnd(keys[3], (C,)),
        "cond_w": rnd(keys[4], (z_channels, C)),
        "cond_b": rnd(keys[5], (C,)),
        "in_w": rnd(keys[6], (target_channels, C)),
        "in_b": rnd(keys[7], (C,)),
        "ln_g": 1.0 + rnd(keys[8], (depth, C)),
        "ln_b": rnd(keys[9], (depth, C)),
        "ada_w": rnd(keys[10], (depth, C, 3 * C)),
        "ada_b": rnd(keys[11], (depth, 3 * C)),
        "mlp_w1": rnd(keys[12], (depth, C, C)),
        "mlp_b1": rnd(keys[13], (depth, C)),
        "mlp_w2": rnd(keys[14], (depth, C, C)),
        "mlp_b2": rnd(keys[15], (depth, C)),
        "f_ada_w": rnd(keys[16], (C, 2 * C)),
        "f_ada_b": rnd(keys[17], (2 * C,)),
        "f_lin_w": rnd(keys[18], (C, target_channels)),
        "f_lin_b": rnd(keys[19], (target_channels,)),
    }

    target = jax.random.normal(keys[20], (N, target_channels), dtype=jnp.float32)
    z = jax.random.normal(keys[21], (N, z_channels), dtype=jnp.float32)
    noise = jax.random.normal(keys[22], (N, target_channels), dtype=jnp.float32)
    timesteps = jax.random.randint(keys[23], (N,), 0, num_sampling_steps)

    sched = make_noise_scheduler(num_sampling_steps)
    noisy = add_noise(sched, target, noise, timesteps)

    # Pallas forward of the SimpleMLPAdaLN net
    noise_pred = simple_mlp_adaln_forward(noisy, timesteps, z, params, tile_b=256)
    noise_pred = jax.block_until_ready(noise_pred)

    noise_pred_ref = simple_mlp_adaln_reference(noisy, timesteps, z, params)

    assert noise_pred.shape == (N, target_channels)
    assert jnp.allclose(noise_pred, noise_pred_ref, atol=1e-4, rtol=1e-4), \
        "mismatch vs reference"

    # DiffLoss.forward loss (MSE between predicted and sampled noise)
    loss = jnp.mean((noise_pred - noise) ** 2)
    loss_ref = jnp.mean((noise_pred_ref - noise) ** 2)
    assert jnp.allclose(loss, loss_ref, atol=1e-5, rtol=1e-5)

    print("KERNEL_OK")
</pallas_src>

<mosaic_0001>
module attributes {stable_mosaic.version = 11 : i64} {
  func.func @_net_core_kernel(%arg0: i32, %arg1: memref<16x16xf32, #tpu.memory_space<vmem>>, %arg2: memref<16x32xf32, #tpu.memory_space<vmem>>, %arg3: memref<16x32xf32, #tpu.memory_space<vmem>>, %arg4: memref<1x32xf32, #tpu.memory_space<vmem>>, %arg5: memref<3x1x32xf32, #tpu.memory_space<vmem>>, %arg6: memref<3x1x32xf32, #tpu.memory_space<vmem>>, %arg7: memref<3x32x32xf32, #tpu.memory_space<vmem>>, %arg8: memref<3x32x32xf32, #tpu.memory_space<vmem>>, %arg9: memref<3x32x32xf32, #tpu.memory_space<vmem>>, %arg10: memref<3x1x32xf32, #tpu.memory_space<vmem>>, %arg11: memref<3x1x32xf32, #tpu.memory_space<vmem>>, %arg12: memref<3x1x32xf32, #tpu.memory_space<vmem>>, %arg13: memref<3x32x32xf32, #tpu.memory_space<vmem>>, %arg14: memref<3x1x32xf32, #tpu.memory_space<vmem>>, %arg15: memref<3x32x32xf32, #tpu.memory_space<vmem>>, %arg16: memref<3x1x32xf32, #tpu.memory_space<vmem>>, %arg17: memref<32x32xf32, #tpu.memory_space<vmem>>, %arg18: memref<32x32xf32, #tpu.memory_space<vmem>>, %arg19: memref<1x32xf32, #tpu.memory_space<vmem>>, %arg20: memref<1x32xf32, #tpu.memory_space<vmem>>, %arg21: memref<32x128xf32, #tpu.memory_space<vmem>>, %arg22: memref<1x128xf32, #tpu.memory_space<vmem>>, %arg23: memref<16x128xf32, #tpu.memory_space<vmem>>) attributes {dimension_semantics = [#tpu.dimension_semantics<parallel>], iteration_bounds = array<i64: 1>, scalar_prefetch = 0 : i64, scratch_operands = 0 : i64, tpu.core_type = #tpu.core_type<tc>, window_params = [{transform_indices = @transform_0, window_bounds = array<i64: 16, 16>}, {transform_indices = @transform_1, window_bounds = array<i64: 16, 32>}, {pipeline_mode = #tpu.pipeline_mode<synchronous>, transform_indices = @transform_2, window_bounds = array<i64: 16, 32>}, {pipeline_mode = #tpu.pipeline_mode<synchronous>, transform_indices = @transform_3, window_bounds = array<i64: 1, 32>}, {pipeline_mode = #tpu.pipeline_mode<synchronous>, transform_indices = @transform_4, window_bounds = array<i64: 3, 1, 32>}, {pipeline_mode = #tpu.pipeline_mode<synchronous>, transform_indices = @transform_5, window_bounds = array<i64: 3, 1, 32>}, {pipeline_mode = #tpu.pipeline_mode<synchronous>, transform_indices = @transform_6, window_bounds = array<i64: 3, 32, 32>}, {pipeline_mode = #tpu.pipeline_mode<synchronous>, transform_indices = @transform_7, window_bounds = array<i64: 3, 32, 32>}, {pipeline_mode = #tpu.pipeline_mode<synchronous>, transform_indices = @transform_8, window_bounds = array<i64: 3, 32, 32>}, {pipeline_mode = #tpu.pipeline_mode<synchronous>, transform_indices = @transform_9, window_bounds = array<i64: 3, 1, 32>}, {pipeline_mode = #tpu.pipeline_mode<synchronous>, transform_indices = @transform_10, window_bounds = array<i64: 3, 1, 32>}, {pipeline_mode = #tpu.pipeline_mode<synchronous>, transform_indices = @transform_11, window_bounds = array<i64: 3, 1, 32>}, {pipeline_mode = #tpu.pipeline_mode<synchronous>, transform_indices = @transform_12, window_bounds = array<i64: 3, 32, 32>}, {pipeline_mode = #tpu.pipeline_mode<synchronous>, transform_indices = @transform_13, window_bounds = array<i64: 3, 1, 32>}, {pipeline_mode = #tpu.pipeline_mode<synchronous>, transform_indices = @transform_14, window_bounds = array<i64: 3, 32, 32>}, {pipeline_mode = #tpu.pipeline_mode<synchronous>, transform_indices = @transform_15, window_bounds = array<i64: 3, 1, 32>}, {pipeline_mode = #tpu.pipeline_mode<synchronous>, transform_indices = @transform_16, window_bounds = array<i64: 32, 32>}, {pipeline_mode = #tpu.pipeline_mode<synchronous>, transform_indices = @transform_17, window_bounds = array<i64: 32, 32>}, {pipeline_mode = #tpu.pipeline_mode<synchronous>, transform_indices = @transform_18, window_bounds = array<i64: 1, 32>}, {pipeline_mode = #tpu.pipeline_mode<synchronous>, transform_indices = @transform_19, window_bounds = array<i64: 1, 32>}, {pipeline_mode = #tpu.pipeline_mode<synchronous>, transform_indices = @transform_20, window_bounds = array<i64: 32, 128>}, {pipeline_mode = #tpu.pipeline_mode<synchronous>, transform_indices = @transform_21, window_bounds = array<i64: 1, 128>}, {transform_indices = @transform_22, window_bounds = array<i64: 16, 128>}]} {
    %c0 = arith.constant 0 : index
    %c0_0 = arith.constant 0 : index
    %0 = vector.load %arg2[%c0, %c0_0] : memref<16x32xf32, #tpu.memory_space<vmem>>, vector<16x32xf32>
    %1 = arith.negf %0 : vector<16x32xf32>
    %2 = math.exp %1 : vector<16x32xf32>
    %cst = arith.constant 1.000000e+00 : f32
    %3 = vector.broadcast %cst : f32 to vector<16x32xf32>
    %4 = arith.addf %3, %2 : vector<16x32xf32>
    %5 = arith.divf %3, %4 : vector<16x32xf32>
    %6 = arith.mulf %0, %5 : vector<16x32xf32>
    %c0_1 = arith.constant 0 : index
    %c0_2 = arith.constant 0 : index
    %7 = vector.load %arg1[%c0_1, %c0_2] : memref<16x16xf32, #tpu.memory_space<vmem>>, vector<16x16xf32>
    %c0_3 = arith.constant 0 : index
    %c0_4 = arith.constant 0 : index
    %8 = vector.load %arg3[%c0_3, %c0_4] : memref<16x32xf32, #tpu.memory_space<vmem>>, vector<16x32xf32>
    %cst_5 = arith.constant dense<0.000000e+00> : vector<16x32xf32>
    %9 = tpu.matmul %7, %8, %cst_5 {dimension_numbers = #tpu.dot_dimension_numbers<[1], [0], [0], [1], [0, 0, 1, 1], [], []>} : vector<16x16xf32>, vector<16x32xf32>, vector<16x32xf32> -> vector<16x32xf32>
    %c0_6 = arith.constant 0 : index
    %c0_7 = arith.constant 0 : index
    %10 = vector.load %arg4[%c0_6, %c0_7] : memref<1x32xf32, #tpu.memory_space<vmem>>, vector<1x32xf32>
    %11 = vector.broadcast %10 : vector<1x32xf32> to vector<16x32xf32>
    %12 = arith.addf %9, %11 : vector<16x32xf32>
    %c0_8 = arith.constant 0 : index
    %c0_9 = arith.constant 0 : index
    %c0_10 = arith.constant 0 : index
    %13 = vector.load %arg7[%c0_8, %c0_9, %c0_10] : memref<3x32x32xf32, #tpu.memory_space<vmem>>, vector<1x32x32xf32>
    %14 = vector.shape_cast %13 : vector<1x32x32xf32> to vector<32x32xf32>
    %cst_11 = arith.constant dense<0.000000e+00> : vector<16x32xf32>
    %15 = tpu.matmul %6, %14, %cst_11 {dimension_numbers = #tpu.dot_dimension_numbers<[1], [0], [0], [1], [0, 0, 1, 1], [], []>} : vector<16x32xf32>, vector<32x32xf32>, vector<16x32xf32> -> vector<16x32xf32>
    %c0_12 = arith.constant 0 : index
    %c0_13 = arith.constant 0 : index
    %c0_14 = arith.constant 0 : index
    %16 = vector.load %arg10[%c0_12, %c0_13, %c0_14] : memref<3x1x32xf32, #tpu.memory_space<vmem>>, vector<1x1x32xf32>
    %17 = vector.shape_cast %16 : vector<1x1x32xf32> to vector<1x32xf32>
    %18 = vector.broadcast %17 : vector<1x32xf32> to vector<16x32xf32>
    %19 = arith.addf %15, %18 : vector<16x32xf32>
    %c0_15 = arith.constant 0 : index
    %c0_16 = arith.constant 0 : index
    %c0_17 = arith.constant 0 : index
    %20 = vector.load %arg8[%c0_15, %c0_16, %c0_17] : memref<3x32x32xf32, #tpu.memory_space<vmem>>, vector<1x32x32xf32>
    %21 = vector.shape_cast %20 : vector<1x32x32xf32> to vector<32x32xf32>
    %cst_18 = arith.constant dense<0.000000e+00> : vector<16x32xf32>
    %22 = tpu.matmul %6, %21, %cst_18 {dimension_numbers = #tpu.dot_dimension_numbers<[1], [0], [0], [1], [0, 0, 1, 1], [], []>} : vector<16x32xf32>, vector<32x32xf32>, vector<16x32xf32> -> vector<16x32xf32>
    %c0_19 = arith.constant 0 : index
    %c0_20 = arith.constant 0 : index
    %c0_21 = arith.constant 0 : index
    %23 = vector.load %arg11[%c0_19, %c0_20, %c0_21] : memref<3x1x32xf32, #tpu.memory_space<vmem>>, vector<1x1x32xf32>
    %24 = vector.shape_cast %23 : vector<1x1x32xf32> to vector<1x32xf32>
    %25 = vector.broadcast %24 : vector<1x32xf32> to vector<16x32xf32>
    %26 = arith.addf %22, %25 : vector<16x32xf32>
    %c0_22 = arith.constant 0 : index
    %c0_23 = arith.constant 0 : index
    %c0_24 = arith.constant 0 : index
    %27 = vector.load %arg9[%c0_22, %c0_23, %c0_24] : memref<3x32x32xf32, #tpu.memory_space<vmem>>, vector<1x32x32xf32>
    %28 = vector.shape_cast %27 : vector<1x32x32xf32> to vector<32x32xf32>
    %cst_25 = arith.constant dense<0.000000e+00> : vector<16x32xf32>
    %29 = tpu.matmul %6, %28, %cst_25 {dimension_numbers = #tpu.dot_dimension_numbers<[1], [0], [0], [1], [0, 0, 1, 1], [], []>} : vector<16x32xf32>, vector<32x32xf32>, vector<16x32xf32> -> vector<16x32xf32>
    %c0_26 = arith.constant 0 : index
    %c0_27 = arith.constant 0 : index
    %c0_28 = arith.constant 0 : index
    %30 = vector.load %arg12[%c0_26, %c0_27, %c0_28] : memref<3x1x32xf32, #tpu.memory_space<vmem>>, vector<1x1x32xf32>
    %31 = vector.shape_cast %30 : vector<1x1x32xf32> to vector<1x32xf32>
    %32 = vector.broadcast %31 : vector<1x32xf32> to vector<16x32xf32>
    %33 = arith.addf %29, %32 : vector<16x32xf32>
    %cst_29 = arith.constant dense<0.000000e+00> : vector<16xf32>
    %34 = vector.multi_reduction <add>, %12, %cst_29 [1] : vector<16x32xf32> to vector<16xf32>
    %35 = vector.shape_cast %34 : vector<16xf32> to vector<16x1xf32>
    %cst_30 = arith.constant 3.200000e+01 : f32
    %36 = vector.broadcast %cst_30 : f32 to vector<16x1xf32>
    %37 = arith.divf %35, %36 : vector<16x1xf32>
    %38 = vector.broadcast %37 : vector<16x1xf32> to vector<16x32xf32>
    %39 = arith.subf %12, %38 : vector<16x32xf32>
    %40 = arith.mulf %39, %39 : vector<16x32xf32>
    %cst_31 = arith.constant dense<0.000000e+00> : vector<16xf32>
    %41 = vector.multi_reduction <add>, %40, %cst_31 [1] : vector<16x32xf32> to vector<16xf32>
    %42 = vector.shape_cast %41 : vector<16xf32> to vector<16x1xf32>
    %cst_32 = arith.constant 3.200000e+01 : f32
    %43 = vector.broadcast %cst_32 : f32 to vector<16x1xf32>
    %44 = arith.divf %42, %43 : vector<16x1xf32>
    %cst_33 = arith.constant 9.99999997E-7 : f32
    %45 = vector.broadcast %cst_33 : f32 to vector<16x1xf32>
    %46 = arith.addf %44, %45 : vector<16x1xf32>
    %47 = math.rsqrt %46 : vector<16x1xf32>
    %48 = vector.broadcast %47 : vector<16x1xf32> to vector<16x32xf32>
    %49 = arith.mulf %39, %48 : vector<16x32xf32>
    %c0_34 = arith.constant 0 : index
    %c0_35 = arith.constant 0 : index
    %c0_36 = arith.constant 0 : index
    %50 = vector.load %arg5[%c0_34, %c0_35, %c0_36] : memref<3x1x32xf32, #tpu.memory_space<vmem>>, vector<1x1x32xf32>
    %51 = vector.shape_cast %50 : vector<1x1x32xf32> to vector<1x32xf32>
    %52 = vector.broadcast %51 : vector<1x32xf32> to vector<16x32xf32>
    %53 = arith.mulf %49, %52 : vector<16x32xf32>
    %c0_37 = arith.constant 0 : index
    %c0_38 = arith.constant 0 : index
    %c0_39 = arith.constant 0 : index
    %54 = vector.load %arg6[%c0_37, %c0_38, %c0_39] : memref<3x1x32xf32, #tpu.memory_space<vmem>>, vector<1x1x32xf32>
    %55 = vector.shape_cast %54 : vector<1x1x32xf32> to vector<1x32xf32>
    %56 = vector.broadcast %55 : vector<1x32xf32> to vector<16x32xf32>
    %57 = arith.addf %53, %56 : vector<16x32xf32>
    %cst_40 = arith.constant 1.000000e+00 : f32
    %58 = vector.broadcast %cst_40 : f32 to vector<16x32xf32>
    %59 = arith.addf %58, %26 : vector<16x32xf32>
    %60 = arith.mulf %57, %59 : vector<16x32xf32>
    %61 = arith.addf %60, %19 : vector<16x32xf32>
    %c0_41 = arith.constant 0 : index
    %c0_42 = arith.constant 0 : index
    %c0_43 = arith.constant 0 : index
    %62 = vector.load %arg13[%c0_41, %c0_42, %c0_43] : memref<3x32x32xf32, #tpu.memory_space<vmem>>, vector<1x32x32xf32>
    %63 = vector.shape_cast %62 : vector<1x32x32xf32> to vector<32x32xf32>
    %cst_44 = arith.constant dense<0.000000e+00> : vector<16x32xf32>
    %64 = tpu.matmul %61, %63, %cst_44 {dimension_numbers = #tpu.dot_dimension_numbers<[1], [0], [0], [1], [0, 0, 1, 1], [], []>} : vector<16x32xf32>, vector<32x32xf32>, vector<16x32xf32> -> vector<16x32xf32>
    %c0_45 = arith.constant 0 : index
    %c0_46 = arith.constant 0 : index
    %c0_47 = arith.constant 0 : index
    %65 = vector.load %arg14[%c0_45, %c0_46, %c0_47] : memref<3x1x32xf32, #tpu.memory_space<vmem>>, vector<1x1x32xf32>
    %66 = vector.shape_cast %65 : vector<1x1x32xf32> to vector<1x32xf32>
    %67 = vector.broadcast %66 : vector<1x32xf32> to vector<16x32xf32>
    %68 = arith.addf %64, %67 : vector<16x32xf32>
    %69 = arith.negf %68 : vector<16x32xf32>
    %70 = math.exp %69 : vector<16x32xf32>
    %cst_48 = arith.constant 1.000000e+00 : f32
    %71 = vector.broadcast %cst_48 : f32 to vector<16x32xf32>
    %72 = arith.addf %71, %70 : vector<16x32xf32>
    %73 = arith.divf %71, %72 : vector<16x32xf32>
    %74 = arith.mulf %68, %73 : vector<16x32xf32>
    %c0_49 = arith.constant 0 : index
    %c0_50 = arith.constant 0 : index
    %c0_51 = arith.constant 0 : index
    %75 = vector.load %arg15[%c0_49, %c0_50, %c0_51] : memref<3x32x32xf32, #tpu.memory_space<vmem>>, vector<1x32x32xf32>
    %76 = vector.shape_cast %75 : vector<1x32x32xf32> to vector<32x32xf32>
    %cst_52 = arith.constant dense<0.000000e+00> : vector<16x32xf32>
    %77 = tpu.matmul %74, %76, %cst_52 {dimension_numbers = #tpu.dot_dimension_numbers<[1], [0], [0], [1], [0, 0, 1, 1], [], []>} : vector<16x32xf32>, vector<32x32xf32>, vector<16x32xf32> -> vector<16x32xf32>
    %c0_53 = arith.constant 0 : index
    %c0_54 = arith.constant 0 : index
    %c0_55 = arith.constant 0 : index
    %78 = vector.load %arg16[%c0_53, %c0_54, %c0_55] : memref<3x1x32xf32, #tpu.memory_space<vmem>>, vector<1x1x32xf32>
    %79 = vector.shape_cast %78 : vector<1x1x32xf32> to vector<1x32xf32>
    %80 = vector.broadcast %79 : vector<1x32xf32> to vector<16x32xf32>
    %81 = arith.addf %77, %80 : vector<16x32xf32>
    %82 = arith.mulf %33, %81 : vector<16x32xf32>
    %83 = arith.addf %12, %82 : vector<16x32xf32>
    %c1 = arith.constant 1 : index
    %c0_56 = arith.constant 0 : index
    %c0_57 = arith.constant 0 : index
    %84 = vector.load %arg7[%c1, %c0_56, %c0_57] : memref<3x32x32xf32, #tpu.memory_space<vmem>>, vector<1x32x32xf32>
    %85 = vector.shape_cast %84 : vector<1x32x32xf32> to vector<32x32xf32>
    %cst_58 = arith.constant dense<0.000000e+00> : vector<16x32xf32>
    %86 = tpu.matmul %6, %85, %cst_58 {dimension_numbers = #tpu.dot_dimension_numbers<[1], [0], [0], [1], [0, 0, 1, 1], [], []>} : vector<16x32xf32>, vector<32x32xf32>, vector<16x32xf32> -> vector<16x32xf32>
    %c1_59 = arith.constant 1 : index
    %c0_60 = arith.constant 0 : index
    %c0_61 = arith.constant 0 : index
    %87 = vector.load %arg10[%c1_59, %c0_60, %c0_61] : memref<3x1x32xf32, #tpu.memory_space<vmem>>, vector<1x1x32xf32>
    %88 = vector.shape_cast %87 : vector<1x1x32xf32> to vector<1x32xf32>
    %89 = vector.broadcast %88 : vector<1x32xf32> to vector<16x32xf32>
    %90 = arith.addf %86, %89 : vector<16x32xf32>
    %c1_62 = arith.constant 1 : index
    %c0_63 = arith.constant 0 : index
    %c0_64 = arith.constant 0 : index
    %91 = vector.load %arg8[%c1_62, %c0_63, %c0_64] : memref<3x32x32xf32, #tpu.memory_space<vmem>>, vector<1x32x32xf32>
    %92 = vector.shape_cast %91 : vector<1x32x32xf32> to vector<32x32xf32>
    %cst_65 = arith.constant dense<0.000000e+00> : vector<16x32xf32>
    %93 = tpu.matmul %6, %92, %cst_65 {dimension_numbers = #tpu.dot_dimension_numbers<[1], [0], [0], [1], [0, 0, 1, 1], [], []>} : vector<16x32xf32>, vector<32x32xf32>, vector<16x32xf32> -> vector<16x32xf32>
    %c1_66 = arith.constant 1 : index
    %c0_67 = arith.constant 0 : index
    %c0_68 = arith.constant 0 : index
    %94 = vector.load %arg11[%c1_66, %c0_67, %c0_68] : memref<3x1x32xf32, #tpu.memory_space<vmem>>, vector<1x1x32xf32>
    %95 = vector.shape_cast %94 : vector<1x1x32xf32> to vector<1x32xf32>
    %96 = vector.broadcast %95 : vector<1x32xf32> to vector<16x32xf32>
    %97 = arith.addf %93, %96 : vector<16x32xf32>
    %c1_69 = arith.constant 1 : index
    %c0_70 = arith.constant 0 : index
    %c0_71 = arith.constant 0 : index
    %98 = vector.load %arg9[%c1_69, %c0_70, %c0_71] : memref<3x32x32xf32, #tpu.memory_space<vmem>>, vector<1x32x32xf32>
    %99 = vector.shape_cast %98 : vector<1x32x32xf32> to vector<32x32xf32>
    %cst_72 = arith.constant dense<0.000000e+00> : vector<16x32xf32>
    %100 = tpu.matmul %6, %99, %cst_72 {dimension_numbers = #tpu.dot_dimension_numbers<[1], [0], [0], [1], [0, 0, 1, 1], [], []>} : vector<16x32xf32>, vector<32x32xf32>, vector<16x32xf32> -> vector<16x32xf32>
    %c1_73 = arith.constant 1 : index
    %c0_74 = arith.constant 0 : index
    %c0_75 = arith.constant 0 : index
    %101 = vector.load %arg12[%c1_73, %c0_74, %c0_75] : memref<3x1x32xf32, #tpu.memory_space<vmem>>, vector<1x1x32xf32>
    %102 = vector.shape_cast %101 : vector<1x1x32xf32> to vector<1x32xf32>
    %103 = vector.broadcast %102 : vector<1x32xf32> to vector<16x32xf32>
    %104 = arith.addf %100, %103 : vector<16x32xf32>
    %cst_76 = arith.constant dense<0.000000e+00> : vector<16xf32>
    %105 = vector.multi_reduction <add>, %83, %cst_76 [1] : vector<16x32xf32> to vector<16xf32>
    %106 = vector.shape_cast %105 : vector<16xf32> to vector<16x1xf32>
    %cst_77 = arith.constant 3.200000e+01 : f32
    %107 = vector.broadcast %cst_77 : f32 to vector<16x1xf32>
    %108 = arith.divf %106, %107 : vector<16x1xf32>
    %109 = vector.broadcast %108 : vector<16x1xf32> to vector<16x32xf32>
    %110 = arith.subf %83, %109 : vector<16x32xf32>
    %111 = arith.mulf %110, %110 : vector<16x32xf32>
    %cst_78 = arith.constant dense<0.000000e+00> : vector<16xf32>
    %112 = vector.multi_reduction <add>, %111, %cst_78 [1] : vector<16x32xf32> to vector<16xf32>
    %113 = vector.shape_cast %112 : vector<16xf32> to vector<16x1xf32>
    %cst_79 = arith.constant 3.200000e+01 : f32
    %114 = vector.broadcast %cst_79 : f32 to vector<16x1xf32>
    %115 = arith.divf %113, %114 : vector<16x1xf32>
    %cst_80 = arith.constant 9.99999997E-7 : f32
    %116 = vector.broadcast %cst_80 : f32 to vector<16x1xf32>
    %117 = arith.addf %115, %116 : vector<16x1xf32>
    %118 = math.rsqrt %117 : vector<16x1xf32>
    %119 = vector.broadcast %118 : vector<16x1xf32> to vector<16x32xf32>
    %120 = arith.mulf %110, %119 : vector<16x32xf32>
    %c1_81 = arith.constant 1 : index
    %c0_82 = arith.constant 0 : index
    %c0_83 = arith.constant 0 : index
    %121 = vector.load %arg5[%c1_81, %c0_82, %c0_83] : memref<3x1x32xf32, #tpu.memory_space<vmem>>, vector<1x1x32xf32>
    %122 = vector.shape_cast %121 : vector<1x1x32xf32> to vector<1x32xf32>
    %123 = vector.broadcast %122 : vector<1x32xf32> to vector<16x32xf32>
    %124 = arith.mulf %120, %123 : vector<16x32xf32>
    %c1_84 = arith.constant 1 : index
    %c0_85 = arith.constant 0 : index
    %c0_86 = arith.constant 0 : index
    %125 = vector.load %arg6[%c1_84, %c0_85, %c0_86] : memref<3x1x32xf32, #tpu.memory_space<vmem>>, vector<1x1x32xf32>
    %126 = vector.shape_cast %125 : vector<1x1x32xf32> to vector<1x32xf32>
    %127 = vector.broadcast %126 : vector<1x32xf32> to vector<16x32xf32>
    %128 = arith.addf %124, %127 : vector<16x32xf32>
    %cst_87 = arith.constant 1.000000e+00 : f32
    %129 = vector.broadcast %cst_87 : f32 to vector<16x32xf32>
    %130 = arith.addf %129, %97 : vector<16x32xf32>
    %131 = arith.mulf %128, %130 : vector<16x32xf32>
    %132 = arith.addf %131, %90 : vector<16x32xf32>
    %c1_88 = arith.constant 1 : index
    %c0_89 = arith.constant 0 : index
    %c0_90 = arith.constant 0 : index
    %133 = vector.load %arg13[%c1_88, %c0_89, %c0_90] : memref<3x32x32xf32, #tpu.memory_space<vmem>>, vector<1x32x32xf32>
    %134 = vector.shape_cast %133 : vector<1x32x32xf32> to vector<32x32xf32>
    %cst_91 = arith.constant dense<0.000000e+00> : vector<16x32xf32>
    %135 = tpu.matmul %132, %134, %cst_91 {dimension_numbers = #tpu.dot_dimension_numbers<[1], [0], [0], [1], [0, 0, 1, 1], [], []>} : vector<16x32xf32>, vector<32x32xf32>, vector<16x32xf32> -> vector<16x32xf32>
    %c1_92 = arith.constant 1 : index
    %c0_93 = arith.constant 0 : index
    %c0_94 = arith.constant 0 : index
    %136 = vector.load %arg14[%c1_92, %c0_93, %c0_94] : memref<3x1x32xf32, #tpu.memory_space<vmem>>, vector<1x1x32xf32>
    %137 = vector.shape_cast %136 : vector<1x1x32xf32> to vector<1x32xf32>
    %138 = vector.broadcast %137 : vector<1x32xf32> to vector<16x32xf32>
    %139 = arith.addf %135, %138 : vector<16x32xf32>
    %140 = arith.negf %139 : vector<16x32xf32>
    %141 = math.exp %140 : vector<16x32xf32>
    %cst_95 = arith.constant 1.000000e+00 : f32
    %142 = vector.broadcast %cst_95 : f32 to vector<16x32xf32>
    %143 = arith.addf %142, %141 : vector<16x32xf32>
    %144 = arith.divf %142, %143 : vector<16x32xf32>
    %145 = arith.mulf %139, %144 : vector<16x32xf32>
    %c1_96 = arith.constant 1 : index
    %c0_97 = arith.constant 0 : index
    %c0_98 = arith.constant 0 : index
    %146 = vector.load %arg15[%c1_96, %c0_97, %c0_98] : memref<3x32x32xf32, #tpu.memory_space<vmem>>, vector<1x32x32xf32>
    %147 = vector.shape_cast %146 : vector<1x32x32xf32> to vector<32x32xf32>
    %cst_99 = arith.constant dense<0.000000e+00> : vector<16x32xf32>
    %148 = tpu.matmul %145, %147, %cst_99 {dimension_numbers = #tpu.dot_dimension_numbers<[1], [0], [0], [1], [0, 0, 1, 1], [], []>} : vector<16x32xf32>, vector<32x32xf32>, vector<16x32xf32> -> vector<16x32xf32>
    %c1_100 = arith.constant 1 : index
    %c0_101 = arith.constant 0 : index
    %c0_102 = arith.constant 0 : index
    %149 = vector.load %arg16[%c1_100, %c0_101, %c0_102] : memref<3x1x32xf32, #tpu.memory_space<vmem>>, vector<1x1x32xf32>
    %150 = vector.shape_cast %149 : vector<1x1x32xf32> to vector<1x32xf32>
    %151 = vector.broadcast %150 : vector<1x32xf32> to vector<16x32xf32>
    %152 = arith.addf %148, %151 : vector<16x32xf32>
    %153 = arith.mulf %104, %152 : vector<16x32xf32>
    %154 = arith.addf %83, %153 : vector<16x32xf32>
    %c2 = arith.constant 2 : index
    %c0_103 = arith.constant 0 : index
    %c0_104 = arith.constant 0 : index
    %155 = vector.load %arg7[%c2, %c0_103, %c0_104] : memref<3x32x32xf32, #tpu.memory_space<vmem>>, vector<1x32x32xf32>
    %156 = vector.shape_cast %155 : vector<1x32x32xf32> to vector<32x32xf32>
    %cst_105 = arith.constant dense<0.000000e+00> : vector<16x32xf32>
    %157 = tpu.matmul %6, %156, %cst_105 {dimension_numbers = #tpu.dot_dimension_numbers<[1], [0], [0], [1], [0, 0, 1, 1], [], []>} : vector<16x32xf32>, vector<32x32xf32>, vector<16x32xf32> -> vector<16x32xf32>
    %c2_106 = arith.constant 2 : index
    %c0_107 = arith.constant 0 : index
    %c0_108 = arith.constant 0 : index
    %158 = vector.load %arg10[%c2_106, %c0_107, %c0_108] : memref<3x1x32xf32, #tpu.memory_space<vmem>>, vector<1x1x32xf32>
    %159 = vector.shape_cast %158 : vector<1x1x32xf32> to vector<1x32xf32>
    %160 = vector.broadcast %159 : vector<1x32xf32> to vector<16x32xf32>
    %161 = arith.addf %157, %160 : vector<16x32xf32>
    %c2_109 = arith.constant 2 : index
    %c0_110 = arith.constant 0 : index
    %c0_111 = arith.constant 0 : index
    %162 = vector.load %arg8[%c2_109, %c0_110, %c0_111] : memref<3x32x32xf32, #tpu.memory_space<vmem>>, vector<1x32x32xf32>
    %163 = vector.shape_cast %162 : vector<1x32x32xf32> to vector<32x32xf32>
    %cst_112 = arith.constant dense<0.000000e+00> : vector<16x32xf32>
    %164 = tpu.matmul %6, %163, %cst_112 {dimension_numbers = #tpu.dot_dimension_numbers<[1], [0], [0], [1], [0, 0, 1, 1], [], []>} : vector<16x32xf32>, vector<32x32xf32>, vector<16x32xf32> -> vector<16x32xf32>
    %c2_113 = arith.constant 2 : index
    %c0_114 = arith.constant 0 : index
    %c0_115 = arith.constant 0 : index
    %165 = vector.load %arg11[%c2_113, %c0_114, %c0_115] : memref<3x1x32xf32, #tpu.memory_space<vmem>>, vector<1x1x32xf32>
    %166 = vector.shape_cast %165 : vector<1x1x32xf32> to vector<1x32xf32>
    %167 = vector.broadcast %166 : vector<1x32xf32> to vector<16x32xf32>
    %168 = arith.addf %164, %167 : vector<16x32xf32>
    %c2_116 = arith.constant 2 : index
    %c0_117 = arith.constant 0 : index
    %c0_118 = arith.constant 0 : index
    %169 = vector.load %arg9[%c2_116, %c0_117, %c0_118] : memref<3x32x32xf32, #tpu.memory_space<vmem>>, vector<1x32x32xf32>
    %170 = vector.shape_cast %169 : vector<1x32x32xf32> to vector<32x32xf32>
    %cst_119 = arith.constant dense<0.000000e+00> : vector<16x32xf32>
    %171 = tpu.matmul %6, %170, %cst_119 {dimension_numbers = #tpu.dot_dimension_numbers<[1], [0], [0], [1], [0, 0, 1, 1], [], []>} : vector<16x32xf32>, vector<32x32xf32>, vector<16x32xf32> -> vector<16x32xf32>
    %c2_120 = arith.constant 2 : index
    %c0_121 = arith.constant 0 : index
    %c0_122 = arith.constant 0 : index
    %172 = vector.load %arg12[%c2_120, %c0_121, %c0_122] : memref<3x1x32xf32, #tpu.memory_space<vmem>>, vector<1x1x32xf32>
    %173 = vector.shape_cast %172 : vector<1x1x32xf32> to vector<1x32xf32>
    %174 = vector.broadcast %173 : vector<1x32xf32> to vector<16x32xf32>
    %175 = arith.addf %171, %174 : vector<16x32xf32>
    %cst_123 = arith.constant dense<0.000000e+00> : vector<16xf32>
    %176 = vector.multi_reduction <add>, %154, %cst_123 [1] : vector<16x32xf32> to vector<16xf32>
    %177 = vector.shape_cast %176 : vector<16xf32> to vector<16x1xf32>
    %cst_124 = arith.constant 3.200000e+01 : f32
    %178 = vector.broadcast %cst_124 : f32 to vector<16x1xf32>
    %179 = arith.divf %177, %178 : vector<16x1xf32>
    %180 = vector.broadcast %179 : vector<16x1xf32> to vector<16x32xf32>
    %181 = arith.subf %154, %180 : vector<16x32xf32>
    %182 = arith.mulf %181, %181 : vector<16x32xf32>
    %cst_125 = arith.constant dense<0.000000e+00> : vector<16xf32>
    %183 = vector.multi_reduction <add>, %182, %cst_125 [1] : vector<16x32xf32> to vector<16xf32>
    %184 = vector.shape_cast %183 : vector<16xf32> to vector<16x1xf32>
    %cst_126 = arith.constant 3.200000e+01 : f32
    %185 = vector.broadcast %cst_126 : f32 to vector<16x1xf32>
    %186 = arith.divf %184, %185 : vector<16x1xf32>
    %cst_127 = arith.constant 9.99999997E-7 : f32
    %187 = vector.broadcast %cst_127 : f32 to vector<16x1xf32>
    %188 = arith.addf %186, %187 : vector<16x1xf32>
    %189 = math.rsqrt %188 : vector<16x1xf32>
    %190 = vector.broadcast %189 : vector<16x1xf32> to vector<16x32xf32>
    %191 = arith.mulf %181, %190 : vector<16x32xf32>
    %c2_128 = arith.constant 2 : index
    %c0_129 = arith.constant 0 : index
    %c0_130 = arith.constant 0 : index
    %192 = vector.load %arg5[%c2_128, %c0_129, %c0_130] : memref<3x1x32xf32, #tpu.memory_space<vmem>>, vector<1x1x32xf32>
    %193 = vector.shape_cast %192 : vector<1x1x32xf32> to vector<1x32xf32>
    %194 = vector.broadcast %193 : vector<1x32xf32> to vector<16x32xf32>
    %195 = arith.mulf %191, %194 : vector<16x32xf32>
    %c2_131 = arith.constant 2 : index
    %c0_132 = arith.constant 0 : index
    %c0_133 = arith.constant 0 : index
    %196 = vector.load %arg6[%c2_131, %c0_132, %c0_133] : memref<3x1x32xf32, #tpu.memory_space<vmem>>, vector<1x1x32xf32>
    %197 = vector.shape_cast %196 : vector<1x1x32xf32> to vector<1x32xf32>
    %198 = vector.broadcast %197 : vector<1x32xf32> to vector<16x32xf32>
    %199 = arith.addf %195, %198 : vector<16x32xf32>
    %cst_134 = arith.constant 1.000000e+00 : f32
    %200 = vector.broadcast %cst_134 : f32 to vector<16x32xf32>
    %201 = arith.addf %200, %168 : vector<16x32xf32>
    %202 = arith.mulf %199, %201 : vector<16x32xf32>
    %203 = arith.addf %202, %161 : vector<16x32xf32>
    %c2_135 = arith.constant 2 : index
    %c0_136 = arith.constant 0 : index
    %c0_137 = arith.constant 0 : index
    %204 = vector.load %arg13[%c2_135, %c0_136, %c0_137] : memref<3x32x32xf32, #tpu.memory_space<vmem>>, vector<1x32x32xf32>
    %205 = vector.shape_cast %204 : vector<1x32x32xf32> to vector<32x32xf32>
    %cst_138 = arith.constant dense<0.000000e+00> : vector<16x32xf32>
    %206 = tpu.matmul %203, %205, %cst_138 {dimension_numbers = #tpu.dot_dimension_numbers<[1], [0], [0], [1], [0, 0, 1, 1], [], []>} : vector<16x32xf32>, vector<32x32xf32>, vector<16x32xf32> -> vector<16x32xf32>
    %c2_139 = arith.constant 2 : index
    %c0_140 = arith.constant 0 : index
    %c0_141 = arith.constant 0 : index
    %207 = vector.load %arg14[%c2_139, %c0_140, %c0_141] : memref<3x1x32xf32, #tpu.memory_space<vmem>>, vector<1x1x32xf32>
    %208 = vector.shape_cast %207 : vector<1x1x32xf32> to vector<1x32xf32>
    %209 = vector.broadcast %208 : vector<1x32xf32> to vector<16x32xf32>
    %210 = arith.addf %206, %209 : vector<16x32xf32>
    %211 = arith.negf %210 : vector<16x32xf32>
    %212 = math.exp %211 : vector<16x32xf32>
    %cst_142 = arith.constant 1.000000e+00 : f32
    %213 = vector.broadcast %cst_142 : f32 to vector<16x32xf32>
    %214 = arith.addf %213, %212 : vector<16x32xf32>
    %215 = arith.divf %213, %214 : vector<16x32xf32>
    %216 = arith.mulf %210, %215 : vector<16x32xf32>
    %c2_143 = arith.constant 2 : index
    %c0_144 = arith.constant 0 : index
    %c0_145 = arith.constant 0 : index
    %217 = vector.load %arg15[%c2_143, %c0_144, %c0_145] : memref<3x32x32xf32, #tpu.memory_space<vmem>>, vector<1x32x32xf32>
    %218 = vector.shape_cast %217 : vector<1x32x32xf32> to vector<32x32xf32>
    %cst_146 = arith.constant dense<0.000000e+00> : vector<16x32xf32>
    %219 = tpu.matmul %216, %218, %cst_146 {dimension_numbers = #tpu.dot_dimension_numbers<[1], [0], [0], [1], [0, 0, 1, 1], [], []>} : vector<16x32xf32>, vector<32x32xf32>, vector<16x32xf32> -> vector<16x32xf32>
    %c2_147 = arith.constant 2 : index
    %c0_148 = arith.constant 0 : index
    %c0_149 = arith.constant 0 : index
    %220 = vector.load %arg16[%c2_147, %c0_148, %c0_149] : memref<3x1x32xf32, #tpu.memory_space<vmem>>, vector<1x1x32xf32>
    %221 = vector.shape_cast %220 : vector<1x1x32xf32> to vector<1x32xf32>
    %222 = vector.broadcast %221 : vector<1x32xf32> to vector<16x32xf32>
    %223 = arith.addf %219, %222 : vector<16x32xf32>
    %224 = arith.mulf %175, %223 : vector<16x32xf32>
    %225 = arith.addf %154, %224 : vector<16x32xf32>
    %c0_150 = arith.constant 0 : index
    %c0_151 = arith.constant 0 : index
    %226 = vector.load %arg17[%c0_150, %c0_151] : memref<32x32xf32, #tpu.memory_space<vmem>>, vector<32x32xf32>
    %cst_152 = arith.constant dense<0.000000e+00> : vector<16x32xf32>
    %227 = tpu.matmul %6, %226, %cst_152 {dimension_numbers = #tpu.dot_dimension_numbers<[1], [0], [0], [1], [0, 0, 1, 1], [], []>} : vector<16x32xf32>, vector<32x32xf32>, vector<16x32xf32> -> vector<16x32xf32>
    %c0_153 = arith.constant 0 : index
    %c0_154 = arith.constant 0 : index
    %228 = vector.load %arg19[%c0_153, %c0_154] : memref<1x32xf32, #tpu.memory_space<vmem>>, vector<1x32xf32>
    %229 = vector.broadcast %228 : vector<1x32xf32> to vector<16x32xf32>
    %230 = arith.addf %227, %229 : vector<16x32xf32>
    %c0_155 = arith.constant 0 : index
    %c0_156 = arith.constant 0 : index
    %231 = vector.load %arg18[%c0_155, %c0_156] : memref<32x32xf32, #tpu.memory_space<vmem>>, vector<32x32xf32>
    %cst_157 = arith.constant dense<0.000000e+00> : vector<16x32xf32>
    %232 = tpu.matmul %6, %231, %cst_157 {dimension_numbers = #tpu.dot_dimension_numbers<[1], [0], [0], [1], [0, 0, 1, 1], [], []>} : vector<16x32xf32>, vector<32x32xf32>, vector<16x32xf32> -> vector<16x32xf32>
    %c0_158 = arith.constant 0 : index
    %c0_159 = arith.constant 0 : index
    %233 = vector.load %arg20[%c0_158, %c0_159] : memref<1x32xf32, #tpu.memory_space<vmem>>, vector<1x32xf32>
    %234 = vector.broadcast %233 : vector<1x32xf32> to vector<16x32xf32>
    %235 = arith.addf %232, %234 : vector<16x32xf32>
    %cst_160 = arith.constant dense<0.000000e+00> : vector<16xf32>
    %236 = vector.multi_reduction <add>, %225, %cst_160 [1] : vector<16x32xf32> to vector<16xf32>
    %237 = vector.shape_cast %236 : vector<16xf32> to vector<16x1xf32>
    %cst_161 = arith.constant 3.200000e+01 : f32
    %238 = vector.broadcast %cst_161 : f32 to vector<16x1xf32>
    %239 = arith.divf %237, %238 : vector<16x1xf32>
    %240 = vector.broadcast %239 : vector<16x1xf32> to vector<16x32xf32>
    %241 = arith.subf %225, %240 : vector<16x32xf32>
    %242 = arith.mulf %241, %241 : vector<16x32xf32>
    %cst_162 = arith.constant dense<0.000000e+00> : vector<16xf32>
    %243 = vector.multi_reduction <add>, %242, %cst_162 [1] : vector<16x32xf32> to vector<16xf32>
    %244 = vector.shape_cast %243 : vector<16xf32> to vector<16x1xf32>
    %cst_163 = arith.constant 3.200000e+01 : f32
    %245 = vector.broadcast %cst_163 : f32 to vector<16x1xf32>
    %246 = arith.divf %244, %245 : vector<16x1xf32>
    %cst_164 = arith.constant 9.99999997E-7 : f32
    %247 = vector.broadcast %cst_164 : f32 to vector<16x1xf32>
    %248 = arith.addf %246, %247 : vector<16x1xf32>
    %249 = math.rsqrt %248 : vector<16x1xf32>
    %250 = vector.broadcast %249 : vector<16x1xf32> to vector<16x32xf32>
    %251 = arith.mulf %241, %250 : vector<16x32xf32>
    %cst_165 = arith.constant 1.000000e+00 : f32
    %252 = vector.broadcast %cst_165 : f32 to vector<16x32xf32>
    %253 = arith.addf %252, %235 : vector<16x32xf32>
    %254 = arith.mulf %251, %253 : vector<16x32xf32>
    %255 = arith.addf %254, %230 : vector<16x32xf32>
    %c0_166 = arith.constant 0 : index
    %c0_167 = arith.constant 0 : index
    %256 = vector.load %arg21[%c0_166, %c0_167] : memref<32x128xf32, #tpu.memory_space<vmem>>, vector<32x128xf32>
    %cst_168 = arith.constant dense<0.000000e+00> : vector<16x128xf32>
    %257 = tpu.matmul %255, %256, %cst_168 {dimension_numbers = #tpu.dot_dimension_numbers<[1], [0], [0], [1], [0, 0, 1, 1], [], []>} : vector<16x32xf32>, vector<32x128xf32>, vector<16x128xf32> -> vector<16x128xf32>
    %c0_169 = arith.constant 0 : index
    %c0_170 = arith.constant 0 : index
    %258 = vector.load %arg22[%c0_169, %c0_170] : memref<1x128xf32, #tpu.memory_space<vmem>>, vector<1x128xf32>
    %259 = vector.broadcast %258 : vector<1x128xf32> to vector<16x128xf32>
    %260 = arith.addf %257, %259 : vector<16x128xf32>
    %c0_171 = arith.constant 0 : index
    %c0_172 = arith.constant 0 : index
    %261 = vector.load %arg23[%c0_171, %c0_172] : memref<16x128xf32, #tpu.memory_space<vmem>>, vector<16x128xf32>
    tpu.vector_store %arg23[%c0_171, %c0_172], %260 {strides = array<i32>} : memref<16x128xf32, #tpu.memory_space<vmem>>, vector<16x128xf32>,
    return
  }
  func.func @transform_0(%arg0: i32) -> (i32, i32) {
    %c0_i32 = arith.constant 0 : i32
    %c0_i32_0 = arith.constant 0 : i32
    return %arg0, %c0_i32 : i32, i32
  }
  func.func @transform_1(%arg0: i32) -> (i32, i32) {
    %c0_i32 = arith.constant 0 : i32
    %c0_i32_0 = arith.constant 0 : i32
    return %arg0, %c0_i32 : i32, i32
  }
  func.func @transform_2(%arg0: i32) -> (i32, i32) {
    %c0_i32 = arith.constant 0 : i32
    %c0_i32_0 = arith.constant 0 : i32
    %c0_i32_1 = arith.constant 0 : i32
    return %c0_i32, %c0_i32_0 : i32, i32
  }
  func.func @transform_3(%arg0: i32) -> (i32, i32) {
    %c0_i32 = arith.constant 0 : i32
    %c0_i32_0 = arith.constant 0 : i32
    %c0_i32_1 = arith.constant 0 : i32
    return %c0_i32, %c0_i32_0 : i32, i32
  }
  func.func @transform_4(%arg0: i32) -> (i32, i32, i32) {
    %c0_i32 = arith.constant 0 : i32
    %c0_i32_0 = arith.constant 0 : i32
    %c0_i32_1 = arith.constant 0 : i32
    %c0_i32_2 = arith.constant 0 : i32
    return %c0_i32, %c0_i32_0, %c0_i32_1 : i32, i32, i32
  }
  func.func @transform_5(%arg0: i32) -> (i32, i32, i32) {
    %c0_i32 = arith.constant 0 : i32
    %c0_i32_0 = arith.constant 0 : i32
    %c0_i32_1 = arith.constant 0 : i32
    %c0_i32_2 = arith.constant 0 : i32
    return %c0_i32, %c0_i32_0, %c0_i32_1 : i32, i32, i32
  }
  func.func @transform_6(%arg0: i32) -> (i32, i32, i32) {
    %c0_i32 = arith.constant 0 : i32
    %c0_i32_0 = arith.constant 0 : i32
    %c0_i32_1 = arith.constant 0 : i32
    %c0_i32_2 = arith.constant 0 : i32
    return %c0_i32, %c0_i32_0, %c0_i32_1 : i32, i32, i32
  }
  func.func @transform_7(%arg0: i32) -> (i32, i32, i32) {
    %c0_i32 = arith.constant 0 : i32
    %c0_i32_0 = arith.constant 0 : i32
    %c0_i32_1 = arith.constant 0 : i32
    %c0_i32_2 = arith.constant 0 : i32
    return %c0_i32, %c0_i32_0, %c0_i32_1 : i32, i32, i32
  }
  func.func @transform_8(%arg0: i32) -> (i32, i32, i32) {
    %c0_i32 = arith.constant 0 : i32
    %c0_i32_0 = arith.constant 0 : i32
    %c0_i32_1 = arith.constant 0 : i32
    %c0_i32_2 = arith.constant 0 : i32
    return %c0_i32, %c0_i32_0, %c0_i32_1 : i32, i32, i32
  }
  func.func @transform_9(%arg0: i32) -> (i32, i32, i32) {
    %c0_i32 = arith.constant 0 : i32
    %c0_i32_0 = arith.constant 0 : i32
    %c0_i32_1 = arith.constant 0 : i32
    %c0_i32_2 = arith.constant 0 : i32
    return %c0_i32, %c0_i32_0, %c0_i32_1 : i32, i32, i32
  }
  func.func @transform_10(%arg0: i32) -> (i32, i32, i32) {
    %c0_i32 = arith.constant 0 : i32
    %c0_i32_0 = arith.constant 0 : i32
    %c0_i32_1 = arith.constant 0 : i32
    %c0_i32_2 = arith.constant 0 : i32
    return %c0_i32, %c0_i32_0, %c0_i32_1 : i32, i32, i32
  }
  func.func @transform_11(%arg0: i32) -> (i32, i32, i32) {
    %c0_i32 = arith.constant 0 : i32
    %c0_i32_0 = arith.constant 0 : i32
    %c0_i32_1 = arith.constant 0 : i32
    %c0_i32_2 = arith.constant 0 : i32
    return %c0_i32, %c0_i32_0, %c0_i32_1 : i32, i32, i32
  }
  func.func @transform_12(%arg0: i32) -> (i32, i32, i32) {
    %c0_i32 = arith.constant 0 : i32
    %c0_i32_0 = arith.constant 0 : i32
    %c0_i32_1 = arith.constant 0 : i32
    %c0_i32_2 = arith.constant 0 : i32
    return %c0_i32, %c0_i32_0, %c0_i32_1 : i32, i32, i32
  }
  func.func @transform_13(%arg0: i32) -> (i32, i32, i32) {
    %c0_i32 = arith.constant 0 : i32
    %c0_i32_0 = arith.constant 0 : i32
    %c0_i32_1 = arith.constant 0 : i32
    %c0_i32_2 = arith.constant 0 : i32
    return %c0_i32, %c0_i32_0, %c0_i32_1 : i32, i32, i32
  }
  func.func @transform_14(%arg0: i32) -> (i32, i32, i32) {
    %c0_i32 = arith.constant 0 : i32
    %c0_i32_0 = arith.constant 0 : i32
    %c0_i32_1 = arith.constant 0 : i32
    %c0_i32_2 = arith.constant 0 : i32
    return %c0_i32, %c0_i32_0, %c0_i32_1 : i32, i32, i32
  }
  func.func @transform_15(%arg0: i32) -> (i32, i32, i32) {
    %c0_i32 = arith.constant 0 : i32
    %c0_i32_0 = arith.constant 0 : i32
    %c0_i32_1 = arith.constant 0 : i32
    %c0_i32_2 = arith.constant 0 : i32
    return %c0_i32, %c0_i32_0, %c0_i32_1 : i32, i32, i32
  }
  func.func @transform_16(%arg0: i32) -> (i32, i32) {
    %c0_i32 = arith.constant 0 : i32
    %c0_i32_0 = arith.constant 0 : i32
    %c0_i32_1 = arith.constant 0 : i32
    return %c0_i32, %c0_i32_0 : i32, i32
  }
  func.func @transform_17(%arg0: i32) -> (i32, i32) {
    %c0_i32 = arith.constant 0 : i32
    %c0_i32_0 = arith.constant 0 : i32
    %c0_i32_1 = arith.constant 0 : i32
    return %c0_i32, %c0_i32_0 : i32, i32
  }
  func.func @transform_18(%arg0: i32) -> (i32, i32) {
    %c0_i32 = arith.constant 0 : i32
    %c0_i32_0 = arith.constant 0 : i32
    %c0_i32_1 = arith.constant 0 : i32
    return %c0_i32, %c0_i32_0 : i32, i32
  }
  func.func @transform_19(%arg0: i32) -> (i32, i32) {
    %c0_i32 = arith.constant 0 : i32
    %c0_i32_0 = arith.constant 0 : i32
    %c0_i32_1 = arith.constant 0 : i32
    return %c0_i32, %c0_i32_0 : i32, i32
  }
  func.func @transform_20(%arg0: i32) -> (i32, i32) {
    %c0_i32 = arith.constant 0 : i32
    %c0_i32_0 = arith.constant 0 : i32
    %c0_i32_1 = arith.constant 0 : i32
    return %c0_i32, %c0_i32_0 : i32, i32
  }
  func.func @transform_21(%arg0: i32) -> (i32, i32) {
    %c0_i32 = arith.constant 0 : i32
    %c0_i32_0 = arith.constant 0 : i32
    %c0_i32_1 = arith.constant 0 : i32
    return %c0_i32, %c0_i32_0 : i32, i32
  }
  func.func @transform_22(%arg0: i32) -> (i32, i32) {
    %c0_i32 = arith.constant 0 : i32
    %c0_i32_0 = arith.constant 0 : i32
    return %arg0, %c0_i32 : i32, i32
  }
}

module attributes {stable_mosaic.version = 11 : i64} {
  func.func @_net_core_kernel(%arg0: i32, %arg1: memref<16x16xf32, #tpu.memory_space<vmem>>, %arg2: memref<16x32xf32, #tpu.memory_space<vmem>>, %arg3: memref<16x32xf32, #tpu.memory_space<vmem>>, %arg4: memref<1x32xf32, #tpu.memory_space<vmem>>, %arg5: memref<3x1x32xf32, #tpu.memory_space<vmem>>, %arg6: memref<3x1x32xf32, #tpu.memory_space<vmem>>, %arg7: memref<3x32x32xf32, #tpu.memory_space<vmem>>, %arg8: memref<3x32x32xf32, #tpu.memory_space<vmem>>, %arg9: memref<3x32x32xf32, #tpu.memory_space<vmem>>, %arg10: memref<3x1x32xf32, #tpu.memory_space<vmem>>, %arg11: memref<3x1x32xf32, #tpu.memory_space<vmem>>, %arg12: memref<3x1x32xf32, #tpu.memory_space<vmem>>, %arg13: memref<3x32x32xf32, #tpu.memory_space<vmem>>, %arg14: memref<3x1x32xf32, #tpu.memory_space<vmem>>, %arg15: memref<3x32x32xf32, #tpu.memory_space<vmem>>, %arg16: memref<3x1x32xf32, #tpu.memory_space<vmem>>, %arg17: memref<32x32xf32, #tpu.memory_space<vmem>>, %arg18: memref<32x32xf32, #tpu.memory_space<vmem>>, %arg19: memref<1x32xf32, #tpu.memory_space<vmem>>, %arg20: memref<1x32xf32, #tpu.memory_space<vmem>>, %arg21: memref<32x128xf32, #tpu.memory_space<vmem>>, %arg22: memref<1x128xf32, #tpu.memory_space<vmem>>, %arg23: memref<16x128xf32, #tpu.memory_space<vmem>>) attributes {dimension_semantics = [#tpu.dimension_semantics<parallel>], iteration_bounds = array<i64: 1>, scalar_prefetch = 0 : i64, scratch_operands = 0 : i64, tpu.core_type = #tpu.core_type<tc>, window_params = [{transform_indices = @transform_0, window_bounds = array<i64: 16, 16>}, {transform_indices = @transform_1, window_bounds = array<i64: 16, 32>}, {pipeline_mode = #tpu.pipeline_mode<synchronous>, transform_indices = @transform_2, window_bounds = array<i64: 16, 32>}, {pipeline_mode = #tpu.pipeline_mode<synchronous>, transform_indices = @transform_3, window_bounds = array<i64: 1, 32>}, {pipeline_mode = #tpu.pipeline_mode<synchronous>, transform_indices = @transform_4, window_bounds = array<i64: 3, 1, 32>}, {pipeline_mode = #tpu.pipeline_mode<synchronous>, transform_indices = @transform_5, window_bounds = array<i64: 3, 1, 32>}, {pipeline_mode = #tpu.pipeline_mode<synchronous>, transform_indices = @transform_6, window_bounds = array<i64: 3, 32, 32>}, {pipeline_mode = #tpu.pipeline_mode<synchronous>, transform_indices = @transform_7, window_bounds = array<i64: 3, 32, 32>}, {pipeline_mode = #tpu.pipeline_mode<synchronous>, transform_indices = @transform_8, window_bounds = array<i64: 3, 32, 32>}, {pipeline_mode = #tpu.pipeline_mode<synchronous>, transform_indices = @transform_9, window_bounds = array<i64: 3, 1, 32>}, {pipeline_mode = #tpu.pipeline_mode<synchronous>, transform_indices = @transform_10, window_bounds = array<i64: 3, 1, 32>}, {pipeline_mode = #tpu.pipeline_mode<synchronous>, transform_indices = @transform_11, window_bounds = array<i64: 3, 1, 32>}, {pipeline_mode = #tpu.pipeline_mode<synchronous>, transform_indices = @transform_12, window_bounds = array<i64: 3, 32, 32>}, {pipeline_mode = #tpu.pipeline_mode<synchronous>, transform_indices = @transform_13, window_bounds = array<i64: 3, 1, 32>}, {pipeline_mode = #tpu.pipeline_mode<synchronous>, transform_indices = @transform_14, window_bounds = array<i64: 3, 32, 32>}, {pipeline_mode = #tpu.pipeline_mode<synchronous>, transform_indices = @transform_15, window_bounds = array<i64: 3, 1, 32>}, {pipeline_mode = #tpu.pipeline_mode<synchronous>, transform_indices = @transform_16, window_bounds = array<i64: 32, 32>}, {pipeline_mode = #tpu.pipeline_mode<synchronous>, transform_indices = @transform_17, window_bounds = array<i64: 32, 32>}, {pipeline_mode = #tpu.pipeline_mode<synchronous>, transform_indices = @transform_18, window_bounds = array<i64: 1, 32>}, {pipeline_mode = #tpu.pipeline_mode<synchronous>, transform_indices = @transform_19, window_bounds = array<i64: 1, 32>}, {pipeline_mode = #tpu.pipeline_mode<synchronous>, transform_indices = @transform_20, window_bounds = array<i64: 32, 128>}, {pipeline_mode = #tpu.pipeline_mode<synchronous>, transform_indices = @transform_21, window_bounds = array<i64: 1, 128>}, {transform_indices = @transform_22, window_bounds = array<i64: 16, 128>}]} {
    %c0 = arith.constant 0 : index
    %c0_0 = arith.constant 0 : index
    %0 = vector.load %arg2[%c0, %c0_0] : memref<16x32xf32, #tpu.memory_space<vmem>>, vector<16x32xf32>
    %1 = arith.negf %0 : vector<16x32xf32>
    %2 = math.exp %1 : vector<16x32xf32>
    %cst = arith.constant 1.000000e+00 : f32
    %3 = vector.broadcast %cst : f32 to vector<16x32xf32>
    %4 = arith.addf %3, %2 : vector<16x32xf32>
    %5 = arith.divf %3, %4 : vector<16x32xf32>
    %6 = arith.mulf %0, %5 : vector<16x32xf32>
    %c0_1 = arith.constant 0 : index
    %c0_2 = arith.constant 0 : index
    %7 = vector.load %arg1[%c0_1, %c0_2] : memref<16x16xf32, #tpu.memory_space<vmem>>, vector<16x16xf32>
    %c0_3 = arith.constant 0 : index
    %c0_4 = arith.constant 0 : index
    %8 = vector.load %arg3[%c0_3, %c0_4] : memref<16x32xf32, #tpu.memory_space<vmem>>, vector<16x32xf32>
    %cst_5 = arith.constant dense<0.000000e+00> : vector<16x32xf32>
    %9 = tpu.matmul %7, %8, %cst_5 {dimension_numbers = #tpu.dot_dimension_numbers<[1], [0], [0], [1], [0, 0, 1, 1], [], []>} : vector<16x16xf32>, vector<16x32xf32>, vector<16x32xf32> -> vector<16x32xf32>
    %c0_6 = arith.constant 0 : index
    %c0_7 = arith.constant 0 : index
    %10 = vector.load %arg4[%c0_6, %c0_7] : memref<1x32xf32, #tpu.memory_space<vmem>>, vector<1x32xf32>
    %11 = vector.broadcast %10 : vector<1x32xf32> to vector<16x32xf32>
    %12 = arith.addf %9, %11 : vector<16x32xf32>
    %c0_8 = arith.constant 0 : index
    %c0_9 = arith.constant 0 : index
    %c0_10 = arith.constant 0 : index
    %13 = vector.load %arg7[%c0_8, %c0_9, %c0_10] : memref<3x32x32xf32, #tpu.memory_space<vmem>>, vector<1x32x32xf32>
    %14 = vector.shape_cast %13 : vector<1x32x32xf32> to vector<32x32xf32>
    %cst_11 = arith.constant dense<0.000000e+00> : vector<16x32xf32>
    %15 = tpu.matmul %6, %14, %cst_11 {dimension_numbers = #tpu.dot_dimension_numbers<[1], [0], [0], [1], [0, 0, 1, 1], [], []>} : vector<16x32xf32>, vector<32x32xf32>, vector<16x32xf32> -> vector<16x32xf32>
    %c0_12 = arith.constant 0 : index
    %c0_13 = arith.constant 0 : index
    %c0_14 = arith.constant 0 : index
    %16 = vector.load %arg10[%c0_12, %c0_13, %c0_14] : memref<3x1x32xf32, #tpu.memory_space<vmem>>, vector<1x1x32xf32>
    %17 = vector.shape_cast %16 : vector<1x1x32xf32> to vector<1x32xf32>
    %18 = vector.broadcast %17 : vector<1x32xf32> to vector<16x32xf32>
    %19 = arith.addf %15, %18 : vector<16x32xf32>
    %c0_15 = arith.constant 0 : index
    %c0_16 = arith.constant 0 : index
    %c0_17 = arith.constant 0 : index
    %20 = vector.load %arg8[%c0_15, %c0_16, %c0_17] : memref<3x32x32xf32, #tpu.memory_space<vmem>>, vector<1x32x32xf32>
    %21 = vector.shape_cast %20 : vector<1x32x32xf32> to vector<32x32xf32>
    %cst_18 = arith.constant dense<0.000000e+00> : vector<16x32xf32>
    %22 = tpu.matmul %6, %21, %cst_18 {dimension_numbers = #tpu.dot_dimension_numbers<[1], [0], [0], [1], [0, 0, 1, 1], [], []>} : vector<16x32xf32>, vector<32x32xf32>, vector<16x32xf32> -> vector<16x32xf32>
    %c0_19 = arith.constant 0 : index
    %c0_20 = arith.constant 0 : index
    %c0_21 = arith.constant 0 : index
    %23 = vector.load %arg11[%c0_19, %c0_20, %c0_21] : memref<3x1x32xf32, #tpu.memory_space<vmem>>, vector<1x1x32xf32>
    %24 = vector.shape_cast %23 : vector<1x1x32xf32> to vector<1x32xf32>
    %25 = vector.broadcast %24 : vector<1x32xf32> to vector<16x32xf32>
    %26 = arith.addf %22, %25 : vector<16x32xf32>
    %c0_22 = arith.constant 0 : index
    %c0_23 = arith.constant 0 : index
    %c0_24 = arith.constant 0 : index
    %27 = vector.load %arg9[%c0_22, %c0_23, %c0_24] : memref<3x32x32xf32, #tpu.memory_space<vmem>>, vector<1x32x32xf32>
    %28 = vector.shape_cast %27 : vector<1x32x32xf32> to vector<32x32xf32>
    %cst_25 = arith.constant dense<0.000000e+00> : vector<16x32xf32>
    %29 = tpu.matmul %6, %28, %cst_25 {dimension_numbers = #tpu.dot_dimension_numbers<[1], [0], [0], [1], [0, 0, 1, 1], [], []>} : vector<16x32xf32>, vector<32x32xf32>, vector<16x32xf32> -> vector<16x32xf32>
    %c0_26 = arith.constant 0 : index
    %c0_27 = arith.constant 0 : index
    %c0_28 = arith.constant 0 : index
    %30 = vector.load %arg12[%c0_26, %c0_27, %c0_28] : memref<3x1x32xf32, #tpu.memory_space<vmem>>, vector<1x1x32xf32>
    %31 = vector.shape_cast %30 : vector<1x1x32xf32> to vector<1x32xf32>
    %32 = vector.broadcast %31 : vector<1x32xf32> to vector<16x32xf32>
    %33 = arith.addf %29, %32 : vector<16x32xf32>
    %cst_29 = arith.constant dense<0.000000e+00> : vector<16xf32>
    %34 = vector.multi_reduction <add>, %12, %cst_29 [1] : vector<16x32xf32> to vector<16xf32>
    %35 = vector.shape_cast %34 : vector<16xf32> to vector<16x1xf32>
    %cst_30 = arith.constant 3.200000e+01 : f32
    %36 = vector.broadcast %cst_30 : f32 to vector<16x1xf32>
    %37 = arith.divf %35, %36 : vector<16x1xf32>
    %38 = vector.broadcast %37 : vector<16x1xf32> to vector<16x32xf32>
    %39 = arith.subf %12, %38 : vector<16x32xf32>
    %40 = arith.mulf %39, %39 : vector<16x32xf32>
    %cst_31 = arith.constant dense<0.000000e+00> : vector<16xf32>
    %41 = vector.multi_reduction <add>, %40, %cst_31 [1] : vector<16x32xf32> to vector<16xf32>
    %42 = vector.shape_cast %41 : vector<16xf32> to vector<16x1xf32>
    %cst_32 = arith.constant 3.200000e+01 : f32
    %43 = vector.broadcast %cst_32 : f32 to vector<16x1xf32>
    %44 = arith.divf %42, %43 : vector<16x1xf32>
    %cst_33 = arith.constant 9.99999997E-7 : f32
    %45 = vector.broadcast %cst_33 : f32 to vector<16x1xf32>
    %46 = arith.addf %44, %45 : vector<16x1xf32>
    %47 = math.rsqrt %46 : vector<16x1xf32>
    %48 = vector.broadcast %47 : vector<16x1xf32> to vector<16x32xf32>
    %49 = arith.mulf %39, %48 : vector<16x32xf32>
    %c0_34 = arith.constant 0 : index
    %c0_35 = arith.constant 0 : index
    %c0_36 = arith.constant 0 : index
    %50 = vector.load %arg5[%c0_34, %c0_35, %c0_36] : memref<3x1x32xf32, #tpu.memory_space<vmem>>, vector<1x1x32xf32>
    %51 = vector.shape_cast %50 : vector<1x1x32xf32> to vector<1x32xf32>
    %52 = vector.broadcast %51 : vector<1x32xf32> to vector<16x32xf32>
    %53 = arith.mulf %49, %52 : vector<16x32xf32>
    %c0_37 = arith.constant 0 : index
    %c0_38 = arith.constant 0 : index
    %c0_39 = arith.constant 0 : index
    %54 = vector.load %arg6[%c0_37, %c0_38, %c0_39] : memref<3x1x32xf32, #tpu.memory_space<vmem>>, vector<1x1x32xf32>
    %55 = vector.shape_cast %54 : vector<1x1x32xf32> to vector<1x32xf32>
    %56 = vector.broadcast %55 : vector<1x32xf32> to vector<16x32xf32>
    %57 = arith.addf %53, %56 : vector<16x32xf32>
    %cst_40 = arith.constant 1.000000e+00 : f32
    %58 = vector.broadcast %cst_40 : f32 to vector<16x32xf32>
    %59 = arith.addf %58, %26 : vector<16x32xf32>
    %60 = arith.mulf %57, %59 : vector<16x32xf32>
    %61 = arith.addf %60, %19 : vector<16x32xf32>
    %c0_41 = arith.constant 0 : index
    %c0_42 = arith.constant 0 : index
    %c0_43 = arith.constant 0 : index
    %62 = vector.load %arg13[%c0_41, %c0_42, %c0_43] : memref<3x32x32xf32, #tpu.memory_space<vmem>>, vector<1x32x32xf32>
    %63 = vector.shape_cast %62 : vector<1x32x32xf32> to vector<32x32xf32>
    %cst_44 = arith.constant dense<0.000000e+00> : vector<16x32xf32>
    %64 = tpu.matmul %61, %63, %cst_44 {dimension_numbers = #tpu.dot_dimension_numbers<[1], [0], [0], [1], [0, 0, 1, 1], [], []>} : vector<16x32xf32>, vector<32x32xf32>, vector<16x32xf32> -> vector<16x32xf32>
    %c0_45 = arith.constant 0 : index
    %c0_46 = arith.constant 0 : index
    %c0_47 = arith.constant 0 : index
    %65 = vector.load %arg14[%c0_45, %c0_46, %c0_47] : memref<3x1x32xf32, #tpu.memory_space<vmem>>, vector<1x1x32xf32>
    %66 = vector.shape_cast %65 : vector<1x1x32xf32> to vector<1x32xf32>
    %67 = vector.broadcast %66 : vector<1x32xf32> to vector<16x32xf32>
    %68 = arith.addf %64, %67 : vector<16x32xf32>
    %69 = arith.negf %68 : vector<16x32xf32>
    %70 = math.exp %69 : vector<16x32xf32>
    %cst_48 = arith.constant 1.000000e+00 : f32
    %71 = vector.broadcast %cst_48 : f32 to vector<16x32xf32>
    %72 = arith.addf %71, %70 : vector<16x32xf32>
    %73 = arith.divf %71, %72 : vector<16x32xf32>
    %74 = arith.mulf %68, %73 : vector<16x32xf32>
    %c0_49 = arith.constant 0 : index
    %c0_50 = arith.constant 0 : index
    %c0_51 = arith.constant 0 : index
    %75 = vector.load %arg15[%c0_49, %c0_50, %c0_51] : memref<3x32x32xf32, #tpu.memory_space<vmem>>, vector<1x32x32xf32>
    %76 = vector.shape_cast %75 : vector<1x32x32xf32> to vector<32x32xf32>
    %cst_52 = arith.constant dense<0.000000e+00> : vector<16x32xf32>
    %77 = tpu.matmul %74, %76, %cst_52 {dimension_numbers = #tpu.dot_dimension_numbers<[1], [0], [0], [1], [0, 0, 1, 1], [], []>} : vector<16x32xf32>, vector<32x32xf32>, vector<16x32xf32> -> vector<16x32xf32>
    %c0_53 = arith.constant 0 : index
    %c0_54 = arith.constant 0 : index
    %c0_55 = arith.constant 0 : index
    %78 = vector.load %arg16[%c0_53, %c0_54, %c0_55] : memref<3x1x32xf32, #tpu.memory_space<vmem>>, vector<1x1x32xf32>
    %79 = vector.shape_cast %78 : vector<1x1x32xf32> to vector<1x32xf32>
    %80 = vector.broadcast %79 : vector<1x32xf32> to vector<16x32xf32>
    %81 = arith.addf %77, %80 : vector<16x32xf32>
    %82 = arith.mulf %33, %81 : vector<16x32xf32>
    %83 = arith.addf %12, %82 : vector<16x32xf32>
    %c1 = arith.constant 1 : index
    %c0_56 = arith.constant 0 : index
    %c0_57 = arith.constant 0 : index
    %84 = vector.load %arg7[%c1, %c0_56, %c0_57] : memref<3x32x32xf32, #tpu.memory_space<vmem>>, vector<1x32x32xf32>
    %85 = vector.shape_cast %84 : vector<1x32x32xf32> to vector<32x32xf32>
    %cst_58 = arith.constant dense<0.000000e+00> : vector<16x32xf32>
    %86 = tpu.matmul %6, %85, %cst_58 {dimension_numbers = #tpu.dot_dimension_numbers<[1], [0], [0], [1], [0, 0, 1, 1], [], []>} : vector<16x32xf32>, vector<32x32xf32>, vector<16x32xf32> -> vector<16x32xf32>
    %c1_59 = arith.constant 1 : index
    %c0_60 = arith.constant 0 : index
    %c0_61 = arith.constant 0 : index
    %87 = vector.load %arg10[%c1_59, %c0_60, %c0_61] : memref<3x1x32xf32, #tpu.memory_space<vmem>>, vector<1x1x32xf32>
    %88 = vector.shape_cast %87 : vector<1x1x32xf32> to vector<1x32xf32>
    %89 = vector.broadcast %88 : vector<1x32xf32> to vector<16x32xf32>
    %90 = arith.addf %86, %89 : vector<16x32xf32>
    %c1_62 = arith.constant 1 : index
    %c0_63 = arith.constant 0 : index
    %c0_64 = arith.constant 0 : index
    %91 = vector.load %arg8[%c1_62, %c0_63, %c0_64] : memref<3x32x32xf32, #tpu.memory_space<vmem>>, vector<1x32x32xf32>
    %92 = vector.shape_cast %91 : vector<1x32x32xf32> to vector<32x32xf32>
    %cst_65 = arith.constant dense<0.000000e+00> : vector<16x32xf32>
    %93 = tpu.matmul %6, %92, %cst_65 {dimension_numbers = #tpu.dot_dimension_numbers<[1], [0], [0], [1], [0, 0, 1, 1], [], []>} : vector<16x32xf32>, vector<32x32xf32>, vector<16x32xf32> -> vector<16x32xf32>
    %c1_66 = arith.constant 1 : index
    %c0_67 = arith.constant 0 : index
    %c0_68 = arith.constant 0 : index
    %94 = vector.load %arg11[%c1_66, %c0_67, %c0_68] : memref<3x1x32xf32, #tpu.memory_space<vmem>>, vector<1x1x32xf32>
    %95 = vector.shape_cast %94 : vector<1x1x32xf32> to vector<1x32xf32>
    %96 = vector.broadcast %95 : vector<1x32xf32> to vector<16x32xf32>
    %97 = arith.addf %93, %96 : vector<16x32xf32>
    %c1_69 = arith.constant 1 : index
    %c0_70 = arith.constant 0 : index
    %c0_71 = arith.constant 0 : index
    %98 = vector.load %arg9[%c1_69, %c0_70, %c0_71] : memref<3x32x32xf32, #tpu.memory_space<vmem>>, vector<1x32x32xf32>
    %99 = vector.shape_cast %98 : vector<1x32x32xf32> to vector<32x32xf32>
    %cst_72 = arith.constant dense<0.000000e+00> : vector<16x32xf32>
    %100 = tpu.matmul %6, %99, %cst_72 {dimension_numbers = #tpu.dot_dimension_numbers<[1], [0], [0], [1], [0, 0, 1, 1], [], []>} : vector<16x32xf32>, vector<32x32xf32>, vector<16x32xf32> -> vector<16x32xf32>
    %c1_73 = arith.constant 1 : index
    %c0_74 = arith.constant 0 : index
    %c0_75 = arith.constant 0 : index
    %101 = vector.load %arg12[%c1_73, %c0_74, %c0_75] : memref<3x1x32xf32, #tpu.memory_space<vmem>>, vector<1x1x32xf32>
    %102 = vector.shape_cast %101 : vector<1x1x32xf32> to vector<1x32xf32>
    %103 = vector.broadcast %102 : vector<1x32xf32> to vector<16x32xf32>
    %104 = arith.addf %100, %103 : vector<16x32xf32>
    %cst_76 = arith.constant dense<0.000000e+00> : vector<16xf32>
    %105 = vector.multi_reduction <add>, %83, %cst_76 [1] : vector<16x32xf32> to vector<16xf32>
    %106 = vector.shape_cast %105 : vector<16xf32> to vector<16x1xf32>
    %cst_77 = arith.constant 3.200000e+01 : f32
    %107 = vector.broadcast %cst_77 : f32 to vector<16x1xf32>
    %108 = arith.divf %106, %107 : vector<16x1xf32>
    %109 = vector.broadcast %108 : vector<16x1xf32> to vector<16x32xf32>
    %110 = arith.subf %83, %109 : vector<16x32xf32>
    %111 = arith.mulf %110, %110 : vector<16x32xf32>
    %cst_78 = arith.constant dense<0.000000e+00> : vector<16xf32>
    %112 = vector.multi_reduction <add>, %111, %cst_78 [1] : vector<16x32xf32> to vector<16xf32>
    %113 = vector.shape_cast %112 : vector<16xf32> to vector<16x1xf32>
    %cst_79 = arith.constant 3.200000e+01 : f32
    %114 = vector.broadcast %cst_79 : f32 to vector<16x1xf32>
    %115 = arith.divf %113, %114 : vector<16x1xf32>
    %cst_80 = arith.constant 9.99999997E-7 : f32
    %116 = vector.broadcast %cst_80 : f32 to vector<16x1xf32>
    %117 = arith.addf %115, %116 : vector<16x1xf32>
    %118 = math.rsqrt %117 : vector<16x1xf32>
    %119 = vector.broadcast %118 : vector<16x1xf32> to vector<16x32xf32>
    %120 = arith.mulf %110, %119 : vector<16x32xf32>
    %c1_81 = arith.constant 1 : index
    %c0_82 = arith.constant 0 : index
    %c0_83 = arith.constant 0 : index
    %121 = vector.load %arg5[%c1_81, %c0_82, %c0_83] : memref<3x1x32xf32, #tpu.memory_space<vmem>>, vector<1x1x32xf32>
    %122 = vector.shape_cast %121 : vector<1x1x32xf32> to vector<1x32xf32>
    %123 = vector.broadcast %122 : vector<1x32xf32> to vector<16x32xf32>
    %124 = arith.mulf %120, %123 : vector<16x32xf32>
    %c1_84 = arith.constant 1 : index
    %c0_85 = arith.constant 0 : index
    %c0_86 = arith.constant 0 : index
    %125 = vector.load %arg6[%c1_84, %c0_85, %c0_86] : memref<3x1x32xf32, #tpu.memory_space<vmem>>, vector<1x1x32xf32>
    %126 = vector.shape_cast %125 : vector<1x1x32xf32> to vector<1x32xf32>
    %127 = vector.broadcast %126 : vector<1x32xf32> to vector<16x32xf32>
    %128 = arith.addf %124, %127 : vector<16x32xf32>
    %cst_87 = arith.constant 1.000000e+00 : f32
    %129 = vector.broadcast %cst_87 : f32 to vector<16x32xf32>
    %130 = arith.addf %129, %97 : vector<16x32xf32>
    %131 = arith.mulf %128, %130 : vector<16x32xf32>
    %132 = arith.addf %131, %90 : vector<16x32xf32>
    %c1_88 = arith.constant 1 : index
    %c0_89 = arith.constant 0 : index
    %c0_90 = arith.constant 0 : index
    %133 = vector.load %arg13[%c1_88, %c0_89, %c0_90] : memref<3x32x32xf32, #tpu.memory_space<vmem>>, vector<1x32x32xf32>
    %134 = vector.shape_cast %133 : vector<1x32x32xf32> to vector<32x32xf32>
    %cst_91 = arith.constant dense<0.000000e+00> : vector<16x32xf32>
    %135 = tpu.matmul %132, %134, %cst_91 {dimension_numbers = #tpu.dot_dimension_numbers<[1], [0], [0], [1], [0, 0, 1, 1], [], []>} : vector<16x32xf32>, vector<32x32xf32>, vector<16x32xf32> -> vector<16x32xf32>
    %c1_92 = arith.constant 1 : index
    %c0_93 = arith.constant 0 : index
    %c0_94 = arith.constant 0 : index
    %136 = vector.load %arg14[%c1_92, %c0_93, %c0_94] : memref<3x1x32xf32, #tpu.memory_space<vmem>>, vector<1x1x32xf32>
    %137 = vector.shape_cast %136 : vector<1x1x32xf32> to vector<1x32xf32>
    %138 = vector.broadcast %137 : vector<1x32xf32> to vector<16x32xf32>
    %139 = arith.addf %135, %138 : vector<16x32xf32>
    %140 = arith.negf %139 : vector<16x32xf32>
    %141 = math.exp %140 : vector<16x32xf32>
    %cst_95 = arith.constant 1.000000e+00 : f32
    %142 = vector.broadcast %cst_95 : f32 to vector<16x32xf32>
    %143 = arith.addf %142, %141 : vector<16x32xf32>
    %144 = arith.divf %142, %143 : vector<16x32xf32>
    %145 = arith.mulf %139, %144 : vector<16x32xf32>
    %c1_96 = arith.constant 1 : index
    %c0_97 = arith.constant 0 : index
    %c0_98 = arith.constant 0 : index
    %146 = vector.load %arg15[%c1_96, %c0_97, %c0_98] : memref<3x32x32xf32, #tpu.memory_space<vmem>>, vector<1x32x32xf32>
    %147 = vector.shape_cast %146 : vector<1x32x32xf32> to vector<32x32xf32>
    %cst_99 = arith.constant dense<0.000000e+00> : vector<16x32xf32>
    %148 = tpu.matmul %145, %147, %cst_99 {dimension_numbers = #tpu.dot_dimension_numbers<[1], [0], [0], [1], [0, 0, 1, 1], [], []>} : vector<16x32xf32>, vector<32x32xf32>, vector<16x32xf32> -> vector<16x32xf32>
    %c1_100 = arith.constant 1 : index
    %c0_101 = arith.constant 0 : index
    %c0_102 = arith.constant 0 : index
    %149 = vector.load %arg16[%c1_100, %c0_101, %c0_102] : memref<3x1x32xf32, #tpu.memory_space<vmem>>, vector<1x1x32xf32>
    %150 = vector.shape_cast %149 : vector<1x1x32xf32> to vector<1x32xf32>
    %151 = vector.broadcast %150 : vector<1x32xf32> to vector<16x32xf32>
    %152 = arith.addf %148, %151 : vector<16x32xf32>
    %153 = arith.mulf %104, %152 : vector<16x32xf32>
    %154 = arith.addf %83, %153 : vector<16x32xf32>
    %c2 = arith.constant 2 : index
    %c0_103 = arith.constant 0 : index
    %c0_104 = arith.constant 0 : index
    %155 = vector.load %arg7[%c2, %c0_103, %c0_104] : memref<3x32x32xf32, #tpu.memory_space<vmem>>, vector<1x32x32xf32>
    %156 = vector.shape_cast %155 : vector<1x32x32xf32> to vector<32x32xf32>
    %cst_105 = arith.constant dense<0.000000e+00> : vector<16x32xf32>
    %157 = tpu.matmul %6, %156, %cst_105 {dimension_numbers = #tpu.dot_dimension_numbers<[1], [0], [0], [1], [0, 0, 1, 1], [], []>} : vector<16x32xf32>, vector<32x32xf32>, vector<16x32xf32> -> vector<16x32xf32>
    %c2_106 = arith.constant 2 : index
    %c0_107 = arith.constant 0 : index
    %c0_108 = arith.constant 0 : index
    %158 = vector.load %arg10[%c2_106, %c0_107, %c0_108] : memref<3x1x32xf32, #tpu.memory_space<vmem>>, vector<1x1x32xf32>
    %159 = vector.shape_cast %158 : vector<1x1x32xf32> to vector<1x32xf32>
    %160 = vector.broadcast %159 : vector<1x32xf32> to vector<16x32xf32>
    %161 = arith.addf %157, %160 : vector<16x32xf32>
    %c2_109 = arith.constant 2 : index
    %c0_110 = arith.constant 0 : index
    %c0_111 = arith.constant 0 : index
    %162 = vector.load %arg8[%c2_109, %c0_110, %c0_111] : memref<3x32x32xf32, #tpu.memory_space<vmem>>, vector<1x32x32xf32>
    %163 = vector.shape_cast %162 : vector<1x32x32xf32> to vector<32x32xf32>
    %cst_112 = arith.constant dense<0.000000e+00> : vector<16x32xf32>
    %164 = tpu.matmul %6, %163, %cst_112 {dimension_numbers = #tpu.dot_dimension_numbers<[1], [0], [0], [1], [0, 0, 1, 1], [], []>} : vector<16x32xf32>, vector<32x32xf32>, vector<16x32xf32> -> vector<16x32xf32>
    %c2_113 = arith.constant 2 : index
    %c0_114 = arith.constant 0 : index
    %c0_115 = arith.constant 0 : index
    %165 = vector.load %arg11[%c2_113, %c0_114, %c0_115] : memref<3x1x32xf32, #tpu.memory_space<vmem>>, vector<1x1x32xf32>
    %166 = vector.shape_cast %165 : vector<1x1x32xf32> to vector<1x32xf32>
    %167 = vector.broadcast %166 : vector<1x32xf32> to vector<16x32xf32>
    %168 = arith.addf %164, %167 : vector<16x32xf32>
    %c2_116 = arith.constant 2 : index
    %c0_117 = arith.constant 0 : index
    %c0_118 = arith.constant 0 : index
    %169 = vector.load %arg9[%c2_116, %c0_117, %c0_118] : memref<3x32x32xf32, #tpu.memory_space<vmem>>, vector<1x32x32xf32>
    %170 = vector.shape_cast %169 : vector<1x32x32xf32> to vector<32x32xf32>
    %cst_119 = arith.constant dense<0.000000e+00> : vector<16x32xf32>
    %171 = tpu.matmul %6, %170, %cst_119 {dimension_numbers = #tpu.dot_dimension_numbers<[1], [0], [0], [1], [0, 0, 1, 1], [], []>} : vector<16x32xf32>, vector<32x32xf32>, vector<16x32xf32> -> vector<16x32xf32>
    %c2_120 = arith.constant 2 : index
    %c0_121 = arith.constant 0 : index
    %c0_122 = arith.constant 0 : index
    %172 = vector.load %arg12[%c2_120, %c0_121, %c0_122] : memref<3x1x32xf32, #tpu.memory_space<vmem>>, vector<1x1x32xf32>
    %173 = vector.shape_cast %172 : vector<1x1x32xf32> to vector<1x32xf32>
    %174 = vector.broadcast %173 : vector<1x32xf32> to vector<16x32xf32>
    %175 = arith.addf %171, %174 : vector<16x32xf32>
    %cst_123 = arith.constant dense<0.000000e+00> : vector<16xf32>
    %176 = vector.multi_reduction <add>, %154, %cst_123 [1] : vector<16x32xf32> to vector<16xf32>
    %177 = vector.shape_cast %176 : vector<16xf32> to vector<16x1xf32>
    %cst_124 = arith.constant 3.200000e+01 : f32
    %178 = vector.broadcast %cst_124 : f32 to vector<16x1xf32>
    %179 = arith.divf %177, %178 : vector<16x1xf32>
    %180 = vector.broadcast %179 : vector<16x1xf32> to vector<16x32xf32>
    %181 = arith.subf %154, %180 : vector<16x32xf32>
    %182 = arith.mulf %181, %181 : vector<16x32xf32>
    %cst_125 = arith.constant dense<0.000000e+00> : vector<16xf32>
    %183 = vector.multi_reduction <add>, %182, %cst_125 [1] : vector<16x32xf32> to vector<16xf32>
    %184 = vector.shape_cast %183 : vector<16xf32> to vector<16x1xf32>
    %cst_126 = arith.constant 3.200000e+01 : f32
    %185 = vector.broadcast %cst_126 : f32 to vector<16x1xf32>
    %186 = arith.divf %184, %185 : vector<16x1xf32>
    %cst_127 = arith.constant 9.99999997E-7 : f32
    %187 = vector.broadcast %cst_127 : f32 to vector<16x1xf32>
    %188 = arith.addf %186, %187 : vector<16x1xf32>
    %189 = math.rsqrt %188 : vector<16x1xf32>
    %190 = vector.broadcast %189 : vector<16x1xf32> to vector<16x32xf32>
    %191 = arith.mulf %181, %190 : vector<16x32xf32>
    %c2_128 = arith.constant 2 : index
    %c0_129 = arith.constant 0 : index
    %c0_130 = arith.constant 0 : index
    %192 = vector.load %arg5[%c2_128, %c0_129, %c0_130] : memref<3x1x32xf32, #tpu.memory_space<vmem>>, vector<1x1x32xf32>
    %193 = vector.shape_cast %192 : vector<1x1x32xf32> to vector<1x32xf32>
    %194 = vector.broadcast %193 : vector<1x32xf32> to vector<16x32xf32>
    %195 = arith.mulf %191, %194 : vector<16x32xf32>
    %c2_131 = arith.constant 2 : index
    %c0_132 = arith.constant 0 : index
    %c0_133 = arith.constant 0 : index
    %196 = vector.load %arg6[%c2_131, %c0_132, %c0_133] : memref<3x1x32xf32, #tpu.memory_space<vmem>>, vector<1x1x32xf32>
    %197 = vector.shape_cast %196 : vector<1x1x32xf32> to vector<1x32xf32>
    %198 = vector.broadcast %197 : vector<1x32xf32> to vector<16x32xf32>
    %199 = arith.addf %195, %198 : vector<16x32xf32>
    %cst_134 = arith.constant 1.000000e+00 : f32
    %200 = vector.broadcast %cst_134 : f32 to vector<16x32xf32>
    %201 = arith.addf %200, %168 : vector<16x32xf32>
    %202 = arith.mulf %199, %201 : vector<16x32xf32>
    %203 = arith.addf %202, %161 : vector<16x32xf32>
    %c2_135 = arith.constant 2 : index
    %c0_136 = arith.constant 0 : index
    %c0_137 = arith.constant 0 : index
    %204 = vector.load %arg13[%c2_135, %c0_136, %c0_137] : memref<3x32x32xf32, #tpu.memory_space<vmem>>, vector<1x32x32xf32>
    %205 = vector.shape_cast %204 : vector<1x32x32xf32> to vector<32x32xf32>
    %cst_138 = arith.constant dense<0.000000e+00> : vector<16x32xf32>
    %206 = tpu.matmul %203, %205, %cst_138 {dimension_numbers = #tpu.dot_dimension_numbers<[1], [0], [0], [1], [0, 0, 1, 1], [], []>} : vector<16x32xf32>, vector<32x32xf32>, vector<16x32xf32> -> vector<16x32xf32>
    %c2_139 = arith.constant 2 : index
    %c0_140 = arith.constant 0 : index
    %c0_141 = arith.constant 0 : index
    %207 = vector.load %arg14[%c2_139, %c0_140, %c0_141] : memref<3x1x32xf32, #tpu.memory_space<vmem>>, vector<1x1x32xf32>
    %208 = vector.shape_cast %207 : vector<1x1x32xf32> to vector<1x32xf32>
    %209 = vector.broadcast %208 : vector<1x32xf32> to vector<16x32xf32>
    %210 = arith.addf %206, %209 : vector<16x32xf32>
    %211 = arith.negf %210 : vector<16x32xf32>
    %212 = math.exp %211 : vector<16x32xf32>
    %cst_142 = arith.constant 1.000000e+00 : f32
    %213 = vector.broadcast %cst_142 : f32 to vector<16x32xf32>
    %214 = arith.addf %213, %212 : vector<16x32xf32>
    %215 = arith.divf %213, %214 : vector<16x32xf32>
    %216 = arith.mulf %210, %215 : vector<16x32xf32>
    %c2_143 = arith.constant 2 : index
    %c0_144 = arith.constant 0 : index
    %c0_145 = arith.constant 0 : index
    %217 = vector.load %arg15[%c2_143, %c0_144, %c0_145] : memref<3x32x32xf32, #tpu.memory_space<vmem>>, vector<1x32x32xf32>
    %218 = vector.shape_cast %217 : vector<1x32x32xf32> to vector<32x32xf32>
    %cst_146 = arith.constant dense<0.000000e+00> : vector<16x32xf32>
    %219 = tpu.matmul %216, %218, %cst_146 {dimension_numbers = #tpu.dot_dimension_numbers<[1], [0], [0], [1], [0, 0, 1, 1], [], []>} : vector<16x32xf32>, vector<32x32xf32>, vector<16x32xf32> -> vector<16x32xf32>
    %c2_147 = arith.constant 2 : index
    %c0_148 = arith.constant 0 : index
    %c0_149 = arith.constant 0 : index
    %220 = vector.load %arg16[%c2_147, %c0_148, %c0_149] : memref<3x1x32xf32, #tpu.memory_space<vmem>>, vector<1x1x32xf32>
    %221 = vector.shape_cast %220 : vector<1x1x32xf32> to vector<1x32xf32>
    %222 = vector.broadcast %221 : vector<1x32xf32> to vector<16x32xf32>
    %223 = arith.addf %219, %222 : vector<16x32xf32>
    %224 = arith.mulf %175, %223 : vector<16x32xf32>
    %225 = arith.addf %154, %224 : vector<16x32xf32>
    %c0_150 = arith.constant 0 : index
    %c0_151 = arith.constant 0 : index
    %226 = vector.load %arg17[%c0_150, %c0_151] : memref<32x32xf32, #tpu.memory_space<vmem>>, vector<32x32xf32>
    %cst_152 = arith.constant dense<0.000000e+00> : vector<16x32xf32>
    %227 = tpu.matmul %6, %226, %cst_152 {dimension_numbers = #tpu.dot_dimension_numbers<[1], [0], [0], [1], [0, 0, 1, 1], [], []>} : vector<16x32xf32>, vector<32x32xf32>, vector<16x32xf32> -> vector<16x32xf32>
    %c0_153 = arith.constant 0 : index
    %c0_154 = arith.constant 0 : index
    %228 = vector.load %arg19[%c0_153, %c0_154] : memref<1x32xf32, #tpu.memory_space<vmem>>, vector<1x32xf32>
    %229 = vector.broadcast %228 : vector<1x32xf32> to vector<16x32xf32>
    %230 = arith.addf %227, %229 : vector<16x32xf32>
    %c0_155 = arith.constant 0 : index
    %c0_156 = arith.constant 0 : index
    %231 = vector.load %arg18[%c0_155, %c0_156] : memref<32x32xf32, #tpu.memory_space<vmem>>, vector<32x32xf32>
    %cst_157 = arith.constant dense<0.000000e+00> : vector<16x32xf32>
    %232 = tpu.matmul %6, %231, %cst_157 {dimension_numbers = #tpu.dot_dimension_numbers<[1], [0], [0], [1], [0, 0, 1, 1], [], []>} : vector<16x32xf32>, vector<32x32xf32>, vector<16x32xf32> -> vector<16x32xf32>
    %c0_158 = arith.constant 0 : index
    %c0_159 = arith.constant 0 : index
    %233 = vector.load %arg20[%c0_158, %c0_159] : memref<1x32xf32, #tpu.memory_space<vmem>>, vector<1x32xf32>
    %234 = vector.broadcast %233 : vector<1x32xf32> to vector<16x32xf32>
    %235 = arith.addf %232, %234 : vector<16x32xf32>
    %cst_160 = arith.constant dense<0.000000e+00> : vector<16xf32>
    %236 = vector.multi_reduction <add>, %225, %cst_160 [1] : vector<16x32xf32> to vector<16xf32>
    %237 = vector.shape_cast %236 : vector<16xf32> to vector<16x1xf32>
    %cst_161 = arith.constant 3.200000e+01 : f32
    %238 = vector.broadcast %cst_161 : f32 to vector<16x1xf32>
    %239 = arith.divf %237, %238 : vector<16x1xf32>
    %240 = vector.broadcast %239 : vector<16x1xf32> to vector<16x32xf32>
    %241 = arith.subf %225, %240 : vector<16x32xf32>
    %242 = arith.mulf %241, %241 : vector<16x32xf32>
    %cst_162 = arith.constant dense<0.000000e+00> : vector<16xf32>
    %243 = vector.multi_reduction <add>, %242, %cst_162 [1] : vector<16x32xf32> to vector<16xf32>
    %244 = vector.shape_cast %243 : vector<16xf32> to vector<16x1xf32>
    %cst_163 = arith.constant 3.200000e+01 : f32
    %245 = vector.broadcast %cst_163 : f32 to vector<16x1xf32>
    %246 = arith.divf %244, %245 : vector<16x1xf32>
    %cst_164 = arith.constant 9.99999997E-7 : f32
    %247 = vector.broadcast %cst_164 : f32 to vector<16x1xf32>
    %248 = arith.addf %246, %247 : vector<16x1xf32>
    %249 = math.rsqrt %248 : vector<16x1xf32>
    %250 = vector.broadcast %249 : vector<16x1xf32> to vector<16x32xf32>
    %251 = arith.mulf %241, %250 : vector<16x32xf32>
    %cst_165 = arith.constant 1.000000e+00 : f32
    %252 = vector.broadcast %cst_165 : f32 to vector<16x32xf32>
    %253 = arith.addf %252, %235 : vector<16x32xf32>
    %254 = arith.mulf %251, %253 : vector<16x32xf32>
    %255 = arith.addf %254, %230 : vector<16x32xf32>
    %c0_166 = arith.constant 0 : index
    %c0_167 = arith.constant 0 : index
    %256 = vector.load %arg21[%c0_166, %c0_167] : memref<32x128xf32, #tpu.memory_space<vmem>>, vector<32x128xf32>
    %cst_168 = arith.constant dense<0.000000e+00> : vector<16x128xf32>
    %257 = tpu.matmul %255, %256, %cst_168 {dimension_numbers = #tpu.dot_dimension_numbers<[1], [0], [0], [1], [0, 0, 1, 1], [], []>} : vector<16x32xf32>, vector<32x128xf32>, vector<16x128xf32> -> vector<16x128xf32>
    %c0_169 = arith.constant 0 : index
    %c0_170 = arith.constant 0 : index
    %258 = vector.load %arg22[%c0_169, %c0_170] : memref<1x128xf32, #tpu.memory_space<vmem>>, vector<1x128xf32>
    %259 = vector.broadcast %258 : vector<1x128xf32> to vector<16x128xf32>
    %260 = arith.addf %257, %259 : vector<16x128xf32>
    %c0_171 = arith.constant 0 : index
    %c0_172 = arith.constant 0 : index
    %261 = vector.load %arg23[%c0_171, %c0_172] : memref<16x128xf32, #tpu.memory_space<vmem>>, vector<16x128xf32>
    tpu.vector_store %arg23[%c0_171, %c0_172], %260 {strides = array<i32>} : memref<16x128xf32, #tpu.memory_space<vmem>>, vector<16x128xf32>,
    return
  }
  func.func @transform_0(%arg0: i32) -> (i32, i32) {
    %c0_i32 = arith.constant 0 : i32
    %c0_i32_0 = arith.constant 0 : i32
    return %arg0, %c0_i32 : i32, i32
  }
  func.func @transform_1(%arg0: i32) -> (i32, i32) {
    %c0_i32 = arith.constant 0 : i32
    %c0_i32_0 = arith.constant 0 : i32
    return %arg0, %c0_i32 : i32, i32
  }
  func.func @transform_2(%arg0: i32) -> (i32, i32) {
    %c0_i32 = arith.constant 0 : i32
    %c0_i32_0 = arith.constant 0 : i32
    %c0_i32_1 = arith.constant 0 : i32
    return %c0_i32, %c0_i32_0 : i32, i32
  }
  func.func @transform_3(%arg0: i32) -> (i32, i32) {
    %c0_i32 = arith.constant 0 : i32
    %c0_i32_0 = arith.constant 0 : i32
    %c0_i32_1 = arith.constant 0 : i32
    return %c0_i32, %c0_i32_0 : i32, i32
  }
  func.func @transform_4(%arg0: i32) -> (i32, i32, i32) {
    %c0_i32 = arith.constant 0 : i32
    %c0_i32_0 = arith.constant 0 : i32
    %c0_i32_1 = arith.constant 0 : i32
    %c0_i32_2 = arith.constant 0 : i32
    return %c0_i32, %c0_i32_0, %c0_i32_1 : i32, i32, i32
  }
  func.func @transform_5(%arg0: i32) -> (i32, i32, i32) {
    %c0_i32 = arith.constant 0 : i32
    %c0_i32_0 = arith.constant 0 : i32
    %c0_i32_1 = arith.constant 0 : i32
    %c0_i32_2 = arith.constant 0 : i32
    return %c0_i32, %c0_i32_0, %c0_i32_1 : i32, i32, i32
  }
  func.func @transform_6(%arg0: i32) -> (i32, i32, i32) {
    %c0_i32 = arith.constant 0 : i32
    %c0_i32_0 = arith.constant 0 : i32
    %c0_i32_1 = arith.constant 0 : i32
    %c0_i32_2 = arith.constant 0 : i32
    return %c0_i32, %c0_i32_0, %c0_i32_1 : i32, i32, i32
  }
  func.func @transform_7(%arg0: i32) -> (i32, i32, i32) {
    %c0_i32 = arith.constant 0 : i32
    %c0_i32_0 = arith.constant 0 : i32
    %c0_i32_1 = arith.constant 0 : i32
    %c0_i32_2 = arith.constant 0 : i32
    return %c0_i32, %c0_i32_0, %c0_i32_1 : i32, i32, i32
  }
  func.func @transform_8(%arg0: i32) -> (i32, i32, i32) {
    %c0_i32 = arith.constant 0 : i32
    %c0_i32_0 = arith.constant 0 : i32
    %c0_i32_1 = arith.constant 0 : i32
    %c0_i32_2 = arith.constant 0 : i32
    return %c0_i32, %c0_i32_0, %c0_i32_1 : i32, i32, i32
  }
  func.func @transform_9(%arg0: i32) -> (i32, i32, i32) {
    %c0_i32 = arith.constant 0 : i32
    %c0_i32_0 = arith.constant 0 : i32
    %c0_i32_1 = arith.constant 0 : i32
    %c0_i32_2 = arith.constant 0 : i32
    return %c0_i32, %c0_i32_0, %c0_i32_1 : i32, i32, i32
  }
  func.func @transform_10(%arg0: i32) -> (i32, i32, i32) {
    %c0_i32 = arith.constant 0 : i32
    %c0_i32_0 = arith.constant 0 : i32
    %c0_i32_1 = arith.constant 0 : i32
    %c0_i32_2 = arith.constant 0 : i32
    return %c0_i32, %c0_i32_0, %c0_i32_1 : i32, i32, i32
  }
  func.func @transform_11(%arg0: i32) -> (i32, i32, i32) {
    %c0_i32 = arith.constant 0 : i32
    %c0_i32_0 = arith.constant 0 : i32
    %c0_i32_1 = arith.constant 0 : i32
    %c0_i32_2 = arith.constant 0 : i32
    return %c0_i32, %c0_i32_0, %c0_i32_1 : i32, i32, i32
  }
  func.func @transform_12(%arg0: i32) -> (i32, i32, i32) {
    %c0_i32 = arith.constant 0 : i32
    %c0_i32_0 = arith.constant 0 : i32
    %c0_i32_1 = arith.constant 0 : i32
    %c0_i32_2 = arith.constant 0 : i32
    return %c0_i32, %c0_i32_0, %c0_i32_1 : i32, i32, i32
  }
  func.func @transform_13(%arg0: i32) -> (i32, i32, i32) {
    %c0_i32 = arith.constant 0 : i32
    %c0_i32_0 = arith.constant 0 : i32
    %c0_i32_1 = arith.constant 0 : i32
    %c0_i32_2 = arith.constant 0 : i32
    return %c0_i32, %c0_i32_0, %c0_i32_1 : i32, i32, i32
  }
  func.func @transform_14(%arg0: i32) -> (i32, i32, i32) {
    %c0_i32 = arith.constant 0 : i32
    %c0_i32_0 = arith.constant 0 : i32
    %c0_i32_1 = arith.constant 0 : i32
    %c0_i32_2 = arith.constant 0 : i32
    return %c0_i32, %c0_i32_0, %c0_i32_1 : i32, i32, i32
  }
  func.func @transform_15(%arg0: i32) -> (i32, i32, i32) {
    %c0_i32 = arith.constant 0 : i32
    %c0_i32_0 = arith.constant 0 : i32
    %c0_i32_1 = arith.constant 0 : i32
    %c0_i32_2 = arith.constant 0 : i32
    return %c0_i32, %c0_i32_0, %c0_i32_1 : i32, i32, i32
  }
  func.func @transform_16(%arg0: i32) -> (i32, i32) {
    %c0_i32 = arith.constant 0 : i32
    %c0_i32_0 = arith.constant 0 : i32
    %c0_i32_1 = arith.constant 0 : i32
    return %c0_i32, %c0_i32_0 : i32, i32
  }
  func.func @transform_17(%arg0: i32) -> (i32, i32) {
    %c0_i32 = arith.constant 0 : i32
    %c0_i32_0 = arith.constant 0 : i32
    %c0_i32_1 = arith.constant 0 : i32
    return %c0_i32, %c0_i32_0 : i32, i32
  }
  func.func @transform_18(%arg0: i32) -> (i32, i32) {
    %c0_i32 = arith.constant 0 : i32
    %c0_i32_0 = arith.constant 0 : i32
    %c0_i32_1 = arith.constant 0 : i32
    return %c0_i32, %c0_i32_0 : i32, i32
  }
  func.func @transform_19(%arg0: i32) -> (i32, i32) {
    %c0_i32 = arith.constant 0 : i32
    %c0_i32_0 = arith.constant 0 : i32
    %c0_i32_1 = arith.constant 0 : i32
    return %c0_i32, %c0_i32_0 : i32, i32
  }
  func.func @transform_20(%arg0: i32) -> (i32, i32) {
    %c0_i32 = arith.constant 0 : i32
    %c0_i32_0 = arith.constant 0 : i32
    %c0_i32_1 = arith.constant 0 : i32
    return %c0_i32, %c0_i32_0 : i32, i32
  }
  func.func @transform_21(%arg0: i32) -> (i32, i32) {
    %c0_i32 = arith.constant 0 : i32
    %c0_i32_0 = arith.constant 0 : i32
    %c0_i32_1 = arith.constant 0 : i32
    return %c0_i32, %c0_i32_0 : i32, i32
  }
  func.func @transform_22(%arg0: i32) -> (i32, i32) {
    %c0_i32 = arith.constant 0 : i32
    %c0_i32_0 = arith.constant 0 : i32
    return %arg0, %c0_i32 : i32, i32
  }
}

</mosaic_0001>

<bundles_post_ra>
// kernel: tpu_custom_call.1
= control target key start
LH: loop header
LB: loop body
LE: loop exit
PB: predicated region body
PF: predicated region fallthrough
CT: control target
= control target key end

     0   :  { %s3551_s0 = inlined_call_operand.hbm [shape: f32[16,16], index: 0, kind: input, shape index: {}]   ;;  %s3552_s1 = inlined_call_operand.hbm [shape: f32[16,32], index: 1, kind: input, shape index: {}]   ;;  %s3553_s2 = inlined_call_operand.hbm [shape: f32[16,32], index: 2, kind: input, shape index: {}]   ;;  %s3554_s3 = inlined_call_operand.vmem [shape: f32[1,32], index: 3, kind: input, shape index: {}]   ;;  %s3555_s4 = inlined_call_operand.vmem [shape: f32[3,1,32], index: 4, kind: input, shape index: {}]   ;;  %s3556_s5 = inlined_call_operand.hbm [shape: f32[3,1,32], index: 5, kind: input, shape index: {}]   ;;  %s3557_s6 = inlined_call_operand.hbm [shape: f32[3,32,32], index: 6, kind: input, shape index: {}]   ;;  %s3558_s7 = inlined_call_operand.hbm [shape: f32[3,32,32], index: 7, kind: input, shape index: {}]   ;;  %s3559_s8 = inlined_call_operand.hbm [shape: f32[3,32,32], index: 8, kind: input, shape index: {}]   ;;  %s3560_s9 = inlined_call_operand.hbm [shape: f32[3,1,32], index: 9, kind: input, shape index: {}]   ;;  %s3561_s10 = inlined_call_operand.hbm [shape: f32[3,1,32], index: 10, kind: input, shape index: {}]   ;;  %s3562_s11 = inlined_call_operand.hbm [shape: f32[3,1,32], index: 11, kind: input, shape index: {}]   ;;  %s3563_s12 = inlined_call_operand.hbm [shape: f32[3,32,32], index: 12, kind: input, shape index: {}]   ;;  %s3564_s13 = inlined_call_operand.hbm [shape: f32[3,1,32], index: 13, kind: input, shape index: {}]   ;;  %s3565_s14 = inlined_call_operand.hbm [shape: f32[3,32,32], index: 14, kind: input, shape index: {}]   ;;  %s3566_s15 = inlined_call_operand.hbm [shape: f32[3,1,32], index: 15, kind: input, shape index: {}]   ;;  %s3567_s16 = inlined_call_operand.hbm [shape: f32[32,32], index: 16, kind: input, shape index: {}]   ;;  %s3568_s17 = inlined_call_operand.hbm [shape: f32[32,32], index: 17, kind: input, shape index: {}]   ;;  %s3569_s18 = inlined_call_operand.hbm [shape: f32[1,32], index: 18, kind: input, shape index: {}]   ;;  %s3570_s19 = inlined_call_operand.hbm [shape: f32[1,32], index: 19, kind: input, shape index: {}]   ;;  %s3571_s20 = inlined_call_operand.vmem [shape: f32[32,128], index: 20, kind: input, shape index: {}]   ;;  %s3572_s21 = inlined_call_operand.vmem [shape: f32[1,128], index: 21, kind: input, shape index: {}]   ;;  %s3573_s22 = inlined_call_operand.hbm [shape: f32[16,128], index: 22, kind: output, shape index: {}]  }
   0x1   :  { %3575 = sst [smem:[#allocation43_spill]] %s3551_s0 }
   0x2   :  { %3576 = sst [smem:[#allocation44_spill]] %s3552_s1 }
   0x3   :  { %3577 = sst [smem:[#allocation45_spill]] %s3553_s2 }
   0x4   :  { %3578 = sst [smem:[#allocation46_spill]] %s3554_s3 }
   0x5   :  { %3579 = sst [smem:[#allocation47_spill]] %s3555_s4 }
   0x6   :  { %3580 = sst [smem:[#allocation48_spill]] %s3556_s5 }
   0x7   :  { %3581 = sst [smem:[#allocation49_spill]] %s3557_s6 }
   0x8   :  { %27 = vsyncpa [#allocation3], 0 }
   0x9   :  { %28 = vsyncpa [#allocation6], 0 }
   0xa   :  { %29 = vsyncpa [#allocation9], 0 }
   0xb   :  { %30 = vsyncpa [#allocation12], 0 }
   0xc   :  { %31 = vsyncpa [#allocation15], 0 }
   0xd   :  { %32 = vsyncpa [#allocation18], 0 }
   0xe   :  { %33 = vsyncpa [#allocation21], 0 }
   0xf   :  { %34 = vsyncpa [#allocation24], 0 }
  0x10   :  { %35 = vsyncpa [#allocation27], 0 }
  0x11   :  { %36 = vsyncpa [#allocation30], 0 }
  0x12   :  { %37 = vsyncpa [#allocation4], 0  ;;  %s3170_s3 = smov [#allocation5]   ;;  %s3171_s29 = smov [#allocation8]  }
  0x13   :  { %s55_s28 = sshll.u32 %s3170_s3, 4  ;;  %s83_s30 = sshll.u32 %s3171_s29, 4  ;;  %s56_s28 = int_to_ptr.vmem [resolvable:$true] %s55_s28  ;;  %s84_s30 = int_to_ptr.vmem [resolvable:$true] %s83_s30 }
  0x14   :  { %s2776_s4 = scalar_lea.vmem %s56_s28, 256  ;;  %p2781_p1 = scmp.lt.s32.totalorder %s56_s28, %s56_s28 }
  0x15   :  { %p2777_p0 = scmp.ne.s32.totalorder %s56_s28, %s2776_s4  ;;  %p2782_p2 = scmp.lt.s32.totalorder %s2776_s4, %s2776_s4 }
  0x17   :  { %p2783_p3 = por %p2782_p2, %p2781_p1 }
  0x19   :  { %p2784_p4 = pnand %p2783_p3, %p2777_p0 }
  0x1b   :  { %2787 = shalt.err (!%p2784_p4)
}
  0x1c   :  { %s3172_s0 = smov 128   ;;  %s3173_s23 = smov 8  }
  0x1d   :  { %s3582_s24 = sld [smem:[#allocation44_spill]]  ;;  %s2796_s6 = scalar_lea.vmem %s84_s30, 48 }
  0x1e   :  { %p2797_p5 = scmp.ne.s32.totalorder %s84_s30, %s2796_s6  ;;  %s2800_s25 = scalar_lea.vmem %s84_s30, 64 }
  0x1f   :  { %p2801_p6 = scmp.lt.s32.totalorder %s84_s30, %s84_s30  ;;  %p2802_p7 = scmp.lt.s32.totalorder %s2800_s25, %s2796_s6 }
  0x21   :  { %p2803_p8 = por %p2802_p7, %p2801_p6 }
  0x23   :  { %61 = dma.hbm_to_vmem [thread:$0]  %s3582_s24, 256, %s56_s28, [#allocation6], %s3172_s0, %s3172_s0, %s3173_s23  }
  0x24   :  { %p2804_p9 = pnand %p2803_p8, %p2797_p5 }
  0x26   :  { %2807 = shalt.err (!%p2804_p9)
}
  0x27   :  { %s3174_s26 = smov 16   ;;  %s3175_s2 = smov 1  }
  0x28   :  { %s3583_s29 = sld [smem:[#allocation48_spill]]  ;;  %s3176_s4 = smov [#allocation11]  }
  0x29   :  { %s107_s1 = sshll.u32 %s3176_s4, 4  ;;  %s3177_s28 = smov [#allocation14]   ;;  %s108_s1 = int_to_ptr.vmem [resolvable:$true] %s107_s1 }
  0x2a   :  { %s131_s5 = sshll.u32 %s3177_s28, 4  ;;  %s2816_s24 = scalar_lea.vmem %s108_s1, 1536  ;;  %s132_s5 = int_to_ptr.vmem [resolvable:$true] %s131_s5 }
  0x2b   :  { %p2817_p10 = scmp.ne.s32.totalorder %s108_s1, %s2816_s24  ;;  %p2821_p11 = scmp.lt.s32.totalorder %s108_s1, %s108_s1 }
  0x2c   :  { %p2822_p12 = scmp.lt.s32.totalorder %s2816_s24, %s2816_s24 }
  0x2e   :  { %89 = dma.hbm_to_vmem [thread:$0]  %s3583_s29, 48, %s84_s30, [#allocation9], %s3174_s26, %s3174_s26, %s3175_s2  }
  0x2f   :  { %p2823_p13 = por %p2822_p12, %p2821_p11 }
  0x31   :  { %p2824_p0 = pnand %p2823_p13, %p2817_p10 }
  0x33   :  { %2827 = shalt.err (!%p2824_p0)
}
  0x34   :  { %113 = dma.hbm_to_vmem [thread:$0]  %s3558_s7, 1536, %s108_s1, [#allocation12], %s3172_s0, %s3172_s0, %s3173_s23  }
  0x35   :  { %s2836_s30 = scalar_lea.vmem %s132_s5, 48  ;;  %s2840_s27 = scalar_lea.vmem %s132_s5, 64 }
  0x36   :  { %p2837_p1 = scmp.ne.s32.totalorder %s132_s5, %s2836_s30  ;;  %p2841_p2 = scmp.lt.s32.totalorder %s132_s5, %s132_s5 }
  0x37   :  { %p2842_p3 = scmp.lt.s32.totalorder %s2840_s27, %s2836_s30 }
  0x39   :  { %p2843_p4 = por %p2842_p3, %p2841_p2 }
  0x3b   :  { %p2844_p5 = pnand %p2843_p4, %p2837_p1 }
  0x3d   :  { %2847 = shalt.err (!%p2844_p5)
}
  0x3e   :  { %137 = dma.hbm_to_vmem [thread:$0]  %s3560_s9, 48, %s132_s5, [#allocation15], %s3174_s26, %s3174_s26, %s3175_s2  }
  0x3f   :  { %s3178_s4 = smov [#allocation17]   ;;  %s3179_s24 = smov [#allocation20]  }
  0x40   :  { %s155_s28 = sshll.u32 %s3178_s4, 4  ;;  %s179_s6 = sshll.u32 %s3179_s24, 4  ;;  %s156_s28 = int_to_ptr.vmem [resolvable:$true] %s155_s28  ;;  %s180_s6 = int_to_ptr.vmem [resolvable:$true] %s179_s6 }
  0x41   :  { %s2856_s7 = scalar_lea.vmem %s156_s28, 48  ;;  %s2860_s1 = scalar_lea.vmem %s156_s28, 64 }
  0x42   :  { %p2857_p6 = scmp.ne.s32.totalorder %s156_s28, %s2856_s7  ;;  %p2861_p7 = scmp.lt.s32.totalorder %s156_s28, %s156_s28 }
  0x43   :  { %p2862_p8 = scmp.lt.s32.totalorder %s2860_s1, %s2856_s7 }
  0x45   :  { %p2863_p9 = por %p2862_p8, %p2861_p7 }
  0x47   :  { %p2864_p10 = pnand %p2863_p9, %p2857_p6 }
  0x49   :  { %2867 = shalt.err (!%p2864_p10)
}
  0x4a   :  { %161 = dma.hbm_to_vmem [thread:$0]  %s3562_s11, 48, %s156_s28, [#allocation18], %s3174_s26, %s3174_s26, %s3175_s2  }
  0x4b   :  { %s2876_s9 = scalar_lea.vmem %s180_s6, 48  ;;  %s2880_s5 = scalar_lea.vmem %s180_s6, 64 }
  0x4c   :  { %p2877_p11 = scmp.ne.s32.totalorder %s180_s6, %s2876_s9  ;;  %p2881_p12 = scmp.lt.s32.totalorder %s180_s6, %s180_s6 }
  0x4d   :  { %p2882_p13 = scmp.lt.s32.totalorder %s2880_s5, %s2876_s9 }
  0x4f   :  { %p2883_p0 = por %p2882_p13, %p2881_p12 }
  0x51   :  { %p2884_p1 = pnand %p2883_p0, %p2877_p11 }
  0x53   :  { %2887 = shalt.err (!%p2884_p1)
}
  0x54   :  { %185 = dma.hbm_to_vmem [thread:$0]  %s3564_s13, 48, %s180_s6, [#allocation21], %s3174_s26, %s3174_s26, %s3175_s2  }
  0x55   :  { %s3180_s29 = smov [#allocation23]   ;;  %s3181_s24 = smov [#allocation26]  }
  0x56   :  { %s203_s4 = sshll.u32 %s3180_s29, 4  ;;  %s227_s7 = sshll.u32 %s3181_s24, 4  ;;  %s204_s4 = int_to_ptr.vmem [resolvable:$true] %s203_s4  ;;  %s228_s7 = int_to_ptr.vmem [resolvable:$true] %s227_s7 }
  0x57   :  { %s2896_s11 = scalar_lea.vmem %s204_s4, 48  ;;  %s2900_s28 = scalar_lea.vmem %s204_s4, 64 }
  0x58   :  { %p2897_p2 = scmp.ne.s32.totalorder %s204_s4, %s2896_s11  ;;  %p2901_p3 = scmp.lt.s32.totalorder %s204_s4, %s204_s4 }
  0x59   :  { %p2902_p4 = scmp.lt.s32.totalorder %s2900_s28, %s2896_s11 }
  0x5b   :  { %p2903_p5 = por %p2902_p4, %p2901_p3 }
  0x5d   :  { %p2904_p6 = pnand %p2903_p5, %p2897_p2 }
  0x5f   :  { %2907 = shalt.err (!%p2904_p6)
}
  0x60   :  { %209 = dma.hbm_to_vmem [thread:$0]  %s3566_s15, 48, %s204_s4, [#allocation24], %s3174_s26, %s3174_s26, %s3175_s2  }
  0x61   :  { %s2916_s13 = scalar_lea.vmem %s228_s7, 512  ;;  %p2921_p8 = scmp.lt.s32.totalorder %s228_s7, %s228_s7 }
  0x62   :  { %p2917_p7 = scmp.ne.s32.totalorder %s228_s7, %s2916_s13  ;;  %p2922_p9 = scmp.lt.s32.totalorder %s2916_s13, %s2916_s13 }
  0x64   :  { %p2923_p10 = por %p2922_p9, %p2921_p8 }
  0x66   :  { %p2924_p11 = pnand %p2923_p10, %p2917_p7 }
  0x68   :  { %2927 = shalt.err (!%p2924_p11)
}
  0x69   :  { %233 = dma.hbm_to_vmem [thread:$0]  %s3568_s17, 512, %s228_s7, [#allocation27], %s3172_s0, %s3172_s0, %s3173_s23  }
  0x6a   :  { %s3182_s9 = smov [#allocation2]   ;;  %s3183_s27 = smov [#allocation7]  }
  0x6b   :  { %s43_s5 = sshll.u32 %s3182_s9, 4  ;;  %s67_s3 = sshll.u32 %s3183_s27, 4  ;;  %s44_s5 = int_to_ptr.vmem [resolvable:$true] %s43_s5  ;;  %s68_s3 = int_to_ptr.vmem [resolvable:$true] %s67_s3 }
  0x6c   :  { %s2936_s15 = scalar_lea.vmem %s44_s5, 256  ;;  %p2941_p13 = scmp.lt.s32.totalorder %s44_s5, %s44_s5 }
  0x6d   :  { %p2937_p12 = scmp.ne.s32.totalorder %s44_s5, %s2936_s15  ;;  %p2942_p0 = scmp.lt.s32.totalorder %s2936_s15, %s2936_s15 }
  0x6f   :  { %p2943_p1 = por %p2942_p0, %p2941_p13 }
  0x71   :  { %p2944_p2 = pnand %p2943_p1, %p2937_p12 }
  0x73   :  { %2947 = shalt.err (!%p2944_p2)
}
  0x74   :  { %s3584_s24 = sld [smem:[#allocation43_spill]]  ;;  %s2956_s17 = scalar_lea.vmem %s68_s3, 256 }
  0x75   :  { %p2957_p3 = scmp.ne.s32.totalorder %s68_s3, %s2956_s17  ;;  %p2961_p4 = scmp.lt.s32.totalorder %s68_s3, %s68_s3 }
  0x76   :  { %p2962_p5 = scmp.lt.s32.totalorder %s2956_s17, %s2956_s17 }
  0x78   :  { %p2963_p6 = por %p2962_p5, %p2961_p4 }
  0x7a   :  { %49 = dma.hbm_to_vmem [thread:$0]  %s3584_s24, 256, %s44_s5, [#allocation3], %s3172_s0, %s3172_s0, %s3173_s23  }
  0x7b   :  { %p2964_p7 = pnand %p2963_p6, %p2957_p3 }
  0x7d   :  { %2967 = shalt.err (!%p2964_p7)
}
  0x7e   :  { %s3585_s28 = sld [smem:[#allocation45_spill]]  ;;  %s3184_s1 = smov [#allocation10]  }
  0x7f   :  { %s95_s25 = sshll.u32 %s3184_s1, 4  ;;  %s3185_s13 = smov [#allocation13]   ;;  %s96_s25 = int_to_ptr.vmem [resolvable:$true] %s95_s25 }
  0x80   :  { %s119_s6 = sshll.u32 %s3185_s13, 4  ;;  %s2976_s30 = scalar_lea.vmem %s96_s25, 1536  ;;  %s120_s6 = int_to_ptr.vmem [resolvable:$true] %s119_s6 }
  0x81   :  { %p2977_p8 = scmp.ne.s32.totalorder %s96_s25, %s2976_s30  ;;  %p2981_p9 = scmp.lt.s32.totalorder %s96_s25, %s96_s25 }
  0x82   :  { %p2982_p10 = scmp.lt.s32.totalorder %s2976_s30, %s2976_s30 }
  0x84   :  { %73 = dma.hbm_to_vmem [thread:$0]  %s3585_s28, 256, %s68_s3, [#allocation6], %s3172_s0, %s3172_s0, %s3173_s23  }
  0x85   :  { %p2983_p11 = por %p2982_p10, %p2981_p9 }
  0x87   :  { %p2984_p12 = pnand %p2983_p11, %p2977_p8 }
  0x89   :  { %2987 = shalt.err (!%p2984_p12)
}
  0x8a   :  { %s3586_s27 = sld [smem:[#allocation49_spill]]  ;;  %s2996_s3 = scalar_lea.vmem %s120_s6, 1536 }
  0x8b   :  { %p2997_p13 = scmp.ne.s32.totalorder %s120_s6, %s2996_s3  ;;  %p3001_p0 = scmp.lt.s32.totalorder %s120_s6, %s120_s6 }
  0x8c   :  { %p3002_p1 = scmp.lt.s32.totalorder %s2996_s3, %s2996_s3 }
  0x8e   :  { %p3003_p2 = por %p3002_p1, %p3001_p0 }
  0x90   :  { %101 = dma.hbm_to_vmem [thread:$0]  %s3586_s27, 1536, %s96_s25, [#allocation9], %s3172_s0, %s3172_s0, %s3173_s23  }
  0x91   :  { %p3004_p3 = pnand %p3003_p2, %p2997_p13 }
  0x93   :  { %3007 = shalt.err (!%p3004_p3)
}
  0x94   :  { %125 = dma.hbm_to_vmem [thread:$0]  %s3559_s8, 1536, %s120_s6, [#allocation12], %s3172_s0, %s3172_s0, %s3173_s23  }
  0x95   :  { %s3186_s4 = smov [#allocation16]   ;;  %s3187_s17 = smov [#allocation19]  }
  0x96   :  { %s143_s24 = sshll.u32 %s3186_s4, 4  ;;  %s167_s7 = sshll.u32 %s3187_s17, 4  ;;  %s144_s24 = int_to_ptr.vmem [resolvable:$true] %s143_s24  ;;  %s168_s7 = int_to_ptr.vmem [resolvable:$true] %s167_s7 }
  0x97   :  { %s3016_s11 = scalar_lea.vmem %s144_s24, 48  ;;  %s3020_s28 = scalar_lea.vmem %s144_s24, 64 }
  0x98   :  { %p3017_p4 = scmp.ne.s32.totalorder %s144_s24, %s3016_s11  ;;  %p3021_p5 = scmp.lt.s32.totalorder %s144_s24, %s144_s24 }
  0x99   :  { %p3022_p6 = scmp.lt.s32.totalorder %s3020_s28, %s3016_s11 }
  0x9b   :  { %p3023_p7 = por %p3022_p6, %p3021_p5 }
  0x9d   :  { %p3024_p8 = pnand %p3023_p7, %p3017_p4 }
  0x9f   :  { %3027 = shalt.err (!%p3024_p8)
}
  0xa0   :  { %149 = dma.hbm_to_vmem [thread:$0]  %s3561_s10, 48, %s144_s24, [#allocation15], %s3174_s26, %s3174_s26, %s3175_s2  }
  0xa1   :  { %s3036_s8 = scalar_lea.vmem %s168_s7, 1536  ;;  %p3041_p10 = scmp.lt.s32.totalorder %s168_s7, %s168_s7 }
  0xa2   :  { %p3037_p9 = scmp.ne.s32.totalorder %s168_s7, %s3036_s8  ;;  %p3042_p11 = scmp.lt.s32.totalorder %s3036_s8, %s3036_s8 }
  0xa4   :  { %p3043_p12 = por %p3042_p11, %p3041_p10 }
  0xa6   :  { %p3044_p13 = pnand %p3043_p12, %p3037_p9 }
  0xa8   :  { %3047 = shalt.err (!%p3044_p13)
}
  0xa9   :  { %173 = dma.hbm_to_vmem [thread:$0]  %s3563_s12, 1536, %s168_s7, [#allocation18], %s3172_s0, %s3172_s0, %s3173_s23  }
  0xaa   :  { %s3188_s30 = smov [#allocation22]   ;;  %s3189_s5 = smov [#allocation25]  }
  0xab   :  { %s191_s9 = sshll.u32 %s3188_s30, 4  ;;  %s215_s27 = sshll.u32 %s3189_s5, 4  ;;  %s192_s9 = int_to_ptr.vmem [resolvable:$true] %s191_s9  ;;  %s216_s27 = int_to_ptr.vmem [resolvable:$true] %s215_s27 }
  0xac   :  { %s3056_s10 = scalar_lea.vmem %s192_s9, 1536  ;;  %p3061_p1 = scmp.lt.s32.totalorder %s192_s9, %s192_s9 }
  0xad   :  { %p3057_p0 = scmp.ne.s32.totalorder %s192_s9, %s3056_s10  ;;  %p3062_p2 = scmp.lt.s32.totalorder %s3056_s10, %s3056_s10 }
  0xaf   :  { %p3063_p3 = por %p3062_p2, %p3061_p1 }
  0xb1   :  { %p3064_p4 = pnand %p3063_p3, %p3057_p0 }
  0xb3   :  { %3067 = shalt.err (!%p3064_p4)
}
  0xb4   :  { %197 = dma.hbm_to_vmem [thread:$0]  %s3565_s14, 1536, %s192_s9, [#allocation21], %s3172_s0, %s3172_s0, %s3173_s23  }
  0xb5   :  { %s3076_s12 = scalar_lea.vmem %s216_s27, 512  ;;  %p3081_p6 = scmp.lt.s32.totalorder %s216_s27, %s216_s27 }
  0xb6   :  { %p3077_p5 = scmp.ne.s32.totalorder %s216_s27, %s3076_s12  ;;  %p3082_p7 = scmp.lt.s32.totalorder %s3076_s12, %s3076_s12 }
  0xb8   :  { %p3083_p8 = por %p3082_p7, %p3081_p6 }
  0xba   :  { %p3084_p9 = pnand %p3083_p8, %p3077_p5 }
  0xbc   :  { %3087 = shalt.err (!%p3084_p9)
}
  0xbd   :  { %221 = dma.hbm_to_vmem [thread:$0]  %s3567_s16, 512, %s216_s27, [#allocation24], %s3172_s0, %s3172_s0, %s3173_s23  }
  0xbe   :  { %s3190_s29 = smov [#allocation28]   ;;  %s3191_s24 = smov [#allocation29]  }
  0xbf   :  { %s240_s4 = sshll.u32 %s3190_s29, 4  ;;  %s250_s17 = sshll.u32 %s3191_s24, 4  ;;  %s241_s4 = int_to_ptr.vmem [resolvable:$true] %s240_s4  ;;  %s251_s17 = int_to_ptr.vmem [resolvable:$true] %s250_s17 }
  0xc0   :  { %s3096_s14 = scalar_lea.vmem %s241_s4, 16  ;;  %s3100_s7 = scalar_lea.vmem %s241_s4, 32 }
  0xc1   :  { %p3097_p10 = scmp.ne.s32.totalorder %s241_s4, %s3096_s14  ;;  %p3101_p11 = scmp.lt.s32.totalorder %s241_s4, %s241_s4 }
  0xc2   :  { %p3102_p12 = scmp.lt.s32.totalorder %s3100_s7, %s3096_s14 }
  0xc4   :  { %p3103_p13 = por %p3102_p12, %p3101_p11 }
  0xc6   :  { %p3104_p0 = pnand %p3103_p13, %p3097_p10 }
  0xc8   :  { %3107 = shalt.err (!%p3104_p0)
}
  0xc9   :  { %243 = dma.hbm_to_vmem [thread:$0]  %s3569_s18, 16, %s241_s4, [#allocation27]  }
  0xca   :  { %s3116_s1 = scalar_lea.vmem %s251_s17, 16  ;;  %s3120_s16 = scalar_lea.vmem %s251_s17, 32 }
  0xcb   :  { %p3117_p1 = scmp.ne.s32.totalorder %s251_s17, %s3116_s1  ;;  %p3121_p2 = scmp.lt.s32.totalorder %s251_s17, %s251_s17 }
  0xcc   :  { %p3122_p3 = scmp.lt.s32.totalorder %s3120_s16, %s3116_s1 }
  0xce   :  { %p3123_p4 = por %p3122_p3, %p3121_p2 }
  0xd0   :  { %p3124_p5 = pnand %p3123_p4, %p3117_p1 }
  0xd2   :  { %3127 = shalt.err (!%p3124_p5)
}
  0xd3   :  { %253 = dma.hbm_to_vmem [thread:$0]  %s3570_s19, 16, %s251_s17, [#allocation30]  }
  0xd4   :  { %3148 = dma.done.wait [#allocation3], 256  }
  0xd5   :  { %3149 = vsyncadd [#allocation3], 4294967040 }
  0xd6   :  { %3150 = dma.done.wait [#allocation6], 512  }
  0xd7   :  { %3151 = vsyncadd [#allocation6], 4294966784 }
  0xd8   :  { %3152 = dma.done.wait [#allocation9], 1584  }
  0xd9   :  { %3153 = vsyncadd [#allocation9], 4294965712 }
  0xda   :  { %3154 = dma.done.wait [#allocation12], 3072  }
  0xdb   :  { %3155 = vsyncadd [#allocation12], 4294964224 }
  0xdc   :  { %3156 = dma.done.wait [#allocation15], 96  }
  0xdd   :  { %3157 = vsyncadd [#allocation15], 4294967200 }
  0xde   :  { %3158 = dma.done.wait [#allocation18], 1584  }
  0xdf   :  { %3159 = vsyncadd [#allocation18], 4294965712 }
  0xe0   :  { %3160 = dma.done.wait [#allocation21], 1584  }
  0xe1   :  { %3161 = vsyncadd [#allocation21], 4294965712 }
  0xe2   :  { %3162 = dma.done.wait [#allocation24], 560  }
  0xe3   :  { %3163 = vsyncadd [#allocation24], 4294966736 }
  0xe4   :  { %3164 = dma.done.wait [#allocation27], 528  }
  0xe5   :  { %3165 = vsyncadd [#allocation27], 4294966768 }
  0xe6   :  { %3166 = dma.done.wait [#allocation30], 16  }
  0xe7   :  { %3167 = vsyncadd [#allocation30], 4294967280  ;;  %vm339_vm0 = vcmask 130048   ;;  %v331_v0 = vld [vmem:[#allocation7 + $0x8] sm:$0xff]  ;;  %v330_v1 = vld [vmem:[#allocation7] sm:$0xff]  ;;  %vm432_vm1 = vcmask 261120  }
  0xe8   :  { %v328_v2 = vld [vmem:[#allocation2] sm:$0xff]  ;;  %2492 = vmatprep.subr.mxu0 %v331_v0  ;;  %v329_v3 = vld [vmem:[#allocation2 + $0x8] sm:$0xff]  ;;  %v312_v9 = vld [vmem:[#allocation5] sm:$0xff]  ;;  %s3587_s13 = sld [smem:[#allocation46_spill]]  ;;  %s3192_s7 = smov [#allocation31]  }
  0xe9   :  { %2496 = vmatprep.mubr.msk.f32.mxu0 %vm339_vm0, %v328_v2  ;;  %2493 = vmatpush3.msra.mxu0 %v331_v0  ;;  %v517_v4 = vld [vmem:[#allocation11 + $0x18] sm:$0xff]  ;;  %v516_v5 = vld [vmem:[#allocation11 + $0x10] sm:$0xff]  ;;  %v515_v7 = vld [vmem:[#allocation11 + $0x8] sm:$0xff]  ;;  %v2307_v12 = vmul.f32 -1.442695, %v312_v9  ;;  %s3588_s9 = sld [smem:[#allocation47_spill]] }
  0xea   :  { %2494 = vmatprep.subr.mxu0 %v330_v1  ;;  %v424_v6 = vld [vmem:[#allocation10 + $0x18] sm:$0xff]  ;;  %v423_v8 = vld [vmem:[#allocation10 + $0x10] sm:$0xff]  ;;  %v422_v10 = vld [vmem:[#allocation10 + $0x8] sm:$0xff]  ;;  %s2286_s11 = sshll.u32 %s3192_s7, 4  ;;  %s2287_s11 = int_to_ptr.vmem [resolvable:$true] %s2286_s11 }
  0xeb   :  { %2495 = vmatpush3.msra.mxu0 %v330_v1  ;;  %2499 = vmatprep.subr.mxu1 %v424_v6  ;;  %v313_v11 = vld [vmem:[#allocation5 + $0x8] sm:$0xff]  ;;  %2720 = vpow2.f32 %v2307_v12  ;;  %v739_v42 = vld [vmem:[#allocation19 + $0x10] sm:$0xff]  ;;  %v738_v43 = vld [vmem:[#allocation19 + $0x8] sm:$0xff]  ;;  %s3128_s28 = scalar_lea.vmem %s2287_s11, 256  ;;  %p3133_p7 = scmp.lt.s32.totalorder %s2287_s11, %s2287_s11 }
  0xec   :  { %2497 = vmatmul.mubr.msk.f32.vlgmr.msra.gmra.mxu0 %vm339_vm0, %v329_v3  ;;  %2510 = vmatprep.subr.mxu0 %v517_v4  ;;  %v2308_v13 = vmul.f32 -1.442695, %v313_v11  ;;  %v514_v14 = vld [vmem:[#allocation11] sm:$0xff]  ;;  %v737_v44 = vld [vmem:[#allocation19] sm:$0xff]  ;;  %v2322_v59 = vld [vmem:[#allocation8] ss:$0 sm:$0xff]  ;;  %p3129_p6 = scmp.ne.s32.totalorder %s2287_s11, %s3128_s28  ;;  %p3134_p8 = scmp.lt.s32.totalorder %s3128_s28, %s3128_s28 }
  0xed   :  { %2511 = vmatpush3.msra.mxu0 %v517_v4  ;;  %2500 = vmatpush3.msra.mxu1 %v424_v6  ;;  %v421_v15 = vld [vmem:[#allocation10] sm:$0xff] }
  0xee   :  { %2512 = vmatprep.subr.mxu0 %v516_v5  ;;  %2501 = vmatprep.subr.mxu1 %v423_v8  ;;  %2722 = vpow2.f32 %v2308_v13  ;;  %v2309_v25 = vld [vmem:[%s3587_s13] ss:$0 sm:$0xff]  ;;  %v740_v41 = vld [vmem:[#allocation19 + $0x18] sm:$0xff]  ;;  %v2312_v60 = vld [vmem:[#allocation14] ss:$0 sm:$0xff]  ;;  %p3135_p9 = por %p3134_p8, %p3133_p7 }
  0xef   :  { %2513 = vmatpush3.msra.mxu0 %v516_v5  ;;  %2502 = vmatpush3.msra.mxu1 %v423_v8  ;;  %v2315_v52 = vld [vmem:[#allocation16] ss:$0 sm:$0xff]  ;;  %v2321_v57 = vld [vmem:[%s3588_s9] ss:$0 sm:$0xff]  ;;  %v603_v13 = vld [vmem:[#allocation13 + $0x18] sm:$0xff] }
  0xf0   :  { %2514 = vmatprep.subr.mxu0 %v515_v7  ;;  %2503 = vmatprep.subr.mxu1 %v422_v10  ;;  %p3136_p10 = pnand %p3135_p9, %p3129_p6 }
  0xf1   :  { %2515 = vmatpush3.msra.mxu0 %v515_v7  ;;  %2504 = vmatpush3.msra.mxu1 %v422_v10 }
  0xf2   :  { %2516 = vmatprep.subr.mxu0 %v514_v14  ;;  %2505 = vmatprep.subr.mxu1 %v421_v15 }
  0xf3   :  { %2517 = vmatpush3.msra.mxu0 %v514_v14  ;;  %2506 = vmatpush3.msra.mxu1 %v421_v15  ;;  %v602_v14 = vld [vmem:[#allocation13 + $0x10] sm:$0xff]  ;;  %v601_v15 = vld [vmem:[#allocation13 + $0x8] sm:$0xff] }
  0xf4   :  { %2532 = vmatprep.subr.mxu0 %v740_v41  ;;  %2521 = vmatprep.subr.mxu1 %v603_v13 }
  0xf8   :  { %v2721_v16 = vpop.eup %2720 }
  0xf9   :  { %v320_v18 = vadd.f32 1.0, %v2721_v16  ;;  %v600_v16 = vld [vmem:[#allocation13] sm:$0xff] }
  0xfb   :  { %v2723_v17 = vpop.eup %2722  ;;  %2724 = vrcp.f32 %v320_v18  ;;  %v845_v18 = vld [vmem:[#allocation22 + $0x10] sm:$0xff] }
  0xfc   :  { %v321_v19 = vadd.f32 1.0, %v2723_v17  ;;  %v846_v17 = vld [vmem:[#allocation22 + $0x18] sm:$0xff] }
  0xfe   :  { %2726 = vrcp.f32 %v321_v19  ;;  %v844_v19 = vld [vmem:[#allocation22 + $0x8] sm:$0xff] }
 0x108   :  { %v2725_v20 = vpop.eup %2724 }
 0x109   :  { %v3410_v22 = vmul.f32 %v2725_v20, %v312_v9  ;;  %v843_v20 = vld [vmem:[#allocation22] sm:$0xff] }
 0x10b   :  { %v2727_v21 = vpop.eup %2726  ;;  %2518 = vmatprep.mubr.msk.f32.mxu0 %vm432_vm1, %v3410_v22  ;;  %2507 = vmatprep.mubr.msk.f32.mxu1 %vm432_vm1, %v3410_v22 }
 0x10c   :  { %v3412_v23 = vmul.f32 %v2727_v21, %v313_v11  ;;  %v2323_v21 = vld [vmem:[#allocation20] ss:$0 sm:$0xff] }
 0x10e   :  { %2519 = vmatmul.mubr.msk.f32.vlgmr.msra.gmra.mxu0 %vm432_vm1, %v3412_v23  ;;  %2508 = vmatmul.mubr.msk.f32.vlgmr.msra.gmra.mxu1 %vm432_vm1, %v3412_v23 }
 0x10f   :  { %2529 = vmatprep.mubr.msk.f32.mxu1 %vm432_vm1, %v3410_v22  ;;  %2533 = vmatpush3.msra.mxu0 %v740_v41  ;;  %v1030_v41 = vld [vmem:[#allocation11 + $0x30] sm:$0xff] }
 0x110   :  { %2534 = vmatprep.subr.mxu0 %v739_v42  ;;  %2522 = vmatpush3.msra.mxu1 %v603_v13 }
 0x111   :  { %2535 = vmatpush3.msra.mxu0 %v739_v42  ;;  %2523 = vmatprep.subr.mxu1 %v602_v14  ;;  %v943_v42 = vld [vmem:[#allocation10 + $0x38] sm:$0xff] }
 0x112   :  { %2536 = vmatprep.subr.mxu0 %v738_v43  ;;  %2524 = vmatpush3.msra.mxu1 %v602_v14 }
 0x113   :  { %2537 = vmatpush3.msra.mxu0 %v738_v43  ;;  %2525 = vmatprep.subr.mxu1 %v601_v15  ;;  %v942_v43 = vld [vmem:[#allocation10 + $0x30] sm:$0xff] }
 0x114   :  { %2538 = vmatprep.subr.mxu0 %v737_v44  ;;  %2526 = vmatpush3.msra.mxu1 %v601_v15 }
 0x115   :  { %2539 = vmatpush3.msra.mxu0 %v737_v44  ;;  %2527 = vmatprep.subr.mxu1 %v600_v16  ;;  %v1029_v44 = vld [vmem:[#allocation11 + $0x28] sm:$0xff] }
 0x116   :  { %2528 = vmatpush3.msra.mxu1 %v600_v16  ;;  %2554 = vmatprep.subr.mxu0 %v943_v42 }
 0x117   :  { %2530 = vmatmul.mubr.msk.f32.vlgmr.msra.gmra.mxu1 %vm432_vm1, %v3412_v23  ;;  %2543 = vmatprep.subr.mxu1 %v846_v17 }
 0x118   :  { %2544 = vmatpush3.msra.mxu1 %v846_v17 }
 0x119   :  { %2545 = vmatprep.subr.mxu1 %v845_v18 }
 0x11a   :  { %2546 = vmatpush3.msra.mxu1 %v845_v18 }
 0x11b   :  { %2547 = vmatprep.subr.mxu1 %v844_v19 }
 0x11c   :  { %2548 = vmatpush3.msra.mxu1 %v844_v19  ;;  %v2334_v19 = vld [vmem:[#allocation16 + $0x1] ss:$0 sm:$0xff] }
 0x11d   :  { %2549 = vmatprep.subr.mxu1 %v843_v20 }
 0x11e   :  { %2550 = vmatpush3.msra.mxu1 %v843_v20 }
 0x1ac   :  { %v2498_v24 = vpop.f32.mrf.mxu0 }
 0x1ad   :  { %v3429_v28 = vadd.f32 %v2498_v24, %v2309_v25 }
 0x1ae   :  { %v412_v26 = vpop.f32.mrf.mxu0 }
 0x1af   :  { %v3427_v27 = vadd.f32 %v2309_v25, %v412_v26  ;;  %v689_v30 = vsel %vm432_vm1, %v3429_v28, 0.0 }
 0x1b1   :  { %v686_v29 = vsel %vm432_vm1, %v3427_v27, 0.0 }
 0x1b2   :  { %687 = vadd.xlane.f32.xlu0 %v686_v29 }
 0x1b6   :  { %690 = vadd.xlane.f32.xlu0 %v689_v30 }
 0x1ce   :  { %v2520_v51 = vpop.f32.mrf.mxu0  ;;  %v2509_v54 = vpop.f32.mrf.mxu1 }
 0x1cf   :  { %v597_v1 = vadd.f32 %v2520_v51, %v2315_v52  ;;  %v511_v11 = vadd.f32 %v2509_v54, %v2312_v60  ;;  %v2328_v51 = vld [vmem:[#allocation23] ss:$0 sm:$0xff] }
 0x1d0   :  { %v591_v53 = vpop.f32.mrf.mxu0  ;;  %v505_v61 = vpop.f32.mrf.mxu1 }
 0x1d1   :  { %v592_v55 = vadd.f32 %v2315_v52, %v591_v53  ;;  %v506_v4 = vadd.f32 %v2312_v60, %v505_v61  ;;  %v732_v8 = vadd.f32 1.0, %v597_v1 }
 0x1d3   :  { %v731_v63 = vadd.f32 1.0, %v592_v55 }
 0x23b   :  { %v688_v31 = vpop.xlane.xlu0 %687 }
 0x23c   :  { %v693_v32 = vmul.f32 0.03125, %v688_v31 }
 0x23e   :  { %v695_v33 = vsub.f32 %v3427_v27, %v693_v32 }
 0x23f   :  { %v691_v34 = vpop.xlane.xlu0 %690 }
 0x240   :  { %v694_v35 = vmul.f32 0.03125, %v691_v34  ;;  %v697_v36 = vmul.f32 %v695_v33, %v695_v33 }
 0x242   :  { %v696_v37 = vsub.f32 %v3429_v28, %v694_v35  ;;  %v699_v38 = vsel %vm432_vm1, %v697_v36, 0.0 }
 0x243   :  { %700 = vadd.xlane.f32.xlu1 %v699_v38 }
 0x244   :  { %v698_v39 = vmul.f32 %v696_v37, %v696_v37 }
 0x246   :  { %v702_v40 = vsel %vm432_vm1, %v698_v39, 0.0 }
 0x247   :  { %703 = vadd.xlane.f32.xlu1 %v702_v40  ;;  %v1031_v40 = vld [vmem:[#allocation11 + $0x38] sm:$0xff] }
 0x248   :  { %2565 = vmatprep.subr.mxu1 %v1031_v40 }
 0x2cc   :  { %v701_v45 = vpop.xlane.xlu1 %700 }
 0x2cd   :  { %v705_v46 = vmul.f32 0.03125, %v701_v45  ;;  %v941_v45 = vld [vmem:[#allocation10 + $0x28] sm:$0xff] }
 0x2cf   :  { %v707_v47 = vadd.f32 1e-06, %v705_v46  ;;  %v1028_v46 = vld [vmem:[#allocation11 + $0x20] sm:$0xff] }
 0x2d0   :  { %v704_v48 = vpop.xlane.xlu1 %703 }
 0x2d1   :  { %2728 = vrsqrt.f32 %v707_v47  ;;  %v706_v49 = vmul.f32 0.03125, %v704_v48  ;;  %v940_v47 = vld [vmem:[#allocation10 + $0x20] sm:$0xff]  ;;  %v2531_v48 = vpop.f32.mrf.mxu1 }
 0x2d3   :  { %v708_v50 = vadd.f32 1e-06, %v706_v49  ;;  %v2318_v49 = vld [vmem:[#allocation17] ss:$0 sm:$0xff] }
 0x2d4   :  { %v683_v53 = vadd.f32 %v2531_v48, %v2318_v49  ;;  %v1119_v48 = vld [vmem:[#allocation13 + $0x38] sm:$0xff] }
 0x2d5   :  { %2730 = vrsqrt.f32 %v708_v50  ;;  %v677_v50 = vpop.f32.mrf.mxu1 }
 0x2de   :  { %v2729_v56 = vpop.eup %2728 }
 0x2df   :  { %v711_v58 = vmul.f32 %v2729_v56, %v695_v33  ;;  %v678_v56 = vadd.f32 %v2318_v49, %v677_v50  ;;  %v1118_v49 = vld [vmem:[#allocation13 + $0x30] sm:$0xff]  ;;  %v1117_v50 = vld [vmem:[#allocation13 + $0x28] sm:$0xff] }
 0x2e1   :  { %v720_v62 = vmul.f32 %v2321_v57, %v711_v58 }
 0x2e2   :  { %v2731_v0 = vpop.eup %2730 }
 0x2e3   :  { %v712_v2 = vmul.f32 %v2731_v0, %v696_v37  ;;  %v729_v3 = vadd.f32 %v2322_v59, %v720_v62 }
 0x2e5   :  { %v721_v5 = vmul.f32 %v2321_v57, %v712_v2  ;;  %v733_v6 = vmul.f32 %v731_v63, %v729_v3 }
 0x2e7   :  { %v730_v7 = vadd.f32 %v2322_v59, %v721_v5  ;;  %v735_v9 = vadd.f32 %v733_v6, %v506_v4 }
 0x2e9   :  { %v734_v10 = vmul.f32 %v732_v8, %v730_v7  ;;  %2540 = vmatprep.mubr.msk.f32.mxu0 %vm432_vm1, %v735_v9  ;;  %v1259_v8 = vld [vmem:[#allocation19 + $0x38] sm:$0xff]  ;;  %v1258_v9 = vld [vmem:[#allocation19 + $0x30] sm:$0xff] }
 0x2eb   :  { %v736_v12 = vadd.f32 %v734_v10, %v511_v11  ;;  %v1257_v10 = vld [vmem:[#allocation19 + $0x28] sm:$0xff]  ;;  %v1256_v11 = vld [vmem:[#allocation19 + $0x20] sm:$0xff] }
 0x2ed   :  { %2541 = vmatmul.mubr.msk.f32.vlgmr.msra.gmra.mxu0 %vm432_vm1, %v736_v12 }
 0x2ee   :  { %2562 = vmatprep.mubr.msk.f32.mxu0 %vm432_vm1, %v3410_v22  ;;  %2555 = vmatpush3.msra.mxu0 %v943_v42 }
 0x2ef   :  { %2556 = vmatprep.subr.mxu0 %v942_v43 }
 0x2f0   :  { %2557 = vmatpush3.msra.mxu0 %v942_v43 }
 0x2f1   :  { %2558 = vmatprep.subr.mxu0 %v941_v45 }
 0x2f2   :  { %2559 = vmatpush3.msra.mxu0 %v941_v45 }
 0x2f3   :  { %2560 = vmatprep.subr.mxu0 %v940_v47 }
 0x2f4   :  { %2561 = vmatpush3.msra.mxu0 %v940_v47 }
 0x2f5   :  { %2563 = vmatmul.mubr.msk.f32.vlgmr.msra.gmra.mxu0 %vm432_vm1, %v3412_v23  ;;  %2576 = vmatprep.subr.mxu0 %v1119_v48 }
 0x2f6   :  { %2584 = vmatprep.mubr.msk.f32.mxu0 %vm432_vm1, %v3410_v22  ;;  %2577 = vmatpush3.msra.mxu0 %v1119_v48 }
 0x2f7   :  { %2578 = vmatprep.subr.mxu0 %v1118_v49 }
 0x2f8   :  { %2579 = vmatpush3.msra.mxu0 %v1118_v49 }
 0x2f9   :  { %2580 = vmatprep.subr.mxu0 %v1117_v50 }
 0x2fa   :  { %2581 = vmatpush3.msra.mxu0 %v1117_v50 }
 0x3ad   :  { %v2542_v24 = vpop.f32.mrf.mxu0 }
 0x3ae   :  { %v826_v25 = vadd.f32 %v2542_v24, %v2323_v21  ;;  %v2341_v24 = vld [vmem:[%s3588_s9 + $0x1] ss:$0 sm:$0xff] }
 0x3af   :  { %v820_v26 = vpop.f32.mrf.mxu0 }
 0x3b0   :  { %v2327_v29 = vmul.f32 -1.442695, %v826_v25  ;;  %v821_v30 = vadd.f32 %v2323_v21, %v820_v26 }
 0x3b2   :  { %2732 = vpow2.f32 %v2327_v29  ;;  %v2326_v31 = vmul.f32 -1.442695, %v821_v30 }
 0x3b4   :  { %2734 = vpow2.f32 %v2326_v31 }
 0x3b5   :  { %v2564_v31 = vpop.f32.mrf.mxu0 }
 0x3bf   :  { %v2733_v32 = vpop.eup %2732 }
 0x3c0   :  { %v836_v33 = vadd.f32 1.0, %v2733_v32 }
 0x3c1   :  { %v2735_v34 = vpop.eup %2734 }
 0x3c2   :  { %v835_v35 = vadd.f32 1.0, %v2735_v34  ;;  %2736 = vrcp.f32 %v836_v33 }
 0x3c4   :  { %2738 = vrcp.f32 %v835_v35 }
 0x3cf   :  { %v2737_v36 = vpop.eup %2736 }
 0x3d0   :  { %v842_v39 = vmul.f32 %v2737_v36, %v826_v25 }
 0x3d1   :  { %v2739_v37 = vpop.eup %2738 }
 0x3d2   :  { %v841_v38 = vmul.f32 %v2739_v37, %v821_v30  ;;  %v2342_v30 = vld [vmem:[#allocation8 + $0x1] ss:$0 sm:$0xff] }
 0x3d4   :  { %2551 = vmatprep.mubr.msk.f32.mxu1 %vm432_vm1, %v841_v38  ;;  %v2331_v38 = vld [vmem:[#allocation14 + $0x1] ss:$0 sm:$0xff] }
 0x3d5   :  { %2552 = vmatmul.mubr.msk.f32.vlgmr.msra.gmra.mxu1 %vm432_vm1, %v842_v39  ;;  %v1018_v39 = vpop.f32.mrf.mxu0  ;;  %v1024_v43 = vadd.f32 %v2564_v31, %v2331_v38 }
 0x3d6   :  { %2573 = vmatprep.mubr.msk.f32.mxu1 %vm432_vm1, %v3410_v22  ;;  %2566 = vmatpush3.msra.mxu1 %v1031_v40  ;;  %v1019_v45 = vadd.f32 %v2331_v38, %v1018_v39 }
 0x3d7   :  { %2567 = vmatprep.subr.mxu1 %v1030_v41 }
 0x3d8   :  { %2568 = vmatpush3.msra.mxu1 %v1030_v41 }
 0x3d9   :  { %2569 = vmatprep.subr.mxu1 %v1029_v44 }
 0x3da   :  { %2570 = vmatpush3.msra.mxu1 %v1029_v44 }
 0x3db   :  { %2571 = vmatprep.subr.mxu1 %v1028_v46 }
 0x3dc   :  { %2572 = vmatpush3.msra.mxu1 %v1028_v46 }
 0x3dd   :  { %2574 = vmatmul.mubr.msk.f32.vlgmr.msra.gmra.mxu1 %vm432_vm1, %v3412_v23  ;;  %2587 = vmatprep.subr.mxu1 %v1259_v8 }
 0x3de   :  { %2588 = vmatpush3.msra.mxu1 %v1259_v8  ;;  %v1552_v8 = vld [vmem:[#allocation11 + $0x50] sm:$0xff] }
 0x3df   :  { %2589 = vmatprep.subr.mxu1 %v1258_v9 }
 0x3e0   :  { %2590 = vmatpush3.msra.mxu1 %v1258_v9  ;;  %v1465_v9 = vld [vmem:[#allocation10 + $0x58] sm:$0xff] }
 0x3e1   :  { %2591 = vmatprep.subr.mxu1 %v1257_v10 }
 0x3e2   :  { %2592 = vmatpush3.msra.mxu1 %v1257_v10  ;;  %v1464_v10 = vld [vmem:[#allocation10 + $0x50] sm:$0xff] }
 0x3e3   :  { %2593 = vmatprep.subr.mxu1 %v1256_v11 }
 0x3e4   :  { %2594 = vmatpush3.msra.mxu1 %v1256_v11  ;;  %v1551_v11 = vld [vmem:[#allocation11 + $0x48] sm:$0xff] }
 0x3e5   :  { %2609 = vmatprep.subr.mxu1 %v1465_v9 }
 0x495   :  { %v2553_v52 = vpop.f32.mrf.mxu1 }
 0x496   :  { %v932_v54 = vadd.f32 %v2553_v52, %v2328_v51  ;;  %v1367_v52 = vld [vmem:[#allocation22 + $0x38] sm:$0xff] }
 0x497   :  { %v926_v55 = vpop.f32.mrf.mxu1 }
 0x498   :  { %v936_v57 = vmul.f32 %v932_v54, %v683_v53  ;;  %v927_v58 = vadd.f32 %v2328_v51, %v926_v55  ;;  %v1116_v51 = vld [vmem:[#allocation13 + $0x20] sm:$0xff]  ;;  %v1365_v54 = vld [vmem:[#allocation22 + $0x28] sm:$0xff]  ;;  %v1364_v55 = vld [vmem:[#allocation22 + $0x20] sm:$0xff] }
 0x499   :  { %2582 = vmatprep.subr.mxu0 %v1116_v51  ;;  %v1366_v53 = vld [vmem:[#allocation22 + $0x30] sm:$0xff] }
 0x49a   :  { %v3459_v59 = vadd.f32 %v936_v57, %v3429_v28  ;;  %v935_v60 = vmul.f32 %v927_v58, %v678_v56  ;;  %2583 = vmatpush3.msra.mxu0 %v1116_v51  ;;  %v2343_v56 = vld [vmem:[#allocation20 + $0x1] ss:$0 sm:$0xff] }
 0x49b   :  { %2585 = vmatmul.mubr.msk.f32.vlgmr.msra.gmra.mxu0 %vm432_vm1, %v3412_v23  ;;  %2598 = vmatprep.subr.mxu0 %v1367_v52 }
 0x49c   :  { %v3462_v61 = vadd.f32 %v935_v60, %v3427_v27  ;;  %v1206_v62 = vsel %vm432_vm1, %v3459_v59, 0.0  ;;  %2599 = vmatpush3.msra.mxu0 %v1367_v52 }
 0x49d   :  { %1207 = vadd.xlane.f32.xlu1 %v1206_v62  ;;  %v2575_v18 = vpop.f32.mrf.mxu1  ;;  %2600 = vmatprep.subr.mxu0 %v1366_v53 }
 0x49e   :  { %v1203_v63 = vsel %vm432_vm1, %v3462_v61, 0.0  ;;  %v1112_v21 = vadd.f32 %v2575_v18, %v2334_v19  ;;  %2601 = vmatpush3.msra.mxu0 %v1366_v53  ;;  %v2348_v18 = vld [vmem:[#allocation23 + $0x1] ss:$0 sm:$0xff] }
 0x49f   :  { %1204 = vadd.xlane.f32.xlu0 %v1203_v63  ;;  %v1106_v25 = vpop.f32.mrf.mxu1  ;;  %2602 = vmatprep.subr.mxu0 %v1365_v54 }
 0x4a0   :  { %v1107_v33 = vadd.f32 %v2334_v19, %v1106_v25  ;;  %v1250_v35 = vadd.f32 1.0, %v1112_v21  ;;  %2603 = vmatpush3.msra.mxu0 %v1365_v54  ;;  %v2354_v54 = vld [vmem:[#allocation16 + $0x2] ss:$0 sm:$0xff] }
 0x4a1   :  { %2604 = vmatprep.subr.mxu0 %v1364_v55 }
 0x4a2   :  { %v1249_v41 = vadd.f32 1.0, %v1107_v33  ;;  %2605 = vmatpush3.msra.mxu0 %v1364_v55 }
 0x526   :  { %v1208_v0 = vpop.xlane.xlu1 %1207 }
 0x527   :  { %v1210_v1 = vmul.f32 0.03125, %v1208_v0 }
 0x528   :  { %v1205_v2 = vpop.xlane.xlu0 %1204 }
 0x529   :  { %v1212_v3 = vsub.f32 %v3459_v59, %v1210_v1  ;;  %v1209_v4 = vmul.f32 0.03125, %v1205_v2 }
 0x52b   :  { %v1211_v28 = vsub.f32 %v3462_v61, %v1209_v4  ;;  %v1214_v5 = vmul.f32 %v1212_v3, %v1212_v3 }
 0x52d   :  { %v1218_v27 = vsel %vm432_vm1, %v1214_v5, 0.0  ;;  %v1213_v6 = vmul.f32 %v1211_v28, %v1211_v28 }
 0x52e   :  { %1219 = vadd.xlane.f32.xlu1 %v1218_v27 }
 0x52f   :  { %v1215_v7 = vsel %vm432_vm1, %v1213_v6, 0.0 }
 0x530   :  { %1216 = vadd.xlane.f32.xlu0 %v1215_v7  ;;  %v1553_v7 = vld [vmem:[#allocation11 + $0x58] sm:$0xff] }
 0x531   :  { %2620 = vmatprep.subr.mxu0 %v1553_v7 }
 0x5b7   :  { %v1220_v12 = vpop.xlane.xlu1 %1219 }
 0x5b8   :  { %v1222_v13 = vmul.f32 0.03125, %v1220_v12  ;;  %v1463_v12 = vld [vmem:[#allocation10 + $0x48] sm:$0xff] }
 0x5b9   :  { %v1217_v14 = vpop.xlane.xlu0 %1216 }
 0x5ba   :  { %v1224_v15 = vadd.f32 1e-06, %v1222_v13  ;;  %v1221_v16 = vmul.f32 0.03125, %v1217_v14  ;;  %v1550_v13 = vld [vmem:[#allocation11 + $0x40] sm:$0xff] }
 0x5bb   :  { %v1462_v14 = vld [vmem:[#allocation10 + $0x40] sm:$0xff] }
 0x5bc   :  { %2740 = vrsqrt.f32 %v1224_v15  ;;  %v1223_v17 = vadd.f32 1e-06, %v1221_v16  ;;  %v2586_v15 = vpop.f32.mrf.mxu0  ;;  %v2337_v16 = vld [vmem:[#allocation17 + $0x1] ss:$0 sm:$0xff] }
 0x5be   :  { %2742 = vrsqrt.f32 %v1223_v17  ;;  %v1194_v17 = vpop.f32.mrf.mxu0 }
 0x5bf   :  { %v1195_v25 = vadd.f32 %v2337_v16, %v1194_v17  ;;  %v1639_v17 = vld [vmem:[#allocation13 + $0x48] sm:$0xff] }
 0x5c9   :  { %v2741_v20 = vpop.eup %2740 }
 0x5ca   :  { %v1228_v26 = vmul.f32 %v2741_v20, %v1212_v3  ;;  %v1200_v20 = vadd.f32 %v2586_v15, %v2337_v16  ;;  %v1641_v15 = vld [vmem:[#allocation13 + $0x58] sm:$0xff]  ;;  %v1640_v16 = vld [vmem:[#allocation13 + $0x50] sm:$0xff] }
 0x5cb   :  { %v2743_v29 = vpop.eup %2742 }
 0x5cc   :  { %v1238_v32 = vmul.f32 %v2341_v24, %v1228_v26  ;;  %v1227_v34 = vmul.f32 %v2743_v29, %v1211_v28 }
 0x5ce   :  { %v1248_v36 = vadd.f32 %v2342_v30, %v1238_v32  ;;  %v1237_v37 = vmul.f32 %v2341_v24, %v1227_v34 }
 0x5d0   :  { %v1247_v40 = vadd.f32 %v2342_v30, %v1237_v37  ;;  %v1252_v42 = vmul.f32 %v1250_v35, %v1248_v36 }
 0x5d2   :  { %v1251_v44 = vmul.f32 %v1249_v41, %v1247_v40  ;;  %v1254_v47 = vadd.f32 %v1252_v42, %v1024_v43  ;;  %v1781_v43 = vld [vmem:[#allocation19 + $0x58] sm:$0xff] }
 0x5d4   :  { %v1253_v46 = vadd.f32 %v1251_v44, %v1019_v45  ;;  %v1780_v44 = vld [vmem:[#allocation19 + $0x50] sm:$0xff]  ;;  %v1779_v45 = vld [vmem:[#allocation19 + $0x48] sm:$0xff] }
 0x5d6   :  { %2595 = vmatprep.mubr.msk.f32.mxu1 %vm432_vm1, %v1253_v46  ;;  %v1778_v46 = vld [vmem:[#allocation19 + $0x40] sm:$0xff] }
 0x5d7   :  { %2596 = vmatmul.mubr.msk.f32.vlgmr.msra.gmra.mxu1 %vm432_vm1, %v1254_v47 }
 0x5d8   :  { %2617 = vmatprep.mubr.msk.f32.mxu1 %vm432_vm1, %v3410_v22  ;;  %2610 = vmatpush3.msra.mxu1 %v1465_v9 }
 0x5d9   :  { %2611 = vmatprep.subr.mxu1 %v1464_v10 }
 0x5da   :  { %2612 = vmatpush3.msra.mxu1 %v1464_v10 }
 0x5db   :  { %2613 = vmatprep.subr.mxu1 %v1463_v12 }
 0x5dc   :  { %2614 = vmatpush3.msra.mxu1 %v1463_v12 }
 0x5dd   :  { %2615 = vmatprep.subr.mxu1 %v1462_v14 }
 0x5de   :  { %2616 = vmatpush3.msra.mxu1 %v1462_v14 }
 0x5df   :  { %2618 = vmatmul.mubr.msk.f32.vlgmr.msra.gmra.mxu1 %vm432_vm1, %v3412_v23  ;;  %2631 = vmatprep.subr.mxu1 %v1641_v15 }
 0x5e0   :  { %2639 = vmatprep.mubr.msk.f32.mxu1 %vm432_vm1, %v3410_v22  ;;  %2632 = vmatpush3.msra.mxu1 %v1641_v15 }
 0x5e1   :  { %2633 = vmatprep.subr.mxu1 %v1640_v16 }
 0x5e2   :  { %2634 = vmatpush3.msra.mxu1 %v1640_v16 }
 0x5e3   :  { %2635 = vmatprep.subr.mxu1 %v1639_v17 }
 0x5e4   :  { %2636 = vmatpush3.msra.mxu1 %v1639_v17 }
 0x697   :  { %v2597_v57 = vpop.f32.mrf.mxu1 }
 0x698   :  { %v1346_v58 = vadd.f32 %v2597_v57, %v2343_v56  ;;  %v2361_v57 = vld [vmem:[%s3588_s9 + $0x2] ss:$0 sm:$0xff] }
 0x699   :  { %v1340_v60 = vpop.f32.mrf.mxu1 }
 0x69a   :  { %v2347_v62 = vmul.f32 -1.442695, %v1346_v58  ;;  %v1341_v63 = vadd.f32 %v2343_v56, %v1340_v60 }
 0x69c   :  { %2744 = vpow2.f32 %v2347_v62  ;;  %v2346_v0 = vmul.f32 -1.442695, %v1341_v63 }
 0x69e   :  { %2746 = vpow2.f32 %v2346_v0 }
 0x69f   :  { %v2619_v0 = vpop.f32.mrf.mxu1 }
 0x6a9   :  { %v2745_v1 = vpop.eup %2744 }
 0x6aa   :  { %v1356_v2 = vadd.f32 1.0, %v2745_v1 }
 0x6ab   :  { %v2747_v3 = vpop.eup %2746 }
 0x6ac   :  { %v1355_v4 = vadd.f32 1.0, %v2747_v3  ;;  %2748 = vrcp.f32 %v1356_v2 }
 0x6ae   :  { %2750 = vrcp.f32 %v1355_v4 }
 0x6b9   :  { %v2749_v28 = vpop.eup %2748 }
 0x6ba   :  { %v1362_v6 = vmul.f32 %v2749_v28, %v1346_v58 }
 0x6bb   :  { %v2751_v5 = vpop.eup %2750 }
 0x6bc   :  { %v1361_v27 = vmul.f32 %v2751_v5, %v1341_v63  ;;  %v2362_v63 = vld [vmem:[#allocation8 + $0x2] ss:$0 sm:$0xff] }
 0x6be   :  { %2606 = vmatprep.mubr.msk.f32.mxu0 %vm432_vm1, %v1361_v27  ;;  %v2351_v27 = vld [vmem:[#allocation14 + $0x2] ss:$0 sm:$0xff] }
 0x6bf   :  { %2607 = vmatmul.mubr.msk.f32.vlgmr.msra.gmra.mxu0 %vm432_vm1, %v1362_v6  ;;  %v1540_v6 = vpop.f32.mrf.mxu1  ;;  %v1546_v10 = vadd.f32 %v2619_v0, %v2351_v27 }
 0x6c0   :  { %2628 = vmatprep.mubr.msk.f32.mxu0 %vm432_vm1, %v3410_v22  ;;  %2621 = vmatpush3.msra.mxu0 %v1553_v7  ;;  %v1541_v12 = vadd.f32 %v2351_v27, %v1540_v6 }
 0x6c1   :  { %2622 = vmatprep.subr.mxu0 %v1552_v8 }
 0x6c2   :  { %2623 = vmatpush3.msra.mxu0 %v1552_v8 }
 0x6c3   :  { %2624 = vmatprep.subr.mxu0 %v1551_v11 }
 0x6c4   :  { %2625 = vmatpush3.msra.mxu0 %v1551_v11 }
 0x6c5   :  { %2626 = vmatprep.subr.mxu0 %v1550_v13 }
 0x6c6   :  { %2627 = vmatpush3.msra.mxu0 %v1550_v13 }
 0x6c7   :  { %2629 = vmatmul.mubr.msk.f32.vlgmr.msra.gmra.mxu0 %vm432_vm1, %v3412_v23  ;;  %2642 = vmatprep.subr.mxu0 %v1781_v43 }
 0x6c8   :  { %2643 = vmatpush3.msra.mxu0 %v1781_v43  ;;  %v2071_v43 = vld [vmem:[#allocation26 + $0x10] sm:$0xff] }
 0x6c9   :  { %2644 = vmatprep.subr.mxu0 %v1780_v44 }
 0x6ca   :  { %2645 = vmatpush3.msra.mxu0 %v1780_v44  ;;  %v1986_v44 = vld [vmem:[#allocation25 + $0x18] sm:$0xff] }
 0x6cb   :  { %2646 = vmatprep.subr.mxu0 %v1779_v45 }
 0x6cc   :  { %2647 = vmatpush3.msra.mxu0 %v1779_v45  ;;  %v1985_v45 = vld [vmem:[#allocation25 + $0x10] sm:$0xff] }
 0x6cd   :  { %2648 = vmatprep.subr.mxu0 %v1778_v46 }
 0x6ce   :  { %2649 = vmatpush3.msra.mxu0 %v1778_v46  ;;  %v2070_v46 = vld [vmem:[#allocation26 + $0x8] sm:$0xff] }
 0x6cf   :  { %2664 = vmatprep.subr.mxu0 %v1986_v44 }
 0x77f   :  { %v2608_v19 = vpop.f32.mrf.mxu0 }
 0x780   :  { %v1454_v21 = vadd.f32 %v2608_v19, %v2348_v18  ;;  %v1889_v19 = vld [vmem:[#allocation22 + $0x58] sm:$0xff] }
 0x781   :  { %v1448_v24 = vpop.f32.mrf.mxu0 }
 0x782   :  { %v1458_v26 = vmul.f32 %v1454_v21, %v1200_v20  ;;  %v1449_v29 = vadd.f32 %v2348_v18, %v1448_v24  ;;  %v1638_v18 = vld [vmem:[#allocation13 + $0x40] sm:$0xff]  ;;  %v1887_v21 = vld [vmem:[#allocation22 + $0x48] sm:$0xff]  ;;  %v1886_v24 = vld [vmem:[#allocation22 + $0x40] sm:$0xff] }
 0x783   :  { %2637 = vmatprep.subr.mxu1 %v1638_v18  ;;  %v1888_v20 = vld [vmem:[#allocation22 + $0x50] sm:$0xff] }
 0x784   :  { %v3492_v30 = vadd.f32 %v1458_v26, %v3459_v59  ;;  %v1457_v31 = vmul.f32 %v1449_v29, %v1195_v25  ;;  %2638 = vmatpush3.msra.mxu1 %v1638_v18  ;;  %v2363_v25 = vld [vmem:[#allocation20 + $0x2] ss:$0 sm:$0xff] }
 0x785   :  { %2640 = vmatmul.mubr.msk.f32.vlgmr.msra.gmra.mxu1 %vm432_vm1, %v3412_v23  ;;  %2653 = vmatprep.subr.mxu1 %v1889_v19 }
 0x786   :  { %v3495_v32 = vadd.f32 %v1457_v31, %v3462_v61  ;;  %v1728_v33 = vsel %vm432_vm1, %v3492_v30, 0.0  ;;  %2654 = vmatpush3.msra.mxu1 %v1889_v19  ;;  %v2374_v19 = vld [vmem:[#allocation29] ss:$0 sm:$0xff] }
 0x787   :  { %1729 = vadd.xlane.f32.xlu1 %v1728_v33  ;;  %v2630_v53 = vpop.f32.mrf.mxu0  ;;  %2655 = vmatprep.subr.mxu1 %v1888_v20 }
 0x788   :  { %v1725_v34 = vsel %vm432_vm1, %v3495_v32, 0.0  ;;  %v1634_v56 = vadd.f32 %v2630_v53, %v2354_v54  ;;  %2656 = vmatpush3.msra.mxu1 %v1888_v20 }
 0x789   :  { %1726 = vadd.xlane.f32.xlu0 %v1725_v34  ;;  %v1628_v58 = vpop.f32.mrf.mxu0  ;;  %2657 = vmatprep.subr.mxu1 %v1887_v21 }
 0x78a   :  { %v1629_v2 = vadd.f32 %v2354_v54, %v1628_v58  ;;  %v1772_v4 = vadd.f32 1.0, %v1634_v56  ;;  %2658 = vmatpush3.msra.mxu1 %v1887_v21 }
 0x78b   :  { %2659 = vmatprep.subr.mxu1 %v1886_v24 }
 0x78c   :  { %v1771_v8 = vadd.f32 1.0, %v1629_v2  ;;  %2660 = vmatpush3.msra.mxu1 %v1886_v24 }
 0x810   :  { %v1730_v35 = vpop.xlane.xlu1 %1729 }
 0x811   :  { %v1732_v36 = vmul.f32 0.03125, %v1730_v35 }
 0x812   :  { %v1727_v37 = vpop.xlane.xlu0 %1726 }
 0x813   :  { %v1734_v38 = vsub.f32 %v3492_v30, %v1732_v36  ;;  %v1731_v39 = vmul.f32 0.03125, %v1727_v37 }
 0x815   :  { %v1733_v59 = vsub.f32 %v3495_v32, %v1731_v39  ;;  %v1736_v40 = vmul.f32 %v1734_v38, %v1734_v38 }
 0x817   :  { %v1740_v61 = vsel %vm432_vm1, %v1736_v40, 0.0  ;;  %v1735_v41 = vmul.f32 %v1733_v59, %v1733_v59 }
 0x818   :  { %1741 = vadd.xlane.f32.xlu1 %v1740_v61 }
 0x819   :  { %v1737_v42 = vsel %vm432_vm1, %v1735_v41, 0.0 }
 0x81a   :  { %1738 = vadd.xlane.f32.xlu0 %v1737_v42  ;;  %v2072_v42 = vld [vmem:[#allocation26 + $0x18] sm:$0xff] }
 0x81b   :  { %2675 = vmatprep.subr.mxu1 %v2072_v42 }
 0x8a1   :  { %v1742_v47 = vpop.xlane.xlu1 %1741 }
 0x8a2   :  { %v1744_v48 = vmul.f32 0.03125, %v1742_v47  ;;  %v1984_v47 = vld [vmem:[#allocation25 + $0x8] sm:$0xff] }
 0x8a3   :  { %v1739_v49 = vpop.xlane.xlu0 %1738 }
 0x8a4   :  { %v1746_v50 = vadd.f32 1e-06, %v1744_v48  ;;  %v1743_v51 = vmul.f32 0.03125, %v1739_v49  ;;  %v2069_v48 = vld [vmem:[#allocation26] sm:$0xff] }
 0x8a5   :  { %v1983_v49 = vld [vmem:[#allocation25] sm:$0xff] }
 0x8a6   :  { %2752 = vrsqrt.f32 %v1746_v50  ;;  %v1745_v52 = vadd.f32 1e-06, %v1743_v51  ;;  %v2357_v50 = vld [vmem:[#allocation17 + $0x2] ss:$0 sm:$0xff] }
 0x8a8   :  { %2754 = vrsqrt.f32 %v1745_v52  ;;  %v2368_v52 = vld [vmem:[#allocation23 + $0x2] ss:$0 sm:$0xff] }
 0x8b3   :  { %v2753_v55 = vpop.eup %2752 }
 0x8b4   :  { %v1750_v60 = vmul.f32 %v2753_v55, %v1734_v38 }
 0x8b5   :  { %v2755_v62 = vpop.eup %2754 }
 0x8b6   :  { %v1760_v1 = vmul.f32 %v2361_v57, %v1750_v60  ;;  %v1749_v3 = vmul.f32 %v2755_v62, %v1733_v59 }
 0x8b8   :  { %v1770_v28 = vadd.f32 %v2362_v63, %v1760_v1  ;;  %v1759_v5 = vmul.f32 %v2361_v57, %v1749_v3 }
 0x8ba   :  { %v1769_v7 = vadd.f32 %v2362_v63, %v1759_v5  ;;  %v1774_v9 = vmul.f32 %v1772_v4, %v1770_v28 }
 0x8bc   :  { %v1773_v11 = vmul.f32 %v1771_v8, %v1769_v7  ;;  %v1776_v14 = vadd.f32 %v1774_v9, %v1546_v10  ;;  %v2189_v9 = vld [vmem:[%s3571_s20 + $0x10] sm:$0xff]  ;;  %v2188_v10 = vld [vmem:[%s3571_s20 + $0x8] sm:$0xff] }
 0x8be   :  { %v1775_v13 = vadd.f32 %v1773_v11, %v1541_v12  ;;  %v2187_v11 = vld [vmem:[%s3571_s20] sm:$0xff] }
 0x8c0   :  { %2650 = vmatprep.mubr.msk.f32.mxu0 %vm432_vm1, %v1775_v13 }
 0x8c1   :  { %2651 = vmatmul.mubr.msk.f32.vlgmr.msra.gmra.mxu0 %vm432_vm1, %v1776_v14 }
 0x8c2   :  { %2672 = vmatprep.mubr.msk.f32.mxu0 %vm432_vm1, %v3410_v22  ;;  %2665 = vmatpush3.msra.mxu0 %v1986_v44 }
 0x8c3   :  { %2666 = vmatprep.subr.mxu0 %v1985_v45 }
 0x8c4   :  { %2667 = vmatpush3.msra.mxu0 %v1985_v45 }
 0x8c5   :  { %2668 = vmatprep.subr.mxu0 %v1984_v47 }
 0x8c6   :  { %2669 = vmatpush3.msra.mxu0 %v1984_v47 }
 0x8c7   :  { %2670 = vmatprep.subr.mxu0 %v1983_v49 }
 0x8c8   :  { %2671 = vmatpush3.msra.mxu0 %v1983_v49 }
 0x8c9   :  { %2673 = vmatmul.mubr.msk.f32.vlgmr.msra.gmra.mxu0 %vm432_vm1, %v3412_v23 }
 0x981   :  { %v2652_v26 = vpop.f32.mrf.mxu0 }
 0x982   :  { %v1868_v29 = vadd.f32 %v2652_v26, %v2363_v25 }
 0x983   :  { %v1862_v31 = vpop.f32.mrf.mxu0 }
 0x984   :  { %v2367_v33 = vmul.f32 -1.442695, %v1868_v29  ;;  %v1863_v34 = vadd.f32 %v2363_v25, %v1862_v31 }
 0x986   :  { %2756 = vpow2.f32 %v2367_v33  ;;  %v2366_v35 = vmul.f32 -1.442695, %v1863_v34  ;;  %v2371_v33 = vld [vmem:[#allocation28] ss:$0 sm:$0xff] }
 0x988   :  { %2758 = vpow2.f32 %v2366_v35 }
 0x989   :  { %v2674_v24 = vpop.f32.mrf.mxu0 }
 0x98b   :  { %v2060_v35 = vpop.f32.mrf.mxu0 }
 0x993   :  { %v2757_v36 = vpop.eup %2756 }
 0x994   :  { %v1878_v37 = vadd.f32 1.0, %v2757_v36 }
 0x995   :  { %v2759_v38 = vpop.eup %2758 }
 0x996   :  { %v1877_v39 = vadd.f32 1.0, %v2759_v38  ;;  %2760 = vrcp.f32 %v1878_v37 }
 0x998   :  { %2762 = vrcp.f32 %v1877_v39  ;;  %v2066_v39 = vadd.f32 %v2674_v24, %v2371_v33 }
 0x9a3   :  { %v2761_v59 = vpop.eup %2760 }
 0x9a4   :  { %v1884_v41 = vmul.f32 %v2761_v59, %v1868_v29 }
 0x9a5   :  { %v2763_v40 = vpop.eup %2762 }
 0x9a6   :  { %v1883_v61 = vmul.f32 %v2763_v40, %v1863_v34  ;;  %v2061_v40 = vadd.f32 %v2371_v33, %v2060_v35 }
 0x9a8   :  { %2661 = vmatprep.mubr.msk.f32.mxu1 %vm432_vm1, %v1883_v61 }
 0x9a9   :  { %2662 = vmatmul.mubr.msk.f32.vlgmr.msra.gmra.mxu1 %vm432_vm1, %v1884_v41 }
 0x9aa   :  { %2683 = vmatprep.mubr.msk.f32.mxu1 %vm432_vm1, %v3410_v22  ;;  %2676 = vmatpush3.msra.mxu1 %v2072_v42  ;;  %v2641_v22 = vpop.f32.mrf.mxu1  ;;  %v2377_v42 = vld [vmem:[%s3572_s21] ss:$0 sm:$0xff] }
 0x9ab   :  { %2677 = vmatprep.subr.mxu1 %v2071_v43  ;;  %v1722_v54 = vadd.f32 %v2641_v22, %v2357_v50 }
 0x9ac   :  { %2678 = vmatpush3.msra.mxu1 %v2071_v43  ;;  %v1716_v51 = vpop.f32.mrf.mxu1 }
 0x9ad   :  { %2679 = vmatprep.subr.mxu1 %v2070_v46  ;;  %v1717_v57 = vadd.f32 %v2357_v50, %v1716_v51 }
 0x9ae   :  { %2680 = vmatpush3.msra.mxu1 %v2070_v46 }
 0x9af   :  { %2681 = vmatprep.subr.mxu1 %v2069_v48 }
 0x9b0   :  { %2682 = vmatpush3.msra.mxu1 %v2069_v48 }
 0x9b1   :  { %2684 = vmatmul.mubr.msk.f32.vlgmr.msra.gmra.mxu1 %vm432_vm1, %v3412_v23 }
 0xa69   :  { %v2663_v53 = vpop.f32.mrf.mxu1 }
 0xa6a   :  { %v1976_v55 = vadd.f32 %v2663_v53, %v2368_v52 }
 0xa6b   :  { %v1970_v56 = vpop.f32.mrf.mxu1 }
 0xa6c   :  { %v1980_v58 = vmul.f32 %v1976_v55, %v1722_v54  ;;  %v1971_v60 = vadd.f32 %v2368_v52, %v1970_v56 }
 0xa6e   :  { %v1979_v62 = vmul.f32 %v1971_v60, %v1717_v57  ;;  %v1982_v63 = vadd.f32 %v1980_v58, %v3492_v30 }
 0xa70   :  { %v2158_v0 = vsel %vm432_vm1, %v1982_v63, 0.0  ;;  %v1981_v1 = vadd.f32 %v1979_v62, %v3495_v32  ;;  %v2190_v32 = vld [vmem:[%s3571_s20 + $0x18] sm:$0xff] }
 0xa71   :  { %2159 = vadd.xlane.f32.xlu1 %v2158_v0  ;;  %2686 = vmatprep.subr.mxu0 %v2190_v32  ;;  %v2685_v18 = vpop.f32.mrf.mxu1 }
 0xa72   :  { %v2155_v23 = vsel %vm432_vm1, %v1981_v1, 0.0  ;;  %2687 = vmatpush3.msra.mxu0 %v2190_v32  ;;  %v2152_v20 = vadd.f32 %v2685_v18, %v2374_v19 }
 0xa73   :  { %2156 = vadd.xlane.f32.xlu0 %v2155_v23  ;;  %2688 = vmatprep.subr.mxu0 %v2189_v9  ;;  %v2146_v21 = vpop.f32.mrf.mxu1 }
 0xa74   :  { %2689 = vmatpush3.msra.mxu0 %v2189_v9  ;;  %v2147_v25 = vadd.f32 %v2374_v19, %v2146_v21  ;;  %v2182_v29 = vadd.f32 1.0, %v2152_v20 }
 0xa75   :  { %2690 = vmatprep.subr.mxu0 %v2188_v10 }
 0xa76   :  { %2691 = vmatpush3.msra.mxu0 %v2188_v10  ;;  %v2181_v37 = vadd.f32 1.0, %v2147_v25 }
 0xa77   :  { %2692 = vmatprep.subr.mxu0 %v2187_v11 }
 0xa78   :  { %2693 = vmatpush3.msra.mxu0 %v2187_v11 }
 0xafa   :  { %v2160_v2 = vpop.xlane.xlu1 %2159 }
 0xafb   :  { %v2162_v3 = vmul.f32 0.03125, %v2160_v2 }
 0xafc   :  { %v2157_v4 = vpop.xlane.xlu0 %2156 }
 0xafd   :  { %v2164_v28 = vsub.f32 %v1982_v63, %v2162_v3  ;;  %v2161_v5 = vmul.f32 0.03125, %v2157_v4 }
 0xaff   :  { %v2163_v27 = vsub.f32 %v1981_v1, %v2161_v5  ;;  %v2166_v6 = vmul.f32 %v2164_v28, %v2164_v28 }
 0xb01   :  { %v2170_v7 = vsel %vm432_vm1, %v2166_v6, 0.0  ;;  %v2165_v8 = vmul.f32 %v2163_v27, %v2163_v27 }
 0xb02   :  { %2171 = vadd.xlane.f32.xlu1 %v2170_v7 }
 0xb03   :  { %v2167_v30 = vsel %vm432_vm1, %v2165_v8, 0.0 }
 0xb04   :  { %2168 = vadd.xlane.f32.xlu0 %v2167_v30 }
 0xb8b   :  { %v2172_v12 = vpop.xlane.xlu1 %2171 }
 0xb8c   :  { %v2174_v13 = vmul.f32 0.03125, %v2172_v12 }
 0xb8d   :  { %v2169_v14 = vpop.xlane.xlu0 %2168 }
 0xb8e   :  { %v2176_v15 = vadd.f32 1e-06, %v2174_v13  ;;  %v2173_v16 = vmul.f32 0.03125, %v2169_v14 }
 0xb90   :  { %2764 = vrsqrt.f32 %v2176_v15  ;;  %v2175_v17 = vadd.f32 1e-06, %v2173_v16 }
 0xb92   :  { %2766 = vrsqrt.f32 %v2175_v17 }
 0xb9d   :  { %v2765_v26 = vpop.eup %2764 }
 0xb9e   :  { %v2180_v31 = vmul.f32 %v2765_v26, %v2164_v28 }
 0xb9f   :  { %v2767_v34 = vpop.eup %2766 }
 0xba0   :  { %v2179_v36 = vmul.f32 %v2767_v34, %v2163_v27  ;;  %v2184_v38 = vmul.f32 %v2182_v29, %v2180_v31 }
 0xba2   :  { %v2183_v59 = vmul.f32 %v2181_v37, %v2179_v36  ;;  %v2186_v41 = vadd.f32 %v2184_v38, %v2066_v39 }
 0xba4   :  { %v2185_v61 = vadd.f32 %v2183_v59, %v2061_v40 }
 0xba6   :  { %2694 = vmatprep.mubr.msk.f32.mxu0 %vm432_vm1, %v2185_v61 }
 0xba7   :  { %2695 = vmatmul.mubr.msk.f32.vlgmr.msra.gmra.mxu0 %vm432_vm1, %v2186_v41 }
 0xc67   :  { %v2696_v43 = vpop.f32.mrf.mxu0 }
 0xc68   :  { %v2276_v44 = vadd.f32 %v2696_v43, %v2377_v42 }
 0xc69   :  { %v2270_v45 = vpop.f32.mrf.mxu0 }
 0xc6a   :  { %2280 = vst [vmem:[#allocation31 + $0x8] sm:$0xff] %v2276_v44  ;;  %v2271_v46 = vadd.f32 %v2377_v42, %v2270_v45 }
 0xc6c   :  { %2279 = vst [vmem:[#allocation31] sm:$0xff] %v2271_v46 }
 0xc6d   :  { %3139 = shalt.err (!%p3136_p10)
}
 0xc6e   :  { %2292 = dma.vmem_to_hbm [thread:$0]  %s2287_s11, 256, %s3573_s22, [#allocation4], %s3172_s0, %s3172_s0, %s3173_s23  }
 0xc6f   :  { %3168 = dma.done.wait [#allocation4], 256  }
 0xc70   :  { %3169 = vsyncadd [#allocation4], 4294967040 }
 0xc71   :  { %2296 = vsyncpa [#allocation3], 1 }
 0xc72   :  { %2297 = vsyncpa [#allocation6], 1 }
 0xc73   :  { %2298 = vsyncpa [#allocation9], 1 }
 0xc74   :  { %2299 = vsyncpa [#allocation12], 1 }
 0xc75   :  { %2300 = vsyncpa [#allocation15], 1 }
 0xc76   :  { %2301 = vsyncpa [#allocation18], 1 }
 0xc77   :  { %2302 = vsyncpa [#allocation21], 1 }
 0xc78   :  { %2303 = vsyncpa [#allocation24], 1 }
 0xc79   :  { %2304 = vsyncpa [#allocation27], 1 }
 0xc7a   :  { %2305 = vsyncpa [#allocation30], 1 }
 0xc7b   :  { %2306 = vsyncpa [#allocation4], 1 }

// kernel: tpu_custom_call.1
= control target key start
LH: loop header
LB: loop body
LE: loop exit
PB: predicated region body
PF: predicated region fallthrough
CT: control target
= control target key end

     0   :  { %s3551_s0 = inlined_call_operand.hbm [shape: f32[16,16], index: 0, kind: input, shape index: {}]   ;;  %s3552_s1 = inlined_call_operand.hbm [shape: f32[16,32], index: 1, kind: input, shape index: {}]   ;;  %s3553_s2 = inlined_call_operand.hbm [shape: f32[16,32], index: 2, kind: input, shape index: {}]   ;;  %s3554_s3 = inlined_call_operand.vmem [shape: f32[1,32], index: 3, kind: input, shape index: {}]   ;;  %s3555_s4 = inlined_call_operand.vmem [shape: f32[3,1,32], index: 4, kind: input, shape index: {}]   ;;  %s3556_s5 = inlined_call_operand.hbm [shape: f32[3,1,32], index: 5, kind: input, shape index: {}]   ;;  %s3557_s6 = inlined_call_operand.hbm [shape: f32[3,32,32], index: 6, kind: input, shape index: {}]   ;;  %s3558_s7 = inlined_call_operand.hbm [shape: f32[3,32,32], index: 7, kind: input, shape index: {}]   ;;  %s3559_s8 = inlined_call_operand.hbm [shape: f32[3,32,32], index: 8, kind: input, shape index: {}]   ;;  %s3560_s9 = inlined_call_operand.hbm [shape: f32[3,1,32], index: 9, kind: input, shape index: {}]   ;;  %s3561_s10 = inlined_call_operand.hbm [shape: f32[3,1,32], index: 10, kind: input, shape index: {}]   ;;  %s3562_s11 = inlined_call_operand.hbm [shape: f32[3,1,32], index: 11, kind: input, shape index: {}]   ;;  %s3563_s12 = inlined_call_operand.hbm [shape: f32[3,32,32], index: 12, kind: input, shape index: {}]   ;;  %s3564_s13 = inlined_call_operand.hbm [shape: f32[3,1,32], index: 13, kind: input, shape index: {}]   ;;  %s3565_s14 = inlined_call_operand.hbm [shape: f32[3,32,32], index: 14, kind: input, shape index: {}]   ;;  %s3566_s15 = inlined_call_operand.hbm [shape: f32[3,1,32], index: 15, kind: input, shape index: {}]   ;;  %s3567_s16 = inlined_call_operand.hbm [shape: f32[32,32], index: 16, kind: input, shape index: {}]   ;;  %s3568_s17 = inlined_call_operand.hbm [shape: f32[32,32], index: 17, kind: input, shape index: {}]   ;;  %s3569_s18 = inlined_call_operand.hbm [shape: f32[1,32], index: 18, kind: input, shape index: {}]   ;;  %s3570_s19 = inlined_call_operand.hbm [shape: f32[1,32], index: 19, kind: input, shape index: {}]   ;;  %s3571_s20 = inlined_call_operand.vmem [shape: f32[32,128], index: 20, kind: input, shape index: {}]   ;;  %s3572_s21 = inlined_call_operand.vmem [shape: f32[1,128], index: 21, kind: input, shape index: {}]   ;;  %s3573_s22 = inlined_call_operand.hbm [shape: f32[16,128], index: 22, kind: output, shape index: {}]  }
   0x1   :  { %3575 = sst [smem:[#allocation43_spill]] %s3551_s0 }
   0x2   :  { %3576 = sst [smem:[#allocation44_spill]] %s3552_s1 }
   0x3   :  { %3577 = sst [smem:[#allocation45_spill]] %s3553_s2 }
   0x4   :  { %3578 = sst [smem:[#allocation46_spill]] %s3554_s3 }
   0x5   :  { %3579 = sst [smem:[#allocation47_spill]] %s3555_s4 }
   0x6   :  { %3580 = sst [smem:[#allocation48_spill]] %s3556_s5 }
   0x7   :  { %3581 = sst [smem:[#allocation49_spill]] %s3557_s6 }
   0x8   :  { %27 = vsyncpa [#allocation3], 0 }
   0x9   :  { %28 = vsyncpa [#allocation6], 0 }
   0xa   :  { %29 = vsyncpa [#allocation9], 0 }
   0xb   :  { %30 = vsyncpa [#allocation12], 0 }
   0xc   :  { %31 = vsyncpa [#allocation15], 0 }
   0xd   :  { %32 = vsyncpa [#allocation18], 0 }
   0xe   :  { %33 = vsyncpa [#allocation21], 0 }
   0xf   :  { %34 = vsyncpa [#allocation24], 0 }
  0x10   :  { %35 = vsyncpa [#allocation27], 0 }
  0x11   :  { %36 = vsyncpa [#allocation30], 0 }
  0x12   :  { %37 = vsyncpa [#allocation4], 0  ;;  %s3170_s3 = smov [#allocation5]   ;;  %s3171_s29 = smov [#allocation8]  }
  0x13   :  { %s55_s28 = sshll.u32 %s3170_s3, 4  ;;  %s83_s30 = sshll.u32 %s3171_s29, 4  ;;  %s56_s28 = int_to_ptr.vmem [resolvable:$true] %s55_s28  ;;  %s84_s30 = int_to_ptr.vmem [resolvable:$true] %s83_s30 }
  0x14   :  { %s2776_s4 = scalar_lea.vmem %s56_s28, 256  ;;  %p2781_p1 = scmp.lt.s32.totalorder %s56_s28, %s56_s28 }
  0x15   :  { %p2777_p0 = scmp.ne.s32.totalorder %s56_s28, %s2776_s4  ;;  %p2782_p2 = scmp.lt.s32.totalorder %s2776_s4, %s2776_s4 }
  0x17   :  { %p2783_p3 = por %p2782_p2, %p2781_p1 }
  0x19   :  { %p2784_p4 = pnand %p2783_p3, %p2777_p0 }
  0x1b   :  { %2787 = shalt.err (!%p2784_p4)
}
  0x1c   :  { %s3172_s0 = smov 128   ;;  %s3173_s23 = smov 8  }
  0x1d   :  { %s3582_s24 = sld [smem:[#allocation44_spill]]  ;;  %s2796_s6 = scalar_lea.vmem %s84_s30, 48 }
  0x1e   :  { %p2797_p5 = scmp.ne.s32.totalorder %s84_s30, %s2796_s6  ;;  %s2800_s25 = scalar_lea.vmem %s84_s30, 64 }
  0x1f   :  { %p2801_p6 = scmp.lt.s32.totalorder %s84_s30, %s84_s30  ;;  %p2802_p7 = scmp.lt.s32.totalorder %s2800_s25, %s2796_s6 }
  0x21   :  { %p2803_p8 = por %p2802_p7, %p2801_p6 }
  0x23   :  { %61 = dma.hbm_to_vmem [thread:$0]  %s3582_s24, 256, %s56_s28, [#allocation6], %s3172_s0, %s3172_s0, %s3173_s23  }
  0x24   :  { %p2804_p9 = pnand %p2803_p8, %p2797_p5 }
  0x26   :  { %2807 = shalt.err (!%p2804_p9)
}
  0x27   :  { %s3174_s26 = smov 16   ;;  %s3175_s2 = smov 1  }
  0x28   :  { %s3583_s29 = sld [smem:[#allocation48_spill]]  ;;  %s3176_s4 = smov [#allocation11]  }
  0x29   :  { %s107_s1 = sshll.u32 %s3176_s4, 4  ;;  %s3177_s28 = smov [#allocation14]   ;;  %s108_s1 = int_to_ptr.vmem [resolvable:$true] %s107_s1 }
  0x2a   :  { %s131_s5 = sshll.u32 %s3177_s28, 4  ;;  %s2816_s24 = scalar_lea.vmem %s108_s1, 1536  ;;  %s132_s5 = int_to_ptr.vmem [resolvable:$true] %s131_s5 }
  0x2b   :  { %p2817_p10 = scmp.ne.s32.totalorder %s108_s1, %s2816_s24  ;;  %p2821_p11 = scmp.lt.s32.totalorder %s108_s1, %s108_s1 }
  0x2c   :  { %p2822_p12 = scmp.lt.s32.totalorder %s2816_s24, %s2816_s24 }
  0x2e   :  { %89 = dma.hbm_to_vmem [thread:$0]  %s3583_s29, 48, %s84_s30, [#allocation9], %s3174_s26, %s3174_s26, %s3175_s2  }
  0x2f   :  { %p2823_p13 = por %p2822_p12, %p2821_p11 }
  0x31   :  { %p2824_p0 = pnand %p2823_p13, %p2817_p10 }
  0x33   :  { %2827 = shalt.err (!%p2824_p0)
}
  0x34   :  { %113 = dma.hbm_to_vmem [thread:$0]  %s3558_s7, 1536, %s108_s1, [#allocation12], %s3172_s0, %s3172_s0, %s3173_s23  }
  0x35   :  { %s2836_s30 = scalar_lea.vmem %s132_s5, 48  ;;  %s2840_s27 = scalar_lea.vmem %s132_s5, 64 }
  0x36   :  { %p2837_p1 = scmp.ne.s32.totalorder %s132_s5, %s2836_s30  ;;  %p2841_p2 = scmp.lt.s32.totalorder %s132_s5, %s132_s5 }
  0x37   :  { %p2842_p3 = scmp.lt.s32.totalorder %s2840_s27, %s2836_s30 }
  0x39   :  { %p2843_p4 = por %p2842_p3, %p2841_p2 }
  0x3b   :  { %p2844_p5 = pnand %p2843_p4, %p2837_p1 }
  0x3d   :  { %2847 = shalt.err (!%p2844_p5)
}
  0x3e   :  { %137 = dma.hbm_to_vmem [thread:$0]  %s3560_s9, 48, %s132_s5, [#allocation15], %s3174_s26, %s3174_s26, %s3175_s2  }
  0x3f   :  { %s3178_s4 = smov [#allocation17]   ;;  %s3179_s24 = smov [#allocation20]  }
  0x40   :  { %s155_s28 = sshll.u32 %s3178_s4, 4  ;;  %s179_s6 = sshll.u32 %s3179_s24, 4  ;;  %s156_s28 = int_to_ptr.vmem [resolvable:$true] %s155_s28  ;;  %s180_s6 = int_to_ptr.vmem [resolvable:$true] %s179_s6 }
  0x41   :  { %s2856_s7 = scalar_lea.vmem %s156_s28, 48  ;;  %s2860_s1 = scalar_lea.vmem %s156_s28, 64 }
  0x42   :  { %p2857_p6 = scmp.ne.s32.totalorder %s156_s28, %s2856_s7  ;;  %p2861_p7 = scmp.lt.s32.totalorder %s156_s28, %s156_s28 }
  0x43   :  { %p2862_p8 = scmp.lt.s32.totalorder %s2860_s1, %s2856_s7 }
  0x45   :  { %p2863_p9 = por %p2862_p8, %p2861_p7 }
  0x47   :  { %p2864_p10 = pnand %p2863_p9, %p2857_p6 }
  0x49   :  { %2867 = shalt.err (!%p2864_p10)
}
  0x4a   :  { %161 = dma.hbm_to_vmem [thread:$0]  %s3562_s11, 48, %s156_s28, [#allocation18], %s3174_s26, %s3174_s26, %s3175_s2  }
  0x4b   :  { %s2876_s9 = scalar_lea.vmem %s180_s6, 48  ;;  %s2880_s5 = scalar_lea.vmem %s180_s6, 64 }
  0x4c   :  { %p2877_p11 = scmp.ne.s32.totalorder %s180_s6, %s2876_s9  ;;  %p2881_p12 = scmp.lt.s32.totalorder %s180_s6, %s180_s6 }
  0x4d   :  { %p2882_p13 = scmp.lt.s32.totalorder %s2880_s5, %s2876_s9 }
  0x4f   :  { %p2883_p0 = por %p2882_p13, %p2881_p12 }
  0x51   :  { %p2884_p1 = pnand %p2883_p0, %p2877_p11 }
  0x53   :  { %2887 = shalt.err (!%p2884_p1)
}
  0x54   :  { %185 = dma.hbm_to_vmem [thread:$0]  %s3564_s13, 48, %s180_s6, [#allocation21], %s3174_s26, %s3174_s26, %s3175_s2  }
  0x55   :  { %s3180_s29 = smov [#allocation23]   ;;  %s3181_s24 = smov [#allocation26]  }
  0x56   :  { %s203_s4 = sshll.u32 %s3180_s29, 4  ;;  %s227_s7 = sshll.u32 %s3181_s24, 4  ;;  %s204_s4 = int_to_ptr.vmem [resolvable:$true] %s203_s4  ;;  %s228_s7 = int_to_ptr.vmem [resolvable:$true] %s227_s7 }
  0x57   :  { %s2896_s11 = scalar_lea.vmem %s204_s4, 48  ;;  %s2900_s28 = scalar_lea.vmem %s204_s4, 64 }
  0x58   :  { %p2897_p2 = scmp.ne.s32.totalorder %s204_s4, %s2896_s11  ;;  %p2901_p3 = scmp.lt.s32.totalorder %s204_s4, %s204_s4 }
  0x59   :  { %p2902_p4 = scmp.lt.s32.totalorder %s2900_s28, %s2896_s11 }
  0x5b   :  { %p2903_p5 = por %p2902_p4, %p2901_p3 }
  0x5d   :  { %p2904_p6 = pnand %p2903_p5, %p2897_p2 }
  0x5f   :  { %2907 = shalt.err (!%p2904_p6)
}
  0x60   :  { %209 = dma.hbm_to_vmem [thread:$0]  %s3566_s15, 48, %s204_s4, [#allocation24], %s3174_s26, %s3174_s26, %s3175_s2  }
  0x61   :  { %s2916_s13 = scalar_lea.vmem %s228_s7, 512  ;;  %p2921_p8 = scmp.lt.s32.totalorder %s228_s7, %s228_s7 }
  0x62   :  { %p2917_p7 = scmp.ne.s32.totalorder %s228_s7, %s2916_s13  ;;  %p2922_p9 = scmp.lt.s32.totalorder %s2916_s13, %s2916_s13 }
  0x64   :  { %p2923_p10 = por %p2922_p9, %p2921_p8 }
  0x66   :  { %p2924_p11 = pnand %p2923_p10, %p2917_p7 }
  0x68   :  { %2927 = shalt.err (!%p2924_p11)
}
  0x69   :  { %233 = dma.hbm_to_vmem [thread:$0]  %s3568_s17, 512, %s228_s7, [#allocation27], %s3172_s0, %s3172_s0, %s3173_s23  }
  0x6a   :  { %s3182_s9 = smov [#allocation2]   ;;  %s3183_s27 = smov [#allocation7]  }
  0x6b   :  { %s43_s5 = sshll.u32 %s3182_s9, 4  ;;  %s67_s3 = sshll.u32 %s3183_s27, 4  ;;  %s44_s5 = int_to_ptr.vmem [resolvable:$true] %s43_s5  ;;  %s68_s3 = int_to_ptr.vmem [resolvable:$true] %s67_s3 }
  0x6c   :  { %s2936_s15 = scalar_lea.vmem %s44_s5, 256  ;;  %p2941_p13 = scmp.lt.s32.totalorder %s44_s5, %s44_s5 }
  0x6d   :  { %p2937_p12 = scmp.ne.s32.totalorder %s44_s5, %s2936_s15  ;;  %p2942_p0 = scmp.lt.s32.totalorder %s2936_s15, %s2936_s15 }
  0x6f   :  { %p2943_p1 = por %p2942_p0, %p2941_p13 }
  0x71   :  { %p2944_p2 = pnand %p2943_p1, %p2937_p12 }
  0x73   :  { %2947 = shalt.err (!%p2944_p2)
}
  0x74   :  { %s3584_s24 = sld [smem:[#allocation43_spill]]  ;;  %s2956_s17 = scalar_lea.vmem %s68_s3, 256 }
  0x75   :  { %p2957_p3 = scmp.ne.s32.totalorder %s68_s3, %s2956_s17  ;;  %p2961_p4 = scmp.lt.s32.totalorder %s68_s3, %s68_s3 }
  0x76   :  { %p2962_p5 = scmp.lt.s32.totalorder %s2956_s17, %s2956_s17 }
  0x78   :  { %p2963_p6 = por %p2962_p5, %p2961_p4 }
  0x7a   :  { %49 = dma.hbm_to_vmem [thread:$0]  %s3584_s24, 256, %s44_s5, [#allocation3], %s3172_s0, %s3172_s0, %s3173_s23  }
  0x7b   :  { %p2964_p7 = pnand %p2963_p6, %p2957_p3 }
  0x7d   :  { %2967 = shalt.err (!%p2964_p7)
}
  0x7e   :  { %s3585_s28 = sld [smem:[#allocation45_spill]]  ;;  %s3184_s1 = smov [#allocation10]  }
  0x7f   :  { %s95_s25 = sshll.u32 %s3184_s1, 4  ;;  %s3185_s13 = smov [#allocation13]   ;;  %s96_s25 = int_to_ptr.vmem [resolvable:$true] %s95_s25 }
  0x80   :  { %s119_s6 = sshll.u32 %s3185_s13, 4  ;;  %s2976_s30 = scalar_lea.vmem %s96_s25, 1536  ;;  %s120_s6 = int_to_ptr.vmem [resolvable:$true] %s119_s6 }
  0x81   :  { %p2977_p8 = scmp.ne.s32.totalorder %s96_s25, %s2976_s30  ;;  %p2981_p9 = scmp.lt.s32.totalorder %s96_s25, %s96_s25 }
  0x82   :  { %p2982_p10 = scmp.lt.s32.totalorder %s2976_s30, %s2976_s30 }
  0x84   :  { %73 = dma.hbm_to_vmem [thread:$0]  %s3585_s28, 256, %s68_s3, [#allocation6], %s3172_s0, %s3172_s0, %s3173_s23  }
  0x85   :  { %p2983_p11 = por %p2982_p10, %p2981_p9 }
  0x87   :  { %p2984_p12 = pnand %p2983_p11, %p2977_p8 }
  0x89   :  { %2987 = shalt.err (!%p2984_p12)
}
  0x8a   :  { %s3586_s27 = sld [smem:[#allocation49_spill]]  ;;  %s2996_s3 = scalar_lea.vmem %s120_s6, 1536 }
  0x8b   :  { %p2997_p13 = scmp.ne.s32.totalorder %s120_s6, %s2996_s3  ;;  %p3001_p0 = scmp.lt.s32.totalorder %s120_s6, %s120_s6 }
  0x8c   :  { %p3002_p1 = scmp.lt.s32.totalorder %s2996_s3, %s2996_s3 }
  0x8e   :  { %p3003_p2 = por %p3002_p1, %p3001_p0 }
  0x90   :  { %101 = dma.hbm_to_vmem [thread:$0]  %s3586_s27, 1536, %s96_s25, [#allocation9], %s3172_s0, %s3172_s0, %s3173_s23  }
  0x91   :  { %p3004_p3 = pnand %p3003_p2, %p2997_p13 }
  0x93   :  { %3007 = shalt.err (!%p3004_p3)
}
  0x94   :  { %125 = dma.hbm_to_vmem [thread:$0]  %s3559_s8, 1536, %s120_s6, [#allocation12], %s3172_s0, %s3172_s0, %s3173_s23  }
  0x95   :  { %s3186_s4 = smov [#allocation16]   ;;  %s3187_s17 = smov [#allocation19]  }
  0x96   :  { %s143_s24 = sshll.u32 %s3186_s4, 4  ;;  %s167_s7 = sshll.u32 %s3187_s17, 4  ;;  %s144_s24 = int_to_ptr.vmem [resolvable:$true] %s143_s24  ;;  %s168_s7 = int_to_ptr.vmem [resolvable:$true] %s167_s7 }
  0x97   :  { %s3016_s11 = scalar_lea.vmem %s144_s24, 48  ;;  %s3020_s28 = scalar_lea.vmem %s144_s24, 64 }
  0x98   :  { %p3017_p4 = scmp.ne.s32.totalorder %s144_s24, %s3016_s11  ;;  %p3021_p5 = scmp.lt.s32.totalorder %s144_s24, %s144_s24 }
  0x99   :  { %p3022_p6 = scmp.lt.s32.totalorder %s3020_s28, %s3016_s11 }
  0x9b   :  { %p3023_p7 = por %p3022_p6, %p3021_p5 }
  0x9d   :  { %p3024_p8 = pnand %p3023_p7, %p3017_p4 }
  0x9f   :  { %3027 = shalt.err (!%p3024_p8)
}
  0xa0   :  { %149 = dma.hbm_to_vmem [thread:$0]  %s3561_s10, 48, %s144_s24, [#allocation15], %s3174_s26, %s3174_s26, %s3175_s2  }
  0xa1   :  { %s3036_s8 = scalar_lea.vmem %s168_s7, 1536  ;;  %p3041_p10 = scmp.lt.s32.totalorder %s168_s7, %s168_s7 }
  0xa2   :  { %p3037_p9 = scmp.ne.s32.totalorder %s168_s7, %s3036_s8  ;;  %p3042_p11 = scmp.lt.s32.totalorder %s3036_s8, %s3036_s8 }
  0xa4   :  { %p3043_p12 = por %p3042_p11, %p3041_p10 }
  0xa6   :  { %p3044_p13 = pnand %p3043_p12, %p3037_p9 }
  0xa8   :  { %3047 = shalt.err (!%p3044_p13)
}
  0xa9   :  { %173 = dma.hbm_to_vmem [thread:$0]  %s3563_s12, 1536, %s168_s7, [#allocation18], %s3172_s0, %s3172_s0, %s3173_s23  }
  0xaa   :  { %s3188_s30 = smov [#allocation22]   ;;  %s3189_s5 = smov [#allocation25]  }
  0xab   :  { %s191_s9 = sshll.u32 %s3188_s30, 4  ;;  %s215_s27 = sshll.u32 %s3189_s5, 4  ;;  %s192_s9 = int_to_ptr.vmem [resolvable:$true] %s191_s9  ;;  %s216_s27 = int_to_ptr.vmem [resolvable:$true] %s215_s27 }
  0xac   :  { %s3056_s10 = scalar_lea.vmem %s192_s9, 1536  ;;  %p3061_p1 = scmp.lt.s32.totalorder %s192_s9, %s192_s9 }
  0xad   :  { %p3057_p0 = scmp.ne.s32.totalorder %s192_s9, %s3056_s10  ;;  %p3062_p2 = scmp.lt.s32.totalorder %s3056_s10, %s3056_s10 }
  0xaf   :  { %p3063_p3 = por %p3062_p2, %p3061_p1 }
  0xb1   :  { %p3064_p4 = pnand %p3063_p3, %p3057_p0 }
  0xb3   :  { %3067 = shalt.err (!%p3064_p4)
}
  0xb4   :  { %197 = dma.hbm_to_vmem [thread:$0]  %s3565_s14, 1536, %s192_s9, [#allocation21], %s3172_s0, %s3172_s0, %s3173_s23  }
  0xb5   :  { %s3076_s12 = scalar_lea.vmem %s216_s27, 512  ;;  %p3081_p6 = scmp.lt.s32.totalorder %s216_s27, %s216_s27 }
  0xb6   :  { %p3077_p5 = scmp.ne.s32.totalorder %s216_s27, %s3076_s12  ;;  %p3082_p7 = scmp.lt.s32.totalorder %s3076_s12, %s3076_s12 }
  0xb8   :  { %p3083_p8 = por %p3082_p7, %p3081_p6 }
  0xba   :  { %p3084_p9 = pnand %p3083_p8, %p3077_p5 }
  0xbc   :  { %3087 = shalt.err (!%p3084_p9)
}
  0xbd   :  { %221 = dma.hbm_to_vmem [thread:$0]  %s3567_s16, 512, %s216_s27, [#allocation24], %s3172_s0, %s3172_s0, %s3173_s23  }
  0xbe   :  { %s3190_s29 = smov [#allocation28]   ;;  %s3191_s24 = smov [#allocation29]  }
  0xbf   :  { %s240_s4 = sshll.u32 %s3190_s29, 4  ;;  %s250_s17 = sshll.u32 %s3191_s24, 4  ;;  %s241_s4 = int_to_ptr.vmem [resolvable:$true] %s240_s4  ;;  %s251_s17 = int_to_ptr.vmem [resolvable:$true] %s250_s17 }
  0xc0   :  { %s3096_s14 = scalar_lea.vmem %s241_s4, 16  ;;  %s3100_s7 = scalar_lea.vmem %s241_s4, 32 }
  0xc1   :  { %p3097_p10 = scmp.ne.s32.totalorder %s241_s4, %s3096_s14  ;;  %p3101_p11 = scmp.lt.s32.totalorder %s241_s4, %s241_s4 }
  0xc2   :  { %p3102_p12 = scmp.lt.s32.totalorder %s3100_s7, %s3096_s14 }
  0xc4   :  { %p3103_p13 = por %p3102_p12, %p3101_p11 }
  0xc6   :  { %p3104_p0 = pnand %p3103_p13, %p3097_p10 }
  0xc8   :  { %3107 = shalt.err (!%p3104_p0)
}
  0xc9   :  { %243 = dma.hbm_to_vmem [thread:$0]  %s3569_s18, 16, %s241_s4, [#allocation27]  }
  0xca   :  { %s3116_s1 = scalar_lea.vmem %s251_s17, 16  ;;  %s3120_s16 = scalar_lea.vmem %s251_s17, 32 }
  0xcb   :  { %p3117_p1 = scmp.ne.s32.totalorder %s251_s17, %s3116_s1  ;;  %p3121_p2 = scmp.lt.s32.totalorder %s251_s17, %s251_s17 }
  0xcc   :  { %p3122_p3 = scmp.lt.s32.totalorder %s3120_s16, %s3116_s1 }
  0xce   :  { %p3123_p4 = por %p3122_p3, %p3121_p2 }
  0xd0   :  { %p3124_p5 = pnand %p3123_p4, %p3117_p1 }
  0xd2   :  { %3127 = shalt.err (!%p3124_p5)
}
  0xd3   :  { %253 = dma.hbm_to_vmem [thread:$0]  %s3570_s19, 16, %s251_s17, [#allocation30]  }
  0xd4   :  { %3148 = dma.done.wait [#allocation3], 256  }
  0xd5   :  { %3149 = vsyncadd [#allocation3], 4294967040 }
  0xd6   :  { %3150 = dma.done.wait [#allocation6], 512  }
  0xd7   :  { %3151 = vsyncadd [#allocation6], 4294966784 }
  0xd8   :  { %3152 = dma.done.wait [#allocation9], 1584  }
  0xd9   :  { %3153 = vsyncadd [#allocation9], 4294965712 }
  0xda   :  { %3154 = dma.done.wait [#allocation12], 3072  }
  0xdb   :  { %3155 = vsyncadd [#allocation12], 4294964224 }
  0xdc   :  { %3156 = dma.done.wait [#allocation15], 96  }
  0xdd   :  { %3157 = vsyncadd [#allocation15], 4294967200 }
  0xde   :  { %3158 = dma.done.wait [#allocation18], 1584  }
  0xdf   :  { %3159 = vsyncadd [#allocation18], 4294965712 }
  0xe0   :  { %3160 = dma.done.wait [#allocation21], 1584  }
  0xe1   :  { %3161 = vsyncadd [#allocation21], 4294965712 }
  0xe2   :  { %3162 = dma.done.wait [#allocation24], 560  }
  0xe3   :  { %3163 = vsyncadd [#allocation24], 4294966736 }
  0xe4   :  { %3164 = dma.done.wait [#allocation27], 528  }
  0xe5   :  { %3165 = vsyncadd [#allocation27], 4294966768 }
  0xe6   :  { %3166 = dma.done.wait [#allocation30], 16  }
  0xe7   :  { %3167 = vsyncadd [#allocation30], 4294967280  ;;  %vm339_vm0 = vcmask 130048   ;;  %v331_v0 = vld [vmem:[#allocation7 + $0x8] sm:$0xff]  ;;  %v330_v1 = vld [vmem:[#allocation7] sm:$0xff]  ;;  %vm432_vm1 = vcmask 261120  }
  0xe8   :  { %v328_v2 = vld [vmem:[#allocation2] sm:$0xff]  ;;  %2492 = vmatprep.subr.mxu0 %v331_v0  ;;  %v329_v3 = vld [vmem:[#allocation2 + $0x8] sm:$0xff]  ;;  %v312_v9 = vld [vmem:[#allocation5] sm:$0xff]  ;;  %s3587_s13 = sld [smem:[#allocation46_spill]]  ;;  %s3192_s7 = smov [#allocation31]  }
  0xe9   :  { %2496 = vmatprep.mubr.msk.f32.mxu0 %vm339_vm0, %v328_v2  ;;  %2493 = vmatpush3.msra.mxu0 %v331_v0  ;;  %v517_v4 = vld [vmem:[#allocation11 + $0x18] sm:$0xff]  ;;  %v516_v5 = vld [vmem:[#allocation11 + $0x10] sm:$0xff]  ;;  %v515_v7 = vld [vmem:[#allocation11 + $0x8] sm:$0xff]  ;;  %v2307_v12 = vmul.f32 -1.442695, %v312_v9  ;;  %s3588_s9 = sld [smem:[#allocation47_spill]] }
  0xea   :  { %2494 = vmatprep.subr.mxu0 %v330_v1  ;;  %v424_v6 = vld [vmem:[#allocation10 + $0x18] sm:$0xff]  ;;  %v423_v8 = vld [vmem:[#allocation10 + $0x10] sm:$0xff]  ;;  %v422_v10 = vld [vmem:[#allocation10 + $0x8] sm:$0xff]  ;;  %s2286_s11 = sshll.u32 %s3192_s7, 4  ;;  %s2287_s11 = int_to_ptr.vmem [resolvable:$true] %s2286_s11 }
  0xeb   :  { %2495 = vmatpush3.msra.mxu0 %v330_v1  ;;  %2499 = vmatprep.subr.mxu1 %v424_v6  ;;  %v313_v11 = vld [vmem:[#allocation5 + $0x8] sm:$0xff]  ;;  %2720 = vpow2.f32 %v2307_v12  ;;  %v739_v42 = vld [vmem:[#allocation19 + $0x10] sm:$0xff]  ;;  %v738_v43 = vld [vmem:[#allocation19 + $0x8] sm:$0xff]  ;;  %s3128_s28 = scalar_lea.vmem %s2287_s11, 256  ;;  %p3133_p7 = scmp.lt.s32.totalorder %s2287_s11, %s2287_s11 }
  0xec   :  { %2497 = vmatmul.mubr.msk.f32.vlgmr.msra.gmra.mxu0 %vm339_vm0, %v329_v3  ;;  %2510 = vmatprep.subr.mxu0 %v517_v4  ;;  %v2308_v13 = vmul.f32 -1.442695, %v313_v11  ;;  %v514_v14 = vld [vmem:[#allocation11] sm:$0xff]  ;;  %v737_v44 = vld [vmem:[#allocation19] sm:$0xff]  ;;  %v2322_v59 = vld [vmem:[#allocation8] ss:$0 sm:$0xff]  ;;  %p3129_p6 = scmp.ne.s32.totalorder %s2287_s11, %s3128_s28  ;;  %p3134_p8 = scmp.lt.s32.totalorder %s3128_s28, %s3128_s28 }
  0xed   :  { %2511 = vmatpush3.msra.mxu0 %v517_v4  ;;  %2500 = vmatpush3.msra.mxu1 %v424_v6  ;;  %v421_v15 = vld [vmem:[#allocation10] sm:$0xff] }
  0xee   :  { %2512 = vmatprep.subr.mxu0 %v516_v5  ;;  %2501 = vmatprep.subr.mxu1 %v423_v8  ;;  %2722 = vpow2.f32 %v2308_v13  ;;  %v2309_v25 = vld [vmem:[%s3587_s13] ss:$0 sm:$0xff]  ;;  %v740_v41 = vld [vmem:[#allocation19 + $0x18] sm:$0xff]  ;;  %v2312_v60 = vld [vmem:[#allocation14] ss:$0 sm:$0xff]  ;;  %p3135_p9 = por %p3134_p8, %p3133_p7 }
  0xef   :  { %2513 = vmatpush3.msra.mxu0 %v516_v5  ;;  %2502 = vmatpush3.msra.mxu1 %v423_v8  ;;  %v2315_v52 = vld [vmem:[#allocation16] ss:$0 sm:$0xff]  ;;  %v2321_v57 = vld [vmem:[%s3588_s9] ss:$0 sm:$0xff]  ;;  %v603_v13 = vld [vmem:[#allocation13 + $0x18] sm:$0xff] }
  0xf0   :  { %2514 = vmatprep.subr.mxu0 %v515_v7  ;;  %2503 = vmatprep.subr.mxu1 %v422_v10  ;;  %p3136_p10 = pnand %p3135_p9, %p3129_p6 }
  0xf1   :  { %2515 = vmatpush3.msra.mxu0 %v515_v7  ;;  %2504 = vmatpush3.msra.mxu1 %v422_v10 }
  0xf2   :  { %2516 = vmatprep.subr.mxu0 %v514_v14  ;;  %2505 = vmatprep.subr.mxu1 %v421_v15 }
  0xf3   :  { %2517 = vmatpush3.msra.mxu0 %v514_v14  ;;  %2506 = vmatpush3.msra.mxu1 %v421_v15  ;;  %v602_v14 = vld [vmem:[#allocation13 + $0x10] sm:$0xff]  ;;  %v601_v15 = vld [vmem:[#allocation13 + $0x8] sm:$0xff] }
  0xf4   :  { %2532 = vmatprep.subr.mxu0 %v740_v41  ;;  %2521 = vmatprep.subr.mxu1 %v603_v13 }
  0xf8   :  { %v2721_v16 = vpop.eup %2720 }
  0xf9   :  { %v320_v18 = vadd.f32 1.0, %v2721_v16  ;;  %v600_v16 = vld [vmem:[#allocation13] sm:$0xff] }
  0xfb   :  { %v2723_v17 = vpop.eup %2722  ;;  %2724 = vrcp.f32 %v320_v18  ;;  %v845_v18 = vld [vmem:[#allocation22 + $0x10] sm:$0xff] }
  0xfc   :  { %v321_v19 = vadd.f32 1.0, %v2723_v17  ;;  %v846_v17 = vld [vmem:[#allocation22 + $0x18] sm:$0xff] }
  0xfe   :  { %2726 = vrcp.f32 %v321_v19  ;;  %v844_v19 = vld [vmem:[#allocation22 + $0x8] sm:$0xff] }
 0x108   :  { %v2725_v20 = vpop.eup %2724 }
 0x109   :  { %v3410_v22 = vmul.f32 %v2725_v20, %v312_v9  ;;  %v843_v20 = vld [vmem:[#allocation22] sm:$0xff] }
 0x10b   :  { %v2727_v21 = vpop.eup %2726  ;;  %2518 = vmatprep.mubr.msk.f32.mxu0 %vm432_vm1, %v3410_v22  ;;  %2507 = vmatprep.mubr.msk.f32.mxu1 %vm432_vm1, %v3410_v22 }
 0x10c   :  { %v3412_v23 = vmul.f32 %v2727_v21, %v313_v11  ;;  %v2323_v21 = vld [vmem:[#allocation20] ss:$0 sm:$0xff] }
 0x10e   :  { %2519 = vmatmul.mubr.msk.f32.vlgmr.msra.gmra.mxu0 %vm432_vm1, %v3412_v23  ;;  %2508 = vmatmul.mubr.msk.f32.vlgmr.msra.gmra.mxu1 %vm432_vm1, %v3412_v23 }
 0x10f   :  { %2529 = vmatprep.mubr.msk.f32.mxu1 %vm432_vm1, %v3410_v22  ;;  %2533 = vmatpush3.msra.mxu0 %v740_v41  ;;  %v1030_v41 = vld [vmem:[#allocation11 + $0x30] sm:$0xff] }
 0x110   :  { %2534 = vmatprep.subr.mxu0 %v739_v42  ;;  %2522 = vmatpush3.msra.mxu1 %v603_v13 }
 0x111   :  { %2535 = vmatpush3.msra.mxu0 %v739_v42  ;;  %2523 = vmatprep.subr.mxu1 %v602_v14  ;;  %v943_v42 = vld [vmem:[#allocation10 + $0x38] sm:$0xff] }
 0x112   :  { %2536 = vmatprep.subr.mxu0 %v738_v43  ;;  %2524 = vmatpush3.msra.mxu1 %v602_v14 }
 0x113   :  { %2537 = vmatpush3.msra.mxu0 %v738_v43  ;;  %2525 = vmatprep.subr.mxu1 %v601_v15  ;;  %v942_v43 = vld [vmem:[#allocation10 + $0x30] sm:$0xff] }
 0x114   :  { %2538 = vmatprep.subr.mxu0 %v737_v44  ;;  %2526 = vmatpush3.msra.mxu1 %v601_v15 }
 0x115   :  { %2539 = vmatpush3.msra.mxu0 %v737_v44  ;;  %2527 = vmatprep.subr.mxu1 %v600_v16  ;;  %v1029_v44 = vld [vmem:[#allocation11 + $0x28] sm:$0xff] }
 0x116   :  { %2528 = vmatpush3.msra.mxu1 %v600_v16  ;;  %2554 = vmatprep.subr.mxu0 %v943_v42 }
 0x117   :  { %2530 = vmatmul.mubr.msk.f32.vlgmr.msra.gmra.mxu1 %vm432_vm1, %v3412_v23  ;;  %2543 = vmatprep.subr.mxu1 %v846_v17 }
 0x118   :  { %2544 = vmatpush3.msra.mxu1 %v846_v17 }
 0x119   :  { %2545 = vmatprep.subr.mxu1 %v845_v18 }
 0x11a   :  { %2546 = vmatpush3.msra.mxu1 %v845_v18 }
 0x11b   :  { %2547 = vmatprep.subr.mxu1 %v844_v19 }
 0x11c   :  { %2548 = vmatpush3.msra.mxu1 %v844_v19  ;;  %v2334_v19 = vld [vmem:[#allocation16 + $0x1] ss:$0 sm:$0xff] }
 0x11d   :  { %2549 = vmatprep.subr.mxu1 %v843_v20 }
 0x11e   :  { %2550 = vmatpush3.msra.mxu1 %v843_v20 }
 0x1ac   :  { %v2498_v24 = vpop.f32.mrf.mxu0 }
 0x1ad   :  { %v3429_v28 = vadd.f32 %v2498_v24, %v2309_v25 }
 0x1ae   :  { %v412_v26 = vpop.f32.mrf.mxu0 }
 0x1af   :  { %v3427_v27 = vadd.f32 %v2309_v25, %v412_v26  ;;  %v689_v30 = vsel %vm432_vm1, %v3429_v28, 0.0 }
 0x1b1   :  { %v686_v29 = vsel %vm432_vm1, %v3427_v27, 0.0 }
 0x1b2   :  { %687 = vadd.xlane.f32.xlu0 %v686_v29 }
 0x1b6   :  { %690 = vadd.xlane.f32.xlu0 %v689_v30 }
 0x1ce   :  { %v2520_v51 = vpop.f32.mrf.mxu0  ;;  %v2509_v54 = vpop.f32.mrf.mxu1 }
 0x1cf   :  { %v597_v1 = vadd.f32 %v2520_v51, %v2315_v52  ;;  %v511_v11 = vadd.f32 %v2509_v54, %v2312_v60  ;;  %v2328_v51 = vld [vmem:[#allocation23] ss:$0 sm:$0xff] }
 0x1d0   :  { %v591_v53 = vpop.f32.mrf.mxu0  ;;  %v505_v61 = vpop.f32.mrf.mxu1 }
 0x1d1   :  { %v592_v55 = vadd.f32 %v2315_v52, %v591_v53  ;;  %v506_v4 = vadd.f32 %v2312_v60, %v505_v61  ;;  %v732_v8 = vadd.f32 1.0, %v597_v1 }
 0x1d3   :  { %v731_v63 = vadd.f32 1.0, %v592_v55 }
 0x23b   :  { %v688_v31 = vpop.xlane.xlu0 %687 }
 0x23c   :  { %v693_v32 = vmul.f32 0.03125, %v688_v31 }
 0x23e   :  { %v695_v33 = vsub.f32 %v3427_v27, %v693_v32 }
 0x23f   :  { %v691_v34 = vpop.xlane.xlu0 %690 }
 0x240   :  { %v694_v35 = vmul.f32 0.03125, %v691_v34  ;;  %v697_v36 = vmul.f32 %v695_v33, %v695_v33 }
 0x242   :  { %v696_v37 = vsub.f32 %v3429_v28, %v694_v35  ;;  %v699_v38 = vsel %vm432_vm1, %v697_v36, 0.0 }
 0x243   :  { %700 = vadd.xlane.f32.xlu1 %v699_v38 }
 0x244   :  { %v698_v39 = vmul.f32 %v696_v37, %v696_v37 }
 0x246   :  { %v702_v40 = vsel %vm432_vm1, %v698_v39, 0.0 }
 0x247   :  { %703 = vadd.xlane.f32.xlu1 %v702_v40  ;;  %v1031_v40 = vld [vmem:[#allocation11 + $0x38] sm:$0xff] }
 0x248   :  { %2565 = vmatprep.subr.mxu1 %v1031_v40 }
 0x2cc   :  { %v701_v45 = vpop.xlane.xlu1 %700 }
 0x2cd   :  { %v705_v46 = vmul.f32 0.03125, %v701_v45  ;;  %v941_v45 = vld [vmem:[#allocation10 + $0x28] sm:$0xff] }
 0x2cf   :  { %v707_v47 = vadd.f32 1e-06, %v705_v46  ;;  %v1028_v46 = vld [vmem:[#allocation11 + $0x20] sm:$0xff] }
 0x2d0   :  { %v704_v48 = vpop.xlane.xlu1 %703 }
 0x2d1   :  { %2728 = vrsqrt.f32 %v707_v47  ;;  %v706_v49 = vmul.f32 0.03125, %v704_v48  ;;  %v940_v47 = vld [vmem:[#allocation10 + $0x20] sm:$0xff]  ;;  %v2531_v48 = vpop.f32.mrf.mxu1 }
 0x2d3   :  { %v708_v50 = vadd.f32 1e-06, %v706_v49  ;;  %v2318_v49 = vld [vmem:[#allocation17] ss:$0 sm:$0xff] }
 0x2d4   :  { %v683_v53 = vadd.f32 %v2531_v48, %v2318_v49  ;;  %v1119_v48 = vld [vmem:[#allocation13 + $0x38] sm:$0xff] }
 0x2d5   :  { %2730 = vrsqrt.f32 %v708_v50  ;;  %v677_v50 = vpop.f32.mrf.mxu1 }
 0x2de   :  { %v2729_v56 = vpop.eup %2728 }
 0x2df   :  { %v711_v58 = vmul.f32 %v2729_v56, %v695_v33  ;;  %v678_v56 = vadd.f32 %v2318_v49, %v677_v50  ;;  %v1118_v49 = vld [vmem:[#allocation13 + $0x30] sm:$0xff]  ;;  %v1117_v50 = vld [vmem:[#allocation13 + $0x28] sm:$0xff] }
 0x2e1   :  { %v720_v62 = vmul.f32 %v2321_v57, %v711_v58 }
 0x2e2   :  { %v2731_v0 = vpop.eup %2730 }
 0x2e3   :  { %v712_v2 = vmul.f32 %v2731_v0, %v696_v37  ;;  %v729_v3 = vadd.f32 %v2322_v59, %v720_v62 }
 0x2e5   :  { %v721_v5 = vmul.f32 %v2321_v57, %v712_v2  ;;  %v733_v6 = vmul.f32 %v731_v63, %v729_v3 }
 0x2e7   :  { %v730_v7 = vadd.f32 %v2322_v59, %v721_v5  ;;  %v735_v9 = vadd.f32 %v733_v6, %v506_v4 }
 0x2e9   :  { %v734_v10 = vmul.f32 %v732_v8, %v730_v7  ;;  %2540 = vmatprep.mubr.msk.f32.mxu0 %vm432_vm1, %v735_v9  ;;  %v1259_v8 = vld [vmem:[#allocation19 + $0x38] sm:$0xff]  ;;  %v1258_v9 = vld [vmem:[#allocation19 + $0x30] sm:$0xff] }
 0x2eb   :  { %v736_v12 = vadd.f32 %v734_v10, %v511_v11  ;;  %v1257_v10 = vld [vmem:[#allocation19 + $0x28] sm:$0xff]  ;;  %v1256_v11 = vld [vmem:[#allocation19 + $0x20] sm:$0xff] }
 0x2ed   :  { %2541 = vmatmul.mubr.msk.f32.vlgmr.msra.gmra.mxu0 %vm432_vm1, %v736_v12 }
 0x2ee   :  { %2562 = vmatprep.mubr.msk.f32.mxu0 %vm432_vm1, %v3410_v22  ;;  %2555 = vmatpush3.msra.mxu0 %v943_v42 }
 0x2ef   :  { %2556 = vmatprep.subr.mxu0 %v942_v43 }
 0x2f0   :  { %2557 = vmatpush3.msra.mxu0 %v942_v43 }
 0x2f1   :  { %2558 = vmatprep.subr.mxu0 %v941_v45 }
 0x2f2   :  { %2559 = vmatpush3.msra.mxu0 %v941_v45 }
 0x2f3   :  { %2560 = vmatprep.subr.mxu0 %v940_v47 }
 0x2f4   :  { %2561 = vmatpush3.msra.mxu0 %v940_v47 }
 0x2f5   :  { %2563 = vmatmul.mubr.msk.f32.vlgmr.msra.gmra.mxu0 %vm432_vm1, %v3412_v23  ;;  %2576 = vmatprep.subr.mxu0 %v1119_v48 }
 0x2f6   :  { %2584 = vmatprep.mubr.msk.f32.mxu0 %vm432_vm1, %v3410_v22  ;;  %2577 = vmatpush3.msra.mxu0 %v1119_v48 }
 0x2f7   :  { %2578 = vmatprep.subr.mxu0 %v1118_v49 }
 0x2f8   :  { %2579 = vmatpush3.msra.mxu0 %v1118_v49 }
 0x2f9   :  { %2580 = vmatprep.subr.mxu0 %v1117_v50 }
 0x2fa   :  { %2581 = vmatpush3.msra.mxu0 %v1117_v50 }
 0x3ad   :  { %v2542_v24 = vpop.f32.mrf.mxu0 }
 0x3ae   :  { %v826_v25 = vadd.f32 %v2542_v24, %v2323_v21  ;;  %v2341_v24 = vld [vmem:[%s3588_s9 + $0x1] ss:$0 sm:$0xff] }
 0x3af   :  { %v820_v26 = vpop.f32.mrf.mxu0 }
 0x3b0   :  { %v2327_v29 = vmul.f32 -1.442695, %v826_v25  ;;  %v821_v30 = vadd.f32 %v2323_v21, %v820_v26 }
 0x3b2   :  { %2732 = vpow2.f32 %v2327_v29  ;;  %v2326_v31 = vmul.f32 -1.442695, %v821_v30 }
 0x3b4   :  { %2734 = vpow2.f32 %v2326_v31 }
 0x3b5   :  { %v2564_v31 = vpop.f32.mrf.mxu0 }
 0x3bf   :  { %v2733_v32 = vpop.eup %2732 }
 0x3c0   :  { %v836_v33 = vadd.f32 1.0, %v2733_v32 }
 0x3c1   :  { %v2735_v34 = vpop.eup %2734 }
 0x3c2   :  { %v835_v35 = vadd.f32 1.0, %v2735_v34  ;;  %2736 = vrcp.f32 %v836_v33 }
 0x3c4   :  { %2738 = vrcp.f32 %v835_v35 }
 0x3cf   :  { %v2737_v36 = vpop.eup %2736 }
 0x3d0   :  { %v842_v39 = vmul.f32 %v2737_v36, %v826_v25 }
 0x3d1   :  { %v2739_v37 = vpop.eup %2738 }
 0x3d2   :  { %v841_v38 = vmul.f32 %v2739_v37, %v821_v30  ;;  %v2342_v30 = vld [vmem:[#allocation8 + $0x1] ss:$0 sm:$0xff] }
 0x3d4   :  { %2551 = vmatprep.mubr.msk.f32.mxu1 %vm432_vm1, %v841_v38  ;;  %v2331_v38 = vld [vmem:[#allocation14 + $0x1] ss:$0 sm:$0xff] }
 0x3d5   :  { %2552 = vmatmul.mubr.msk.f32.vlgmr.msra.gmra.mxu1 %vm432_vm1, %v842_v39  ;;  %v1018_v39 = vpop.f32.mrf.mxu0  ;;  %v1024_v43 = vadd.f32 %v2564_v31, %v2331_v38 }
 0x3d6   :  { %2573 = vmatprep.mubr.msk.f32.mxu1 %vm432_vm1, %v3410_v22  ;;  %2566 = vmatpush3.msra.mxu1 %v1031_v40  ;;  %v1019_v45 = vadd.f32 %v2331_v38, %v1018_v39 }
 0x3d7   :  { %2567 = vmatprep.subr.mxu1 %v1030_v41 }
 0x3d8   :  { %2568 = vmatpush3.msra.mxu1 %v1030_v41 }
 0x3d9   :  { %2569 = vmatprep.subr.mxu1 %v1029_v44 }
 0x3da   :  { %2570 = vmatpush3.msra.mxu1 %v1029_v44 }
 0x3db   :  { %2571 = vmatprep.subr.mxu1 %v1028_v46 }
 0x3dc   :  { %2572 = vmatpush3.msra.mxu1 %v1028_v46 }
 0x3dd   :  { %2574 = vmatmul.mubr.msk.f32.vlgmr.msra.gmra.mxu1 %vm432_vm1, %v3412_v23  ;;  %2587 = vmatprep.subr.mxu1 %v1259_v8 }
 0x3de   :  { %2588 = vmatpush3.msra.mxu1 %v1259_v8  ;;  %v1552_v8 = vld [vmem:[#allocation11 + $0x50] sm:$0xff] }
 0x3df   :  { %2589 = vmatprep.subr.mxu1 %v1258_v9 }
 0x3e0   :  { %2590 = vmatpush3.msra.mxu1 %v1258_v9  ;;  %v1465_v9 = vld [vmem:[#allocation10 + $0x58] sm:$0xff] }
 0x3e1   :  { %2591 = vmatprep.subr.mxu1 %v1257_v10 }
 0x3e2   :  { %2592 = vmatpush3.msra.mxu1 %v1257_v10  ;;  %v1464_v10 = vld [vmem:[#allocation10 + $0x50] sm:$0xff] }
 0x3e3   :  { %2593 = vmatprep.subr.mxu1 %v1256_v11 }
 0x3e4   :  { %2594 = vmatpush3.msra.mxu1 %v1256_v11  ;;  %v1551_v11 = vld [vmem:[#allocation11 + $0x48] sm:$0xff] }
 0x3e5   :  { %2609 = vmatprep.subr.mxu1 %v1465_v9 }
 0x495   :  { %v2553_v52 = vpop.f32.mrf.mxu1 }
 0x496   :  { %v932_v54 = vadd.f32 %v2553_v52, %v2328_v51  ;;  %v1367_v52 = vld [vmem:[#allocation22 + $0x38] sm:$0xff] }
 0x497   :  { %v926_v55 = vpop.f32.mrf.mxu1 }
 0x498   :  { %v936_v57 = vmul.f32 %v932_v54, %v683_v53  ;;  %v927_v58 = vadd.f32 %v2328_v51, %v926_v55  ;;  %v1116_v51 = vld [vmem:[#allocation13 + $0x20] sm:$0xff]  ;;  %v1365_v54 = vld [vmem:[#allocation22 + $0x28] sm:$0xff]  ;;  %v1364_v55 = vld [vmem:[#allocation22 + $0x20] sm:$0xff] }
 0x499   :  { %2582 = vmatprep.subr.mxu0 %v1116_v51  ;;  %v1366_v53 = vld [vmem:[#allocation22 + $0x30] sm:$0xff] }
 0x49a   :  { %v3459_v59 = vadd.f32 %v936_v57, %v3429_v28  ;;  %v935_v60 = vmul.f32 %v927_v58, %v678_v56  ;;  %2583 = vmatpush3.msra.mxu0 %v1116_v51  ;;  %v2343_v56 = vld [vmem:[#allocation20 + $0x1] ss:$0 sm:$0xff] }
 0x49b   :  { %2585 = vmatmul.mubr.msk.f32.vlgmr.msra.gmra.mxu0 %vm432_vm1, %v3412_v23  ;;  %2598 = vmatprep.subr.mxu0 %v1367_v52 }
 0x49c   :  { %v3462_v61 = vadd.f32 %v935_v60, %v3427_v27  ;;  %v1206_v62 = vsel %vm432_vm1, %v3459_v59, 0.0  ;;  %2599 = vmatpush3.msra.mxu0 %v1367_v52 }
 0x49d   :  { %1207 = vadd.xlane.f32.xlu1 %v1206_v62  ;;  %v2575_v18 = vpop.f32.mrf.mxu1  ;;  %2600 = vmatprep.subr.mxu0 %v1366_v53 }
 0x49e   :  { %v1203_v63 = vsel %vm432_vm1, %v3462_v61, 0.0  ;;  %v1112_v21 = vadd.f32 %v2575_v18, %v2334_v19  ;;  %2601 = vmatpush3.msra.mxu0 %v1366_v53  ;;  %v2348_v18 = vld [vmem:[#allocation23 + $0x1] ss:$0 sm:$0xff] }
 0x49f   :  { %1204 = vadd.xlane.f32.xlu0 %v1203_v63  ;;  %v1106_v25 = vpop.f32.mrf.mxu1  ;;  %2602 = vmatprep.subr.mxu0 %v1365_v54 }
 0x4a0   :  { %v1107_v33 = vadd.f32 %v2334_v19, %v1106_v25  ;;  %v1250_v35 = vadd.f32 1.0, %v1112_v21  ;;  %2603 = vmatpush3.msra.mxu0 %v1365_v54  ;;  %v2354_v54 = vld [vmem:[#allocation16 + $0x2] ss:$0 sm:$0xff] }
 0x4a1   :  { %2604 = vmatprep.subr.mxu0 %v1364_v55 }
 0x4a2   :  { %v1249_v41 = vadd.f32 1.0, %v1107_v33  ;;  %2605 = vmatpush3.msra.mxu0 %v1364_v55 }
 0x526   :  { %v1208_v0 = vpop.xlane.xlu1 %1207 }
 0x527   :  { %v1210_v1 = vmul.f32 0.03125, %v1208_v0 }
 0x528   :  { %v1205_v2 = vpop.xlane.xlu0 %1204 }
 0x529   :  { %v1212_v3 = vsub.f32 %v3459_v59, %v1210_v1  ;;  %v1209_v4 = vmul.f32 0.03125, %v1205_v2 }
 0x52b   :  { %v1211_v28 = vsub.f32 %v3462_v61, %v1209_v4  ;;  %v1214_v5 = vmul.f32 %v1212_v3, %v1212_v3 }
 0x52d   :  { %v1218_v27 = vsel %vm432_vm1, %v1214_v5, 0.0  ;;  %v1213_v6 = vmul.f32 %v1211_v28, %v1211_v28 }
 0x52e   :  { %1219 = vadd.xlane.f32.xlu1 %v1218_v27 }
 0x52f   :  { %v1215_v7 = vsel %vm432_vm1, %v1213_v6, 0.0 }
 0x530   :  { %1216 = vadd.xlane.f32.xlu0 %v1215_v7  ;;  %v1553_v7 = vld [vmem:[#allocation11 + $0x58] sm:$0xff] }
 0x531   :  { %2620 = vmatprep.subr.mxu0 %v1553_v7 }
 0x5b7   :  { %v1220_v12 = vpop.xlane.xlu1 %1219 }
 0x5b8   :  { %v1222_v13 = vmul.f32 0.03125, %v1220_v12  ;;  %v1463_v12 = vld [vmem:[#allocation10 + $0x48] sm:$0xff] }
 0x5b9   :  { %v1217_v14 = vpop.xlane.xlu0 %1216 }
 0x5ba   :  { %v1224_v15 = vadd.f32 1e-06, %v1222_v13  ;;  %v1221_v16 = vmul.f32 0.03125, %v1217_v14  ;;  %v1550_v13 = vld [vmem:[#allocation11 + $0x40] sm:$0xff] }
 0x5bb   :  { %v1462_v14 = vld [vmem:[#allocation10 + $0x40] sm:$0xff] }
 0x5bc   :  { %2740 = vrsqrt.f32 %v1224_v15  ;;  %v1223_v17 = vadd.f32 1e-06, %v1221_v16  ;;  %v2586_v15 = vpop.f32.mrf.mxu0  ;;  %v2337_v16 = vld [vmem:[#allocation17 + $0x1] ss:$0 sm:$0xff] }
 0x5be   :  { %2742 = vrsqrt.f32 %v1223_v17  ;;  %v1194_v17 = vpop.f32.mrf.mxu0 }
 0x5bf   :  { %v1195_v25 = vadd.f32 %v2337_v16, %v1194_v17  ;;  %v1639_v17 = vld [vmem:[#allocation13 + $0x48] sm:$0xff] }
 0x5c9   :  { %v2741_v20 = vpop.eup %2740 }
 0x5ca   :  { %v1228_v26 = vmul.f32 %v2741_v20, %v1212_v3  ;;  %v1200_v20 = vadd.f32 %v2586_v15, %v2337_v16  ;;  %v1641_v15 = vld [vmem:[#allocation13 + $0x58] sm:$0xff]  ;;  %v1640_v16 = vld [vmem:[#allocation13 + $0x50] sm:$0xff] }
 0x5cb   :  { %v2743_v29 = vpop.eup %2742 }
 0x5cc   :  { %v1238_v32 = vmul.f32 %v2341_v24, %v1228_v26  ;;  %v1227_v34 = vmul.f32 %v2743_v29, %v1211_v28 }
 0x5ce   :  { %v1248_v36 = vadd.f32 %v2342_v30, %v1238_v32  ;;  %v1237_v37 = vmul.f32 %v2341_v24, %v1227_v34 }
 0x5d0   :  { %v1247_v40 = vadd.f32 %v2342_v30, %v1237_v37  ;;  %v1252_v42 = vmul.f32 %v1250_v35, %v1248_v36 }
 0x5d2   :  { %v1251_v44 = vmul.f32 %v1249_v41, %v1247_v40  ;;  %v1254_v47 = vadd.f32 %v1252_v42, %v1024_v43  ;;  %v1781_v43 = vld [vmem:[#allocation19 + $0x58] sm:$0xff] }
 0x5d4   :  { %v1253_v46 = vadd.f32 %v1251_v44, %v1019_v45  ;;  %v1780_v44 = vld [vmem:[#allocation19 + $0x50] sm:$0xff]  ;;  %v1779_v45 = vld [vmem:[#allocation19 + $0x48] sm:$0xff] }
 0x5d6   :  { %2595 = vmatprep.mubr.msk.f32.mxu1 %vm432_vm1, %v1253_v46  ;;  %v1778_v46 = vld [vmem:[#allocation19 + $0x40] sm:$0xff] }
 0x5d7   :  { %2596 = vmatmul.mubr.msk.f32.vlgmr.msra.gmra.mxu1 %vm432_vm1, %v1254_v47 }
 0x5d8   :  { %2617 = vmatprep.mubr.msk.f32.mxu1 %vm432_vm1, %v3410_v22  ;;  %2610 = vmatpush3.msra.mxu1 %v1465_v9 }
 0x5d9   :  { %2611 = vmatprep.subr.mxu1 %v1464_v10 }
 0x5da   :  { %2612 = vmatpush3.msra.mxu1 %v1464_v10 }
 0x5db   :  { %2613 = vmatprep.subr.mxu1 %v1463_v12 }
 0x5dc   :  { %2614 = vmatpush3.msra.mxu1 %v1463_v12 }
 0x5dd   :  { %2615 = vmatprep.subr.mxu1 %v1462_v14 }
 0x5de   :  { %2616 = vmatpush3.msra.mxu1 %v1462_v14 }
 0x5df   :  { %2618 = vmatmul.mubr.msk.f32.vlgmr.msra.gmra.mxu1 %vm432_vm1, %v3412_v23  ;;  %2631 = vmatprep.subr.mxu1 %v1641_v15 }
 0x5e0   :  { %2639 = vmatprep.mubr.msk.f32.mxu1 %vm432_vm1, %v3410_v22  ;;  %2632 = vmatpush3.msra.mxu1 %v1641_v15 }
 0x5e1   :  { %2633 = vmatprep.subr.mxu1 %v1640_v16 }
 0x5e2   :  { %2634 = vmatpush3.msra.mxu1 %v1640_v16 }
 0x5e3   :  { %2635 = vmatprep.subr.mxu1 %v1639_v17 }
 0x5e4   :  { %2636 = vmatpush3.msra.mxu1 %v1639_v17 }
 0x697   :  { %v2597_v57 = vpop.f32.mrf.mxu1 }
 0x698   :  { %v1346_v58 = vadd.f32 %v2597_v57, %v2343_v56  ;;  %v2361_v57 = vld [vmem:[%s3588_s9 + $0x2] ss:$0 sm:$0xff] }
 0x699   :  { %v1340_v60 = vpop.f32.mrf.mxu1 }
 0x69a   :  { %v2347_v62 = vmul.f32 -1.442695, %v1346_v58  ;;  %v1341_v63 = vadd.f32 %v2343_v56, %v1340_v60 }
 0x69c   :  { %2744 = vpow2.f32 %v2347_v62  ;;  %v2346_v0 = vmul.f32 -1.442695, %v1341_v63 }
 0x69e   :  { %2746 = vpow2.f32 %v2346_v0 }
 0x69f   :  { %v2619_v0 = vpop.f32.mrf.mxu1 }
 0x6a9   :  { %v2745_v1 = vpop.eup %2744 }
 0x6aa   :  { %v1356_v2 = vadd.f32 1.0, %v2745_v1 }
 0x6ab   :  { %v2747_v3 = vpop.eup %2746 }
 0x6ac   :  { %v1355_v4 = vadd.f32 1.0, %v2747_v3  ;;  %2748 = vrcp.f32 %v1356_v2 }
 0x6ae   :  { %2750 = vrcp.f32 %v1355_v4 }
 0x6b9   :  { %v2749_v28 = vpop.eup %2748 }
 0x6ba   :  { %v1362_v6 = vmul.f32 %v2749_v28, %v1346_v58 }
 0x6bb   :  { %v2751_v5 = vpop.eup %2750 }
 0x6bc   :  { %v1361_v27 = vmul.f32 %v2751_v5, %v1341_v63  ;;  %v2362_v63 = vld [vmem:[#allocation8 + $0x2] ss:$0 sm:$0xff] }
 0x6be   :  { %2606 = vmatprep.mubr.msk.f32.mxu0 %vm432_vm1, %v1361_v27  ;;  %v2351_v27 = vld [vmem:[#allocation14 + $0x2] ss:$0 sm:$0xff] }
 0x6bf   :  { %2607 = vmatmul.mubr.msk.f32.vlgmr.msra.gmra.mxu0 %vm432_vm1, %v1362_v6  ;;  %v1540_v6 = vpop.f32.mrf.mxu1  ;;  %v1546_v10 = vadd.f32 %v2619_v0, %v2351_v27 }
 0x6c0   :  { %2628 = vmatprep.mubr.msk.f32.mxu0 %vm432_vm1, %v3410_v22  ;;  %2621 = vmatpush3.msra.mxu0 %v1553_v7  ;;  %v1541_v12 = vadd.f32 %v2351_v27, %v1540_v6 }
 0x6c1   :  { %2622 = vmatprep.subr.mxu0 %v1552_v8 }
 0x6c2   :  { %2623 = vmatpush3.msra.mxu0 %v1552_v8 }
 0x6c3   :  { %2624 = vmatprep.subr.mxu0 %v1551_v11 }
 0x6c4   :  { %2625 = vmatpush3.msra.mxu0 %v1551_v11 }
 0x6c5   :  { %2626 = vmatprep.subr.mxu0 %v1550_v13 }
 0x6c6   :  { %2627 = vmatpush3.msra.mxu0 %v1550_v13 }
 0x6c7   :  { %2629 = vmatmul.mubr.msk.f32.vlgmr.msra.gmra.mxu0 %vm432_vm1, %v3412_v23  ;;  %2642 = vmatprep.subr.mxu0 %v1781_v43 }
 0x6c8   :  { %2643 = vmatpush3.msra.mxu0 %v1781_v43  ;;  %v2071_v43 = vld [vmem:[#allocation26 + $0x10] sm:$0xff] }
 0x6c9   :  { %2644 = vmatprep.subr.mxu0 %v1780_v44 }
 0x6ca   :  { %2645 = vmatpush3.msra.mxu0 %v1780_v44  ;;  %v1986_v44 = vld [vmem:[#allocation25 + $0x18] sm:$0xff] }
 0x6cb   :  { %2646 = vmatprep.subr.mxu0 %v1779_v45 }
 0x6cc   :  { %2647 = vmatpush3.msra.mxu0 %v1779_v45  ;;  %v1985_v45 = vld [vmem:[#allocation25 + $0x10] sm:$0xff] }
 0x6cd   :  { %2648 = vmatprep.subr.mxu0 %v1778_v46 }
 0x6ce   :  { %2649 = vmatpush3.msra.mxu0 %v1778_v46  ;;  %v2070_v46 = vld [vmem:[#allocation26 + $0x8] sm:$0xff] }
 0x6cf   :  { %2664 = vmatprep.subr.mxu0 %v1986_v44 }
 0x77f   :  { %v2608_v19 = vpop.f32.mrf.mxu0 }
 0x780   :  { %v1454_v21 = vadd.f32 %v2608_v19, %v2348_v18  ;;  %v1889_v19 = vld [vmem:[#allocation22 + $0x58] sm:$0xff] }
 0x781   :  { %v1448_v24 = vpop.f32.mrf.mxu0 }
 0x782   :  { %v1458_v26 = vmul.f32 %v1454_v21, %v1200_v20  ;;  %v1449_v29 = vadd.f32 %v2348_v18, %v1448_v24  ;;  %v1638_v18 = vld [vmem:[#allocation13 + $0x40] sm:$0xff]  ;;  %v1887_v21 = vld [vmem:[#allocation22 + $0x48] sm:$0xff]  ;;  %v1886_v24 = vld [vmem:[#allocation22 + $0x40] sm:$0xff] }
 0x783   :  { %2637 = vmatprep.subr.mxu1 %v1638_v18  ;;  %v1888_v20 = vld [vmem:[#allocation22 + $0x50] sm:$0xff] }
 0x784   :  { %v3492_v30 = vadd.f32 %v1458_v26, %v3459_v59  ;;  %v1457_v31 = vmul.f32 %v1449_v29, %v1195_v25  ;;  %2638 = vmatpush3.msra.mxu1 %v1638_v18  ;;  %v2363_v25 = vld [vmem:[#allocation20 + $0x2] ss:$0 sm:$0xff] }
 0x785   :  { %2640 = vmatmul.mubr.msk.f32.vlgmr.msra.gmra.mxu1 %vm432_vm1, %v3412_v23  ;;  %2653 = vmatprep.subr.mxu1 %v1889_v19 }
 0x786   :  { %v3495_v32 = vadd.f32 %v1457_v31, %v3462_v61  ;;  %v1728_v33 = vsel %vm432_vm1, %v3492_v30, 0.0  ;;  %2654 = vmatpush3.msra.mxu1 %v1889_v19  ;;  %v2374_v19 = vld [vmem:[#allocation29] ss:$0 sm:$0xff] }
 0x787   :  { %1729 = vadd.xlane.f32.xlu1 %v1728_v33  ;;  %v2630_v53 = vpop.f32.mrf.mxu0  ;;  %2655 = vmatprep.subr.mxu1 %v1888_v20 }
 0x788   :  { %v1725_v34 = vsel %vm432_vm1, %v3495_v32, 0.0  ;;  %v1634_v56 = vadd.f32 %v2630_v53, %v2354_v54  ;;  %2656 = vmatpush3.msra.mxu1 %v1888_v20 }
 0x789   :  { %1726 = vadd.xlane.f32.xlu0 %v1725_v34  ;;  %v1628_v58 = vpop.f32.mrf.mxu0  ;;  %2657 = vmatprep.subr.mxu1 %v1887_v21 }
 0x78a   :  { %v1629_v2 = vadd.f32 %v2354_v54, %v1628_v58  ;;  %v1772_v4 = vadd.f32 1.0, %v1634_v56  ;;  %2658 = vmatpush3.msra.mxu1 %v1887_v21 }
 0x78b   :  { %2659 = vmatprep.subr.mxu1 %v1886_v24 }
 0x78c   :  { %v1771_v8 = vadd.f32 1.0, %v1629_v2  ;;  %2660 = vmatpush3.msra.mxu1 %v1886_v24 }
 0x810   :  { %v1730_v35 = vpop.xlane.xlu1 %1729 }
 0x811   :  { %v1732_v36 = vmul.f32 0.03125, %v1730_v35 }
 0x812   :  { %v1727_v37 = vpop.xlane.xlu0 %1726 }
 0x813   :  { %v1734_v38 = vsub.f32 %v3492_v30, %v1732_v36  ;;  %v1731_v39 = vmul.f32 0.03125, %v1727_v37 }
 0x815   :  { %v1733_v59 = vsub.f32 %v3495_v32, %v1731_v39  ;;  %v1736_v40 = vmul.f32 %v1734_v38, %v1734_v38 }
 0x817   :  { %v1740_v61 = vsel %vm432_vm1, %v1736_v40, 0.0  ;;  %v1735_v41 = vmul.f32 %v1733_v59, %v1733_v59 }
 0x818   :  { %1741 = vadd.xlane.f32.xlu1 %v1740_v61 }
 0x819   :  { %v1737_v42 = vsel %vm432_vm1, %v1735_v41, 0.0 }
 0x81a   :  { %1738 = vadd.xlane.f32.xlu0 %v1737_v42  ;;  %v2072_v42 = vld [vmem:[#allocation26 + $0x18] sm:$0xff] }
 0x81b   :  { %2675 = vmatprep.subr.mxu1 %v2072_v42 }
 0x8a1   :  { %v1742_v47 = vpop.xlane.xlu1 %1741 }
 0x8a2   :  { %v1744_v48 = vmul.f32 0.03125, %v1742_v47  ;;  %v1984_v47 = vld [vmem:[#allocation25 + $0x8] sm:$0xff] }
 0x8a3   :  { %v1739_v49 = vpop.xlane.xlu0 %1738 }
 0x8a4   :  { %v1746_v50 = vadd.f32 1e-06, %v1744_v48  ;;  %v1743_v51 = vmul.f32 0.03125, %v1739_v49  ;;  %v2069_v48 = vld [vmem:[#allocation26] sm:$0xff] }
 0x8a5   :  { %v1983_v49 = vld [vmem:[#allocation25] sm:$0xff] }
 0x8a6   :  { %2752 = vrsqrt.f32 %v1746_v50  ;;  %v1745_v52 = vadd.f32 1e-06, %v1743_v51  ;;  %v2357_v50 = vld [vmem:[#allocation17 + $0x2] ss:$0 sm:$0xff] }
 0x8a8   :  { %2754 = vrsqrt.f32 %v1745_v52  ;;  %v2368_v52 = vld [vmem:[#allocation23 + $0x2] ss:$0 sm:$0xff] }
 0x8b3   :  { %v2753_v55 = vpop.eup %2752 }
 0x8b4   :  { %v1750_v60 = vmul.f32 %v2753_v55, %v1734_v38 }
 0x8b5   :  { %v2755_v62 = vpop.eup %2754 }
 0x8b6   :  { %v1760_v1 = vmul.f32 %v2361_v57, %v1750_v60  ;;  %v1749_v3 = vmul.f32 %v2755_v62, %v1733_v59 }
 0x8b8   :  { %v1770_v28 = vadd.f32 %v2362_v63, %v1760_v1  ;;  %v1759_v5 = vmul.f32 %v2361_v57, %v1749_v3 }
 0x8ba   :  { %v1769_v7 = vadd.f32 %v2362_v63, %v1759_v5  ;;  %v1774_v9 = vmul.f32 %v1772_v4, %v1770_v28 }
 0x8bc   :  { %v1773_v11 = vmul.f32 %v1771_v8, %v1769_v7  ;;  %v1776_v14 = vadd.f32 %v1774_v9, %v1546_v10  ;;  %v2189_v9 = vld [vmem:[%s3571_s20 + $0x10] sm:$0xff]  ;;  %v2188_v10 = vld [vmem:[%s3571_s20 + $0x8] sm:$0xff] }
 0x8be   :  { %v1775_v13 = vadd.f32 %v1773_v11, %v1541_v12  ;;  %v2187_v11 = vld [vmem:[%s3571_s20] sm:$0xff] }
 0x8c0   :  { %2650 = vmatprep.mubr.msk.f32.mxu0 %vm432_vm1, %v1775_v13 }
 0x8c1   :  { %2651 = vmatmul.mubr.msk.f32.vlgmr.msra.gmra.mxu0 %vm432_vm1, %v1776_v14 }
 0x8c2   :  { %2672 = vmatprep.mubr.msk.f32.mxu0 %vm432_vm1, %v3410_v22  ;;  %2665 = vmatpush3.msra.mxu0 %v1986_v44 }
 0x8c3   :  { %2666 = vmatprep.subr.mxu0 %v1985_v45 }
 0x8c4   :  { %2667 = vmatpush3.msra.mxu0 %v1985_v45 }
 0x8c5   :  { %2668 = vmatprep.subr.mxu0 %v1984_v47 }
 0x8c6   :  { %2669 = vmatpush3.msra.mxu0 %v1984_v47 }
 0x8c7   :  { %2670 = vmatprep.subr.mxu0 %v1983_v49 }
 0x8c8   :  { %2671 = vmatpush3.msra.mxu0 %v1983_v49 }
 0x8c9   :  { %2673 = vmatmul.mubr.msk.f32.vlgmr.msra.gmra.mxu0 %vm432_vm1, %v3412_v23 }
 0x981   :  { %v2652_v26 = vpop.f32.mrf.mxu0 }
 0x982   :  { %v1868_v29 = vadd.f32 %v2652_v26, %v2363_v25 }
 0x983   :  { %v1862_v31 = vpop.f32.mrf.mxu0 }
 0x984   :  { %v2367_v33 = vmul.f32 -1.442695, %v1868_v29  ;;  %v1863_v34 = vadd.f32 %v2363_v25, %v1862_v31 }
 0x986   :  { %2756 = vpow2.f32 %v2367_v33  ;;  %v2366_v35 = vmul.f32 -1.442695, %v1863_v34  ;;  %v2371_v33 = vld [vmem:[#allocation28] ss:$0 sm:$0xff] }
 0x988   :  { %2758 = vpow2.f32 %v2366_v35 }
 0x989   :  { %v2674_v24 = vpop.f32.mrf.mxu0 }
 0x98b   :  { %v2060_v35 = vpop.f32.mrf.mxu0 }
 0x993   :  { %v2757_v36 = vpop.eup %2756 }
 0x994   :  { %v1878_v37 = vadd.f32 1.0, %v2757_v36 }
 0x995   :  { %v2759_v38 = vpop.eup %2758 }
 0x996   :  { %v1877_v39 = vadd.f32 1.0, %v2759_v38  ;;  %2760 = vrcp.f32 %v1878_v37 }
 0x998   :  { %2762 = vrcp.f32 %v1877_v39  ;;  %v2066_v39 = vadd.f32 %v2674_v24, %v2371_v33 }
 0x9a3   :  { %v2761_v59 = vpop.eup %2760 }
 0x9a4   :  { %v1884_v41 = vmul.f32 %v2761_v59, %v1868_v29 }
 0x9a5   :  { %v2763_v40 = vpop.eup %2762 }
 0x9a6   :  { %v1883_v61 = vmul.f32 %v2763_v40, %v1863_v34  ;;  %v2061_v40 = vadd.f32 %v2371_v33, %v2060_v35 }
 0x9a8   :  { %2661 = vmatprep.mubr.msk.f32.mxu1 %vm432_vm1, %v1883_v61 }
 0x9a9   :  { %2662 = vmatmul.mubr.msk.f32.vlgmr.msra.gmra.mxu1 %vm432_vm1, %v1884_v41 }
 0x9aa   :  { %2683 = vmatprep.mubr.msk.f32.mxu1 %vm432_vm1, %v3410_v22  ;;  %2676 = vmatpush3.msra.mxu1 %v2072_v42  ;;  %v2641_v22 = vpop.f32.mrf.mxu1  ;;  %v2377_v42 = vld [vmem:[%s3572_s21] ss:$0 sm:$0xff] }
 0x9ab   :  { %2677 = vmatprep.subr.mxu1 %v2071_v43  ;;  %v1722_v54 = vadd.f32 %v2641_v22, %v2357_v50 }
 0x9ac   :  { %2678 = vmatpush3.msra.mxu1 %v2071_v43  ;;  %v1716_v51 = vpop.f32.mrf.mxu1 }
 0x9ad   :  { %2679 = vmatprep.subr.mxu1 %v2070_v46  ;;  %v1717_v57 = vadd.f32 %v2357_v50, %v1716_v51 }
 0x9ae   :  { %2680 = vmatpush3.msra.mxu1 %v2070_v46 }
 0x9af   :  { %2681 = vmatprep.subr.mxu1 %v2069_v48 }
 0x9b0   :  { %2682 = vmatpush3.msra.mxu1 %v2069_v48 }
 0x9b1   :  { %2684 = vmatmul.mubr.msk.f32.vlgmr.msra.gmra.mxu1 %vm432_vm1, %v3412_v23 }
 0xa69   :  { %v2663_v53 = vpop.f32.mrf.mxu1 }
 0xa6a   :  { %v1976_v55 = vadd.f32 %v2663_v53, %v2368_v52 }
 0xa6b   :  { %v1970_v56 = vpop.f32.mrf.mxu1 }
 0xa6c   :  { %v1980_v58 = vmul.f32 %v1976_v55, %v1722_v54  ;;  %v1971_v60 = vadd.f32 %v2368_v52, %v1970_v56 }
 0xa6e   :  { %v1979_v62 = vmul.f32 %v1971_v60, %v1717_v57  ;;  %v1982_v63 = vadd.f32 %v1980_v58, %v3492_v30 }
 0xa70   :  { %v2158_v0 = vsel %vm432_vm1, %v1982_v63, 0.0  ;;  %v1981_v1 = vadd.f32 %v1979_v62, %v3495_v32  ;;  %v2190_v32 = vld [vmem:[%s3571_s20 + $0x18] sm:$0xff] }
 0xa71   :  { %2159 = vadd.xlane.f32.xlu1 %v2158_v0  ;;  %2686 = vmatprep.subr.mxu0 %v2190_v32  ;;  %v2685_v18 = vpop.f32.mrf.mxu1 }
 0xa72   :  { %v2155_v23 = vsel %vm432_vm1, %v1981_v1, 0.0  ;;  %2687 = vmatpush3.msra.mxu0 %v2190_v32  ;;  %v2152_v20 = vadd.f32 %v2685_v18, %v2374_v19 }
 0xa73   :  { %2156 = vadd.xlane.f32.xlu0 %v2155_v23  ;;  %2688 = vmatprep.subr.mxu0 %v2189_v9  ;;  %v2146_v21 = vpop.f32.mrf.mxu1 }
 0xa74   :  { %2689 = vmatpush3.msra.mxu0 %v2189_v9  ;;  %v2147_v25 = vadd.f32 %v2374_v19, %v2146_v21  ;;  %v2182_v29 = vadd.f32 1.0, %v2152_v20 }
 0xa75   :  { %2690 = vmatprep.subr.mxu0 %v2188_v10 }
 0xa76   :  { %2691 = vmatpush3.msra.mxu0 %v2188_v10  ;;  %v2181_v37 = vadd.f32 1.0, %v2147_v25 }
 0xa77   :  { %2692 = vmatprep.subr.mxu0 %v2187_v11 }
 0xa78   :  { %2693 = vmatpush3.msra.mxu0 %v2187_v11 }
 0xafa   :  { %v2160_v2 = vpop.xlane.xlu1 %2159 }
 0xafb   :  { %v2162_v3 = vmul.f32 0.03125, %v2160_v2 }
 0xafc   :  { %v2157_v4 = vpop.xlane.xlu0 %2156 }
 0xafd   :  { %v2164_v28 = vsub.f32 %v1982_v63, %v2162_v3  ;;  %v2161_v5 = vmul.f32 0.03125, %v2157_v4 }
 0xaff   :  { %v2163_v27 = vsub.f32 %v1981_v1, %v2161_v5  ;;  %v2166_v6 = vmul.f32 %v2164_v28, %v2164_v28 }
 0xb01   :  { %v2170_v7 = vsel %vm432_vm1, %v2166_v6, 0.0  ;;  %v2165_v8 = vmul.f32 %v2163_v27, %v2163_v27 }
 0xb02   :  { %2171 = vadd.xlane.f32.xlu1 %v2170_v7 }
 0xb03   :  { %v2167_v30 = vsel %vm432_vm1, %v2165_v8, 0.0 }
 0xb04   :  { %2168 = vadd.xlane.f32.xlu0 %v2167_v30 }
 0xb8b   :  { %v2172_v12 = vpop.xlane.xlu1 %2171 }
 0xb8c   :  { %v2174_v13 = vmul.f32 0.03125, %v2172_v12 }
 0xb8d   :  { %v2169_v14 = vpop.xlane.xlu0 %2168 }
 0xb8e   :  { %v2176_v15 = vadd.f32 1e-06, %v2174_v13  ;;  %v2173_v16 = vmul.f32 0.03125, %v2169_v14 }
 0xb90   :  { %2764 = vrsqrt.f32 %v2176_v15  ;;  %v2175_v17 = vadd.f32 1e-06, %v2173_v16 }
 0xb92   :  { %2766 = vrsqrt.f32 %v2175_v17 }
 0xb9d   :  { %v2765_v26 = vpop.eup %2764 }
 0xb9e   :  { %v2180_v31 = vmul.f32 %v2765_v26, %v2164_v28 }
 0xb9f   :  { %v2767_v34 = vpop.eup %2766 }
 0xba0   :  { %v2179_v36 = vmul.f32 %v2767_v34, %v2163_v27  ;;  %v2184_v38 = vmul.f32 %v2182_v29, %v2180_v31 }
 0xba2   :  { %v2183_v59 = vmul.f32 %v2181_v37, %v2179_v36  ;;  %v2186_v41 = vadd.f32 %v2184_v38, %v2066_v39 }
 0xba4   :  { %v2185_v61 = vadd.f32 %v2183_v59, %v2061_v40 }
 0xba6   :  { %2694 = vmatprep.mubr.msk.f32.mxu0 %vm432_vm1, %v2185_v61 }
 0xba7   :  { %2695 = vmatmul.mubr.msk.f32.vlgmr.msra.gmra.mxu0 %vm432_vm1, %v2186_v41 }
 0xc67   :  { %v2696_v43 = vpop.f32.mrf.mxu0 }
 0xc68   :  { %v2276_v44 = vadd.f32 %v2696_v43, %v2377_v42 }
 0xc69   :  { %v2270_v45 = vpop.f32.mrf.mxu0 }
 0xc6a   :  { %2280 = vst [vmem:[#allocation31 + $0x8] sm:$0xff] %v2276_v44  ;;  %v2271_v46 = vadd.f32 %v2377_v42, %v2270_v45 }
 0xc6c   :  { %2279 = vst [vmem:[#allocation31] sm:$0xff] %v2271_v46 }
 0xc6d   :  { %3139 = shalt.err (!%p3136_p10)
}
 0xc6e   :  { %2292 = dma.vmem_to_hbm [thread:$0]  %s2287_s11, 256, %s3573_s22, [#allocation4], %s3172_s0, %s3172_s0, %s3173_s23  }
 0xc6f   :  { %3168 = dma.done.wait [#allocation4], 256  }
 0xc70   :  { %3169 = vsyncadd [#allocation4], 4294967040 }
 0xc71   :  { %2296 = vsyncpa [#allocation3], 1 }
 0xc72   :  { %2297 = vsyncpa [#allocation6], 1 }
 0xc73   :  { %2298 = vsyncpa [#allocation9], 1 }
 0xc74   :  { %2299 = vsyncpa [#allocation12], 1 }
 0xc75   :  { %2300 = vsyncpa [#allocation15], 1 }
 0xc76   :  { %2301 = vsyncpa [#allocation18], 1 }
 0xc77   :  { %2302 = vsyncpa [#allocation21], 1 }
 0xc78   :  { %2303 = vsyncpa [#allocation24], 1 }
 0xc79   :  { %2304 = vsyncpa [#allocation27], 1 }
 0xc7a   :  { %2305 = vsyncpa [#allocation30], 1 }
 0xc7b   :  { %2306 = vsyncpa [#allocation4], 1 }

</bundles_post_ra>
